<compile_context>
chip_gen: v7x
topology: tpu7x:2x2x1
jax: 0.10.0
libtpu: 0.0.40
codegen_flags: <defaults>
</compile_context>

<pallas_src>
import math
from functools import partial

import jax
import jax.numpy as jnp
from jax import lax
from jax.experimental import pallas as pl
from jax.experimental.pallas import tpu as pltpu

# ---------------- model config ----------------------------------------------
B, T, NUM_HANDS, D_IN = 2, 8, 2, 16
INPUT_DIM = NUM_HANDS * D_IN            # 32
MODEL_DIM = 32
NUM_HEADS = 4
DIM_HEAD = MODEL_DIM // NUM_HEADS       # 8
DIM_FF = MODEL_DIM * 4                  # 128
VOCAB = 16
AUX_CH = 64
LN_EPS = 1e-5
OUT_LANES = 128                         # fused output slab: [gloss(16)|aux(16)|pad(96)]

_BF16 = jnp.bfloat16


# ---------------- small helpers (traced inside the kernel) ------------------
def _mm(a, b):
    """bf16-operand MXU matmul with f32 accumulation."""
    return jnp.dot(a.astype(_BF16), b.astype(_BF16),
                   preferred_element_type=jnp.float32)


def _unbiased_std(x):
    n = x.shape[-1]
    mu = jnp.mean(x, axis=-1, keepdims=True)
    ss = jnp.sum((x - mu) ** 2, axis=-1, keepdims=True)
    return jnp.sqrt(ss / (n - 1))


def _layernorm(x, w, b):
    mu = jnp.mean(x, axis=-1, keepdims=True)
    cen = x - mu
    var = jnp.mean(cen * cen, axis=-1, keepdims=True)
    return cen * lax.rsqrt(var + LN_EPS) * w + b, cen


def _encoder_layer(src, refs, *, batch, seq, nheads):
    """CustomTransformerEncoderLayer.forward on a (batch*seq, dm) value."""
    (ln1w_ref, ln1b_ref, wq_ref, bq_ref, wk_ref, bk_ref, wv_ref, bv_ref,
     wo_ref, bo_ref, ln2w_ref, ln2b_ref, w1_ref, b1_ref, w2_ref, b2_ref) = refs
    dm = src.shape[-1]
    dh = dm // nheads

    # ---- norm1 (LayerNorm, biased var, eps=1e-5) + clamp(-10, 10) ----
    src2, cen = _layernorm(src, ln1w_ref[...], ln1b_ref[...])
    src2 = jnp.clip(src2, -10.0, 10.0)

    # ---- global tiny-variance guard:
    #      torch: if (src.var(-1, unbiased=True) < 1e-5).any(): src2 = src2 + 1e-5
    var_u = jnp.sum(cen * cen, axis=-1, keepdims=True) / (dm - 1)
    any_small = jnp.max(jnp.where(var_u < 1e-5, 1.0, 0.0))
    src2 = src2 + any_small * 1e-5

    # ---- rescale by own unbiased std (+1e-5), then halve ----
    src2 = src2 * pl.reciprocal(_unbiased_std(src2) + 1e-5, approx=True)
    src2 = src2 * 0.5

    # ---- multi-head self-attention ----
    # TODO(synk): SelfAttention in the source is a Performer FAVOR+ module
    #             (nb_features random-feature softmax); it is replaced here by
    #             exact softmax MHA with the same to_q/to_k/to_v/to_out linears.
    # The 1/sqrt(dh) attention scale is folded into wq/bq at init time.
    q = _mm(src2, wq_ref[...]) + bq_ref[...]
    k = _mm(src2, wk_ref[...]) + bk_ref[...]
    v = _mm(src2, wv_ref[...]) + bv_ref[...]
    wo = wo_ref[...]
    head_outs = []
    for h in range(nheads):
        c0, c1 = h * dh, (h + 1) * dh
        qh = q[:, c0:c1].reshape(batch, seq, dh)
        kh = k[:, c0:c1].reshape(batch, seq, dh)
        vh = v[:, c0:c1].reshape(batch, seq, dh)
        s = jnp.einsum('bqd,bkd->bqk', qh.astype(_BF16), kh.astype(_BF16),
                       preferred_element_type=jnp.float32)
        s = s - jnp.max(s, axis=-1, keepdims=True)
        p = jnp.exp(s)
        p = p * pl.reciprocal(jnp.sum(p, axis=-1, keepdims=True), approx=True)
        oh = jnp.einsum('bqk,bkd->bqd', p.astype(_BF16), vh.astype(_BF16),
                        preferred_element_type=jnp.float32)
        # fold this head's slice of the output projection here -> no head concat
        head_outs.append(_mm(oh.reshape(batch * seq, dh), wo[c0:c1, :]))
    attn = head_outs[0]
    for ho in head_outs[1:]:
        attn = attn + ho
    attn = attn + bo_ref[...]

    src = src + attn                                  # dropout1 == identity

    # ---- norm2 + feed-forward (exact GELU) ----
    srcn, _ = _layernorm(src, ln2w_ref[...], ln2b_ref[...])
    h1 = _mm(srcn, w1_ref[...]) + b1_ref[...]
    h1 = 0.5 * h1 * (1.0 + lax.erf(h1 * (1.0 / math.sqrt(2.0))))
    ff = _mm(h1, w2_ref[...]) + b2_ref[...]
    return src + ff                                   # dropout2 == identity


# ---------------- the single fused kernel ------------------------------------
def fused_forward_kernel(x_ref, w_in_ref, b_in_ref, pe_ref, *rest,
                         batch, seq, nheads, nhands, d_in, vocab):
    l0_refs = rest[0:16]
    l1_refs = rest[16:32]
    wc_ref, bc_ref, wa_ref, ba_ref, wcls_ref, bcls_ref, o_ref = rest[32:39]
    n = batch * seq

    # -- per-joint std normalization: x / x.std(-1, unbiased) (torch: no eps) --
    x = x_ref[...]                                    # (n, nhands*d_in)
    parts = []
    for j in range(nhands):
        xj = x[:, j * d_in:(j + 1) * d_in]
        parts.append(xj * pl.reciprocal(_unbiased_std(xj), approx=True))
    tokens = jnp.concatenate(parts, axis=-1)          # (n, input_dim)

    # -- input projection + relative positional encoding (broadcast in-kernel) --
    pe = pe_ref[...]                                  # (seq, dm)
    pe_full = jnp.concatenate([pe] * batch, axis=0)   # (n, dm)
    h = _mm(tokens, w_in_ref[...]) + b_in_ref[...] + pe_full

    # -- transformer encoder layer 0 --
    h = _encoder_layer(h, l0_refs, batch=batch, seq=seq, nheads=nheads)

    # -- aux branch: Conv1d(dm -> 64, k=3, pad=1) channels-last + aux_linear --
    dm = h.shape[-1]
    zrow = jnp.zeros((1, dm), jnp.float32)
    x_prev = jnp.concatenate([zrow, h[:n - 1, :]], axis=0)   # row t-1 (global shift)
    x_next = jnp.concatenate([h[1:, :], zrow], axis=0)       # row t+1 (global shift)
    tpos = lax.broadcasted_iota(jnp.int32, (n, 1), 0) % seq  # time index within batch
    x_prev = x_prev * (tpos != 0).astype(jnp.float32)        # zero pad / batch boundary
    x_next = x_next * (tpos != seq - 1).astype(jnp.float32)
    conv = (_mm(x_prev, wc_ref[0]) + _mm(h, wc_ref[1]) + _mm(x_next, wc_ref[2])
            + bc_ref[...])                                   # (n, AUX_CH)
    aux = _mm(conv, wa_ref[...]) + ba_ref[...]               # (n, vocab)

    # -- transformer encoder layer 1 --
    h = _encoder_layer(h, l1_refs, batch=batch, seq=seq, nheads=nheads)

    # -- classifier --
    gloss = _mm(h, wcls_ref[...]) + bcls_ref[...]            # (n, vocab)

    # -- lane-dense output slab: [gloss | aux | zero pad] -> one unmasked store --
    pad = jnp.zeros((n, o_ref.shape[-1] - 2 * vocab), jnp.float32)
    o_ref[...] = jnp.concatenate([gloss, aux, pad], axis=-1)


# ---------------- parameters --------------------------------------------------
def init_params(key):
    keys = iter(jax.random.split(key, 48))

    def kaiming(k, fan_in, fan_out):          # kaiming_normal_, nonlinearity='linear'
        return jax.random.normal(k, (fan_in, fan_out), jnp.float32) / math.sqrt(fan_in)

    def bias(k, fan_in, n):
        bound = 1.0 / math.sqrt(fan_in)
        return jax.random.uniform(k, (1, n), jnp.float32, -bound, bound)

    attn_scale = 1.0 / math.sqrt(DIM_HEAD)    # folded into wq/bq (forward-equivalent)

    def layer():
        return {
            'ln1w': jnp.ones((1, MODEL_DIM), jnp.float32),
            'ln1b': jnp.zeros((1, MODEL_DIM), jnp.float32),
            'ln2w': jnp.ones((1, MODEL_DIM), jnp.float32),
            'ln2b': jnp.zeros((1, MODEL_DIM), jnp.float32),
            'wq': kaiming(next(keys), MODEL_DIM, MODEL_DIM) * attn_scale,
            'bq': bias(next(keys), MODEL_DIM, MODEL_DIM) * attn_scale,
            'wk': kaiming(next(keys), MODEL_DIM, MODEL_DIM),
            'bk': bias(next(keys), MODEL_DIM, MODEL_DIM),
            'wv': kaiming(next(keys), MODEL_DIM, MODEL_DIM),
            'bv': bias(next(keys), MODEL_DIM, MODEL_DIM),
            'wo': kaiming(next(keys), MODEL_DIM, MODEL_DIM),
            'bo': bias(next(keys), MODEL_DIM, MODEL_DIM),
            'w1': kaiming(next(keys), MODEL_DIM, DIM_FF),
            'b1': bias(next(keys), MODEL_DIM, DIM_FF),
            'w2': kaiming(next(keys), DIM_FF, MODEL_DIM),
            'b2': bias(next(keys), DIM_FF, MODEL_DIM),
        }

    return {
        'w_in': kaiming(next(keys), INPUT_DIM, MODEL_DIM),
        'b_in': bias(next(keys), INPUT_DIM, MODEL_DIM),
        'pe': jax.random.normal(next(keys), (T, MODEL_DIM), jnp.float32),
        'layers': [layer(), layer()],
        'wc': jax.random.normal(next(keys), (3, MODEL_DIM, AUX_CH), jnp.float32)
              / math.sqrt(3 * MODEL_DIM),
        'bc': bias(next(keys), 3 * MODEL_DIM, AUX_CH),
        'wa': kaiming(next(keys), AUX_CH, VOCAB),
        'ba': bias(next(keys), AUX_CH, VOCAB),
        'w_cls': kaiming(next(keys), MODEL_DIM, VOCAB),
        'b_cls': bias(next(keys), MODEL_DIM, VOCAB),
    }


def _layer_args(lp):
    return (lp['ln1w'], lp['ln1b'], lp['wq'], lp['bq'], lp['wk'], lp['bk'],
            lp['wv'], lp['bv'], lp['wo'], lp['bo'], lp['ln2w'], lp['ln2b'],
            lp['w1'], lp['b1'], lp['w2'], lp['b2'])


# ---------------- forward -----------------------------------------------------
def forward(x, params):
    Bx, Tx, Hx, Dx = x.shape
    N = Bx * Tx

    inputs = (x.reshape(N, Hx * Dx),                  # free, contiguous reshape
              params['w_in'], params['b_in'], params['pe'],
              *_layer_args(params['layers'][0]),
              *_layer_args(params['layers'][1]),
              params['wc'], params['bc'], params['wa'], params['ba'],
              params['w_cls'], params['b_cls'])

    kernel = partial(fused_forward_kernel, batch=Bx, seq=Tx, nheads=NUM_HEADS,
                     nhands=Hx, d_in=Dx, vocab=VOCAB)

    # Single grid-less call: whole problem is a few vregs.  For scaled-up B*T,
    # add a leading "parallel" batch grid axis here (v7x dual TensorCores).
    slab = pl.pallas_call(
        kernel,
        out_shape=jax.ShapeDtypeStruct((N, OUT_LANES), jnp.float32),
        in_specs=[pl.BlockSpec(memory_space=pltpu.MemorySpace.VMEM)] * len(inputs),
        out_specs=pl.BlockSpec(memory_space=pltpu.MemorySpace.VMEM),
    )(*inputs)

    gloss = slab[:, :VOCAB].reshape(Bx, Tx, VOCAB)
    aux = slab[:, VOCAB:2 * VOCAB].reshape(Bx, Tx, VOCAB)
    return gloss, aux


if __name__ == "__main__":
    key = jax.random.PRNGKey(0)
    kx, kp = jax.random.split(key)
    x = jax.random.normal(kx, (B, T, NUM_HANDS, D_IN), jnp.float32)
    params = init_params(kp)

    gloss_probs, aux_output = jax.jit(forward)(x, params)
    jax.block_until_ready((gloss_probs, aux_output))

    assert gloss_probs.shape == (B, T, VOCAB)
    assert aux_output.shape == (B, T, VOCAB)
    assert bool(jnp.all(jnp.isfinite(gloss_probs))) and bool(jnp.all(jnp.isfinite(aux_output)))
    print("KERNEL_OK")
</pallas_src>

<mosaic_0001>
module attributes {stable_mosaic.version = 11 : i64} {
  func.func @fused_forward_kernel(%arg0: memref<16x32xf32, #tpu.memory_space<vmem>>, %arg1: memref<32x32xf32, #tpu.memory_space<vmem>>, %arg2: memref<1x32xf32, #tpu.memory_space<vmem>>, %arg3: memref<8x32xf32, #tpu.memory_space<vmem>>, %arg4: memref<1x32xf32, #tpu.memory_space<vmem>>, %arg5: memref<1x32xf32, #tpu.memory_space<vmem>>, %arg6: memref<32x32xf32, #tpu.memory_space<vmem>>, %arg7: memref<1x32xf32, #tpu.memory_space<vmem>>, %arg8: memref<32x32xf32, #tpu.memory_space<vmem>>, %arg9: memref<1x32xf32, #tpu.memory_space<vmem>>, %arg10: memref<32x32xf32, #tpu.memory_space<vmem>>, %arg11: memref<1x32xf32, #tpu.memory_space<vmem>>, %arg12: memref<32x32xf32, #tpu.memory_space<vmem>>, %arg13: memref<1x32xf32, #tpu.memory_space<vmem>>, %arg14: memref<1x32xf32, #tpu.memory_space<vmem>>, %arg15: memref<1x32xf32, #tpu.memory_space<vmem>>, %arg16: memref<32x128xf32, #tpu.memory_space<vmem>>, %arg17: memref<1x128xf32, #tpu.memory_space<vmem>>, %arg18: memref<128x32xf32, #tpu.memory_space<vmem>>, %arg19: memref<1x32xf32, #tpu.memory_space<vmem>>, %arg20: memref<1x32xf32, #tpu.memory_space<vmem>>, %arg21: memref<1x32xf32, #tpu.memory_space<vmem>>, %arg22: memref<32x32xf32, #tpu.memory_space<vmem>>, %arg23: memref<1x32xf32, #tpu.memory_space<vmem>>, %arg24: memref<32x32xf32, #tpu.memory_space<vmem>>, %arg25: memref<1x32xf32, #tpu.memory_space<vmem>>, %arg26: memref<32x32xf32, #tpu.memory_space<vmem>>, %arg27: memref<1x32xf32, #tpu.memory_space<vmem>>, %arg28: memref<32x32xf32, #tpu.memory_space<vmem>>, %arg29: memref<1x32xf32, #tpu.memory_space<vmem>>, %arg30: memref<1x32xf32, #tpu.memory_space<vmem>>, %arg31: memref<1x32xf32, #tpu.memory_space<vmem>>, %arg32: memref<32x128xf32, #tpu.memory_space<vmem>>, %arg33: memref<1x128xf32, #tpu.memory_space<vmem>>, %arg34: memref<128x32xf32, #tpu.memory_space<vmem>>, %arg35: memref<1x32xf32, #tpu.memory_space<vmem>>, %arg36: memref<3x32x64xf32, #tpu.memory_space<vmem>>, %arg37: memref<1x64xf32, #tpu.memory_space<vmem>>, %arg38: memref<64x16xf32, #tpu.memory_space<vmem>>, %arg39: memref<1x16xf32, #tpu.memory_space<vmem>>, %arg40: memref<32x16xf32, #tpu.memory_space<vmem>>, %arg41: memref<1x16xf32, #tpu.memory_space<vmem>>, %arg42: memref<16x128xf32, #tpu.memory_space<vmem>>) attributes {dimension_semantics = [], scalar_prefetch = 0 : i64, scratch_operands = 0 : i64, tpu.core_type = #tpu.core_type<tc>} {
    %c0 = arith.constant 0 : index
    %c0_0 = arith.constant 0 : index
    %0 = vector.load %arg0[%c0, %c0_0] : memref<16x32xf32, #tpu.memory_space<vmem>>, vector<16x32xf32>
    %1 = vector.extract_strided_slice %0 {offsets = [0, 0], sizes = [16, 16], strides = [1, 1]} : vector<16x32xf32> to vector<16x16xf32>
    %cst = arith.constant dense<0.000000e+00> : vector<16xf32>
    %2 = vector.multi_reduction <add>, %1, %cst [1] : vector<16x16xf32> to vector<16xf32>
    %3 = vector.shape_cast %2 : vector<16xf32> to vector<16x1xf32>
    %cst_1 = arith.constant 1.600000e+01 : f32
    %4 = vector.broadcast %cst_1 : f32 to vector<16x1xf32>
    %5 = arith.divf %3, %4 : vector<16x1xf32>
    %6 = vector.broadcast %5 : vector<16x1xf32> to vector<16x16xf32>
    %7 = arith.subf %1, %6 : vector<16x16xf32>
    %8 = arith.mulf %7, %7 : vector<16x16xf32>
    %cst_2 = arith.constant dense<0.000000e+00> : vector<16xf32>
    %9 = vector.multi_reduction <add>, %8, %cst_2 [1] : vector<16x16xf32> to vector<16xf32>
    %10 = vector.shape_cast %9 : vector<16xf32> to vector<16x1xf32>
    %cst_3 = arith.constant 1.500000e+01 : f32
    %11 = vector.broadcast %cst_3 : f32 to vector<16x1xf32>
    %12 = arith.divf %10, %11 : vector<16x1xf32>
    %13 = math.sqrt %12 : vector<16x1xf32>
    %14 = tpu.reciprocal %13 {approx = true} : vector<16x1xf32> -> vector<16x1xf32>
    %15 = vector.broadcast %14 : vector<16x1xf32> to vector<16x16xf32>
    %16 = arith.mulf %1, %15 : vector<16x16xf32>
    %17 = vector.extract_strided_slice %0 {offsets = [0, 16], sizes = [16, 16], strides = [1, 1]} : vector<16x32xf32> to vector<16x16xf32>
    %cst_4 = arith.constant dense<0.000000e+00> : vector<16xf32>
    %18 = vector.multi_reduction <add>, %17, %cst_4 [1] : vector<16x16xf32> to vector<16xf32>
    %19 = vector.shape_cast %18 : vector<16xf32> to vector<16x1xf32>
    %cst_5 = arith.constant 1.600000e+01 : f32
    %20 = vector.broadcast %cst_5 : f32 to vector<16x1xf32>
    %21 = arith.divf %19, %20 : vector<16x1xf32>
    %22 = vector.broadcast %21 : vector<16x1xf32> to vector<16x16xf32>
    %23 = arith.subf %17, %22 : vector<16x16xf32>
    %24 = arith.mulf %23, %23 : vector<16x16xf32>
    %cst_6 = arith.constant dense<0.000000e+00> : vector<16xf32>
    %25 = vector.multi_reduction <add>, %24, %cst_6 [1] : vector<16x16xf32> to vector<16xf32>
    %26 = vector.shape_cast %25 : vector<16xf32> to vector<16x1xf32>
    %cst_7 = arith.constant 1.500000e+01 : f32
    %27 = vector.broadcast %cst_7 : f32 to vector<16x1xf32>
    %28 = arith.divf %26, %27 : vector<16x1xf32>
    %29 = math.sqrt %28 : vector<16x1xf32>
    %30 = tpu.reciprocal %29 {approx = true} : vector<16x1xf32> -> vector<16x1xf32>
    %31 = vector.broadcast %30 : vector<16x1xf32> to vector<16x16xf32>
    %32 = arith.mulf %17, %31 : vector<16x16xf32>
    %33 = tpu.concatenate %16, %32 in 1 : vector<16x16xf32>, vector<16x16xf32> -> vector<16x32xf32>
    %c0_8 = arith.constant 0 : index
    %c0_9 = arith.constant 0 : index
    %34 = vector.load %arg3[%c0_8, %c0_9] : memref<8x32xf32, #tpu.memory_space<vmem>>, vector<8x32xf32>
    %35 = tpu.concatenate %34, %34 in 0 : vector<8x32xf32>, vector<8x32xf32> -> vector<16x32xf32>
    %c0_10 = arith.constant 0 : index
    %c0_11 = arith.constant 0 : index
    %36 = vector.load %arg1[%c0_10, %c0_11] : memref<32x32xf32, #tpu.memory_space<vmem>>, vector<32x32xf32>
    %37 = arith.truncf %33 : vector<16x32xf32> to vector<16x32xbf16>
    %38 = arith.truncf %36 : vector<32x32xf32> to vector<32x32xbf16>
    %cst_12 = arith.constant dense<0.000000e+00> : vector<16x32xf32>
    %39 = tpu.matmul %37, %38, %cst_12 {dimension_numbers = #tpu.dot_dimension_numbers<[1], [0], [0], [1], [0, 0, 1, 1], [], []>} : vector<16x32xbf16>, vector<32x32xbf16>, vector<16x32xf32> -> vector<16x32xf32>
    %c0_13 = arith.constant 0 : index
    %c0_14 = arith.constant 0 : index
    %40 = vector.load %arg2[%c0_13, %c0_14] : memref<1x32xf32, #tpu.memory_space<vmem>>, vector<1x32xf32>
    %41 = vector.broadcast %40 : vector<1x32xf32> to vector<16x32xf32>
    %42 = arith.addf %39, %41 : vector<16x32xf32>
    %43 = arith.addf %42, %35 : vector<16x32xf32>
    %c0_15 = arith.constant 0 : index
    %c0_16 = arith.constant 0 : index
    %44 = vector.load %arg4[%c0_15, %c0_16] : memref<1x32xf32, #tpu.memory_space<vmem>>, vector<1x32xf32>
    %c0_17 = arith.constant 0 : index
    %c0_18 = arith.constant 0 : index
    %45 = vector.load %arg5[%c0_17, %c0_18] : memref<1x32xf32, #tpu.memory_space<vmem>>, vector<1x32xf32>
    %cst_19 = arith.constant dense<0.000000e+00> : vector<16xf32>
    %46 = vector.multi_reduction <add>, %43, %cst_19 [1] : vector<16x32xf32> to vector<16xf32>
    %47 = vector.shape_cast %46 : vector<16xf32> to vector<16x1xf32>
    %cst_20 = arith.constant 3.200000e+01 : f32
    %48 = vector.broadcast %cst_20 : f32 to vector<16x1xf32>
    %49 = arith.divf %47, %48 : vector<16x1xf32>
    %50 = vector.broadcast %49 : vector<16x1xf32> to vector<16x32xf32>
    %51 = arith.subf %43, %50 : vector<16x32xf32>
    %52 = arith.mulf %51, %51 : vector<16x32xf32>
    %cst_21 = arith.constant dense<0.000000e+00> : vector<16xf32>
    %53 = vector.multi_reduction <add>, %52, %cst_21 [1] : vector<16x32xf32> to vector<16xf32>
    %54 = vector.shape_cast %53 : vector<16xf32> to vector<16x1xf32>
    %cst_22 = arith.constant 3.200000e+01 : f32
    %55 = vector.broadcast %cst_22 : f32 to vector<16x1xf32>
    %56 = arith.divf %54, %55 : vector<16x1xf32>
    %cst_23 = arith.constant 9.99999974E-6 : f32
    %57 = vector.broadcast %cst_23 : f32 to vector<16x1xf32>
    %58 = arith.addf %56, %57 : vector<16x1xf32>
    %59 = math.rsqrt %58 : vector<16x1xf32>
    %60 = vector.broadcast %59 : vector<16x1xf32> to vector<16x32xf32>
    %61 = arith.mulf %51, %60 : vector<16x32xf32>
    %62 = vector.broadcast %44 : vector<1x32xf32> to vector<16x32xf32>
    %63 = arith.mulf %61, %62 : vector<16x32xf32>
    %64 = vector.broadcast %45 : vector<1x32xf32> to vector<16x32xf32>
    %65 = arith.addf %63, %64 : vector<16x32xf32>
    %cst_24 = arith.constant -1.000000e+01 : f32
    %cst_25 = arith.constant 1.000000e+01 : f32
    %66 = vector.broadcast %cst_24 : f32 to vector<16x32xf32>
    %67 = arith.maximumf %66, %65 : vector<16x32xf32>
    %68 = vector.broadcast %cst_25 : f32 to vector<16x32xf32>
    %69 = arith.minimumf %68, %67 : vector<16x32xf32>
    %70 = arith.mulf %51, %51 : vector<16x32xf32>
    %cst_26 = arith.constant dense<0.000000e+00> : vector<16xf32>
    %71 = vector.multi_reduction <add>, %70, %cst_26 [1] : vector<16x32xf32> to vector<16xf32>
    %72 = vector.shape_cast %71 : vector<16xf32> to vector<16x1xf32>
    %cst_27 = arith.constant 3.100000e+01 : f32
    %73 = vector.broadcast %cst_27 : f32 to vector<16x1xf32>
    %74 = arith.divf %72, %73 : vector<16x1xf32>
    %cst_28 = arith.constant 9.99999974E-6 : f32
    %75 = vector.broadcast %cst_28 : f32 to vector<16x1xf32>
    %76 = arith.cmpf olt, %74, %75 : vector<16x1xf32>
    %cst_29 = arith.constant 1.000000e+00 : f32
    %cst_30 = arith.constant 0.000000e+00 : f32
    %77 = vector.broadcast %cst_29 : f32 to vector<16x1xf32>
    %78 = vector.broadcast %cst_30 : f32 to vector<16x1xf32>
    %79 = arith.select %76, %77, %78 : vector<16x1xi1>, vector<16x1xf32>
    %80 = vector.shape_cast %79 : vector<16x1xf32> to vector<1x16x1xf32>
    %cst_31 = arith.constant dense<0xFF800000> : vector<1xf32>
    %81 = vector.multi_reduction <maximumf>, %80, %cst_31 [1, 2] : vector<1x16x1xf32> to vector<1xf32>
    %82 = vector.shape_cast %81 : vector<1xf32> to vector<1x1x1xf32>
    %83 = vector.extract %82[0, 0, 0] : f32 from vector<1x1x1xf32>
    %cst_32 = arith.constant 9.99999974E-6 : f32
    %84 = arith.mulf %83, %cst_32 : f32
    %85 = vector.broadcast %84 : f32 to vector<16x32xf32>
    %86 = arith.addf %69, %85 : vector<16x32xf32>
    %cst_33 = arith.constant dense<0.000000e+00> : vector<16xf32>
    %87 = vector.multi_reduction <add>, %86, %cst_33 [1] : vector<16x32xf32> to vector<16xf32>
    %88 = vector.shape_cast %87 : vector<16xf32> to vector<16x1xf32>
    %cst_34 = arith.constant 3.200000e+01 : f32
    %89 = vector.broadcast %cst_34 : f32 to vector<16x1xf32>
    %90 = arith.divf %88, %89 : vector<16x1xf32>
    %91 = vector.broadcast %90 : vector<16x1xf32> to vector<16x32xf32>
    %92 = arith.subf %86, %91 : vector<16x32xf32>
    %93 = arith.mulf %92, %92 : vector<16x32xf32>
    %cst_35 = arith.constant dense<0.000000e+00> : vector<16xf32>
    %94 = vector.multi_reduction <add>, %93, %cst_35 [1] : vector<16x32xf32> to vector<16xf32>
    %95 = vector.shape_cast %94 : vector<16xf32> to vector<16x1xf32>
    %cst_36 = arith.constant 3.100000e+01 : f32
    %96 = vector.broadcast %cst_36 : f32 to vector<16x1xf32>
    %97 = arith.divf %95, %96 : vector<16x1xf32>
    %98 = math.sqrt %97 : vector<16x1xf32>
    %cst_37 = arith.constant 9.99999974E-6 : f32
    %99 = vector.broadcast %cst_37 : f32 to vector<16x1xf32>
    %100 = arith.addf %98, %99 : vector<16x1xf32>
    %101 = tpu.reciprocal %100 {approx = true} : vector<16x1xf32> -> vector<16x1xf32>
    %102 = vector.broadcast %101 : vector<16x1xf32> to vector<16x32xf32>
    %103 = arith.mulf %86, %102 : vector<16x32xf32>
    %cst_38 = arith.constant 5.000000e-01 : f32
    %104 = vector.broadcast %cst_38 : f32 to vector<16x32xf32>
    %105 = arith.mulf %103, %104 : vector<16x32xf32>
    %c0_39 = arith.constant 0 : index
    %c0_40 = arith.constant 0 : index
    %106 = vector.load %arg6[%c0_39, %c0_40] : memref<32x32xf32, #tpu.memory_space<vmem>>, vector<32x32xf32>
    %107 = arith.truncf %105 : vector<16x32xf32> to vector<16x32xbf16>
    %108 = arith.truncf %106 : vector<32x32xf32> to vector<32x32xbf16>
    %cst_41 = arith.constant dense<0.000000e+00> : vector<16x32xf32>
    %109 = tpu.matmul %107, %108, %cst_41 {dimension_numbers = #tpu.dot_dimension_numbers<[1], [0], [0], [1], [0, 0, 1, 1], [], []>} : vector<16x32xbf16>, vector<32x32xbf16>, vector<16x32xf32> -> vector<16x32xf32>
    %c0_42 = arith.constant 0 : index
    %c0_43 = arith.constant 0 : index
    %110 = vector.load %arg7[%c0_42, %c0_43] : memref<1x32xf32, #tpu.memory_space<vmem>>, vector<1x32xf32>
    %111 = vector.broadcast %110 : vector<1x32xf32> to vector<16x32xf32>
    %112 = arith.addf %109, %111 : vector<16x32xf32>
    %c0_44 = arith.constant 0 : index
    %c0_45 = arith.constant 0 : index
    %113 = vector.load %arg8[%c0_44, %c0_45] : memref<32x32xf32, #tpu.memory_space<vmem>>, vector<32x32xf32>
    %114 = arith.truncf %105 : vector<16x32xf32> to vector<16x32xbf16>
    %115 = arith.truncf %113 : vector<32x32xf32> to vector<32x32xbf16>
    %cst_46 = arith.constant dense<0.000000e+00> : vector<16x32xf32>
    %116 = tpu.matmul %114, %115, %cst_46 {dimension_numbers = #tpu.dot_dimension_numbers<[1], [0], [0], [1], [0, 0, 1, 1], [], []>} : vector<16x32xbf16>, vector<32x32xbf16>, vector<16x32xf32> -> vector<16x32xf32>
    %c0_47 = arith.constant 0 : index
    %c0_48 = arith.constant 0 : index
    %117 = vector.load %arg9[%c0_47, %c0_48] : memref<1x32xf32, #tpu.memory_space<vmem>>, vector<1x32xf32>
    %118 = vector.broadcast %117 : vector<1x32xf32> to vector<16x32xf32>
    %119 = arith.addf %116, %118 : vector<16x32xf32>
    %c0_49 = arith.constant 0 : index
    %c0_50 = arith.constant 0 : index
    %120 = vector.load %arg10[%c0_49, %c0_50] : memref<32x32xf32, #tpu.memory_space<vmem>>, vector<32x32xf32>
    %121 = arith.truncf %105 : vector<16x32xf32> to vector<16x32xbf16>
    %122 = arith.truncf %120 : vector<32x32xf32> to vector<32x32xbf16>
    %cst_51 = arith.constant dense<0.000000e+00> : vector<16x32xf32>
    %123 = tpu.matmul %121, %122, %cst_51 {dimension_numbers = #tpu.dot_dimension_numbers<[1], [0], [0], [1], [0, 0, 1, 1], [], []>} : vector<16x32xbf16>, vector<32x32xbf16>, vector<16x32xf32> -> vector<16x32xf32>
    %c0_52 = arith.constant 0 : index
    %c0_53 = arith.constant 0 : index
    %124 = vector.load %arg11[%c0_52, %c0_53] : memref<1x32xf32, #tpu.memory_space<vmem>>, vector<1x32xf32>
    %125 = vector.broadcast %124 : vector<1x32xf32> to vector<16x32xf32>
    %126 = arith.addf %123, %125 : vector<16x32xf32>
    %c0_54 = arith.constant 0 : index
    %c0_55 = arith.constant 0 : index
    %127 = vector.load %arg12[%c0_54, %c0_55] : memref<32x32xf32, #tpu.memory_space<vmem>>, vector<32x32xf32>
    %128 = vector.extract_strided_slice %112 {offsets = [0, 0], sizes = [16, 8], strides = [1, 1]} : vector<16x32xf32> to vector<16x8xf32>
    %129 = vector.shape_cast %128 : vector<16x8xf32> to vector<2x8x8xf32>
    %130 = vector.extract_strided_slice %119 {offsets = [0, 0], sizes = [16, 8], strides = [1, 1]} : vector<16x32xf32> to vector<16x8xf32>
    %131 = vector.shape_cast %130 : vector<16x8xf32> to vector<2x8x8xf32>
    %132 = vector.extract_strided_slice %126 {offsets = [0, 0], sizes = [16, 8], strides = [1, 1]} : vector<16x32xf32> to vector<16x8xf32>
    %133 = vector.shape_cast %132 : vector<16x8xf32> to vector<2x8x8xf32>
    %134 = arith.truncf %129 : vector<2x8x8xf32> to vector<2x8x8xbf16>
    %135 = arith.truncf %131 : vector<2x8x8xf32> to vector<2x8x8xbf16>
    "tpu.trace_start"() <{level = 10 : i32, message = "bqd,bkd->bqk"}> : () -> ()
    %cst_56 = arith.constant dense<0.000000e+00> : vector<2x8x8xf32>
    %136 = tpu.matmul %134, %135, %cst_56 {dimension_numbers = #tpu.dot_dimension_numbers<[2], [2], [1], [1], [0, 0, 0, 1, 1, 1], [0], [0]>} : vector<2x8x8xbf16>, vector<2x8x8xbf16>, vector<2x8x8xf32> -> vector<2x8x8xf32>
    "tpu.trace_stop"() : () -> ()
    %cst_57 = arith.constant dense<0xFF800000> : vector<2x8xf32>
    %137 = vector.multi_reduction <maximumf>, %136, %cst_57 [2] : vector<2x8x8xf32> to vector<2x8xf32>
    %138 = vector.shape_cast %137 : vector<2x8xf32> to vector<2x8x1xf32>
    %139 = vector.broadcast %138 : vector<2x8x1xf32> to vector<2x8x8xf32>
    %140 = arith.subf %136, %139 : vector<2x8x8xf32>
    %141 = math.exp %140 : vector<2x8x8xf32>
    %cst_58 = arith.constant dense<0.000000e+00> : vector<2x8xf32>
    %142 = vector.multi_reduction <add>, %141, %cst_58 [2] : vector<2x8x8xf32> to vector<2x8xf32>
    %143 = vector.shape_cast %142 : vector<2x8xf32> to vector<2x8x1xf32>
    %144 = tpu.reciprocal %143 {approx = true} : vector<2x8x1xf32> -> vector<2x8x1xf32>
    %145 = vector.broadcast %144 : vector<2x8x1xf32> to vector<2x8x8xf32>
    %146 = arith.mulf %141, %145 : vector<2x8x8xf32>
    %147 = arith.truncf %146 : vector<2x8x8xf32> to vector<2x8x8xbf16>
    %148 = arith.truncf %133 : vector<2x8x8xf32> to vector<2x8x8xbf16>
    "tpu.trace_start"() <{level = 10 : i32, message = "bqk,bkd->bqd"}> : () -> ()
    %cst_59 = arith.constant dense<0.000000e+00> : vector<2x8x8xf32>
    %149 = tpu.matmul %147, %148, %cst_59 {dimension_numbers = #tpu.dot_dimension_numbers<[2], [1], [1], [2], [0, 0, 0, 1, 1, 2], [0], [0]>} : vector<2x8x8xbf16>, vector<2x8x8xbf16>, vector<2x8x8xf32> -> vector<2x8x8xf32>
    "tpu.trace_stop"() : () -> ()
    %150 = vector.shape_cast %149 : vector<2x8x8xf32> to vector<16x8xf32>
    %151 = vector.extract_strided_slice %127 {offsets = [0, 0], sizes = [8, 32], strides = [1, 1]} : vector<32x32xf32> to vector<8x32xf32>
    %152 = arith.truncf %150 : vector<16x8xf32> to vector<16x8xbf16>
    %153 = arith.truncf %151 : vector<8x32xf32> to vector<8x32xbf16>
    %cst_60 = arith.constant dense<0.000000e+00> : vector<16x32xf32>
    %154 = tpu.matmul %152, %153, %cst_60 {dimension_numbers = #tpu.dot_dimension_numbers<[1], [0], [0], [1], [0, 0, 1, 1], [], []>} : vector<16x8xbf16>, vector<8x32xbf16>, vector<16x32xf32> -> vector<16x32xf32>
    %155 = vector.extract_strided_slice %112 {offsets = [0, 8], sizes = [16, 8], strides = [1, 1]} : vector<16x32xf32> to vector<16x8xf32>
    %156 = vector.shape_cast %155 : vector<16x8xf32> to vector<2x8x8xf32>
    %157 = vector.extract_strided_slice %119 {offsets = [0, 8], sizes = [16, 8], strides = [1, 1]} : vector<16x32xf32> to vector<16x8xf32>
    %158 = vector.shape_cast %157 : vector<16x8xf32> to vector<2x8x8xf32>
    %159 = vector.extract_strided_slice %126 {offsets = [0, 8], sizes = [16, 8], strides = [1, 1]} : vector<16x32xf32> to vector<16x8xf32>
    %160 = vector.shape_cast %159 : vector<16x8xf32> to vector<2x8x8xf32>
    %161 = arith.truncf %156 : vector<2x8x8xf32> to vector<2x8x8xbf16>
    %162 = arith.truncf %158 : vector<2x8x8xf32> to vector<2x8x8xbf16>
    "tpu.trace_start"() <{level = 10 : i32, message = "bqd,bkd->bqk"}> : () -> ()
    %cst_61 = arith.constant dense<0.000000e+00> : vector<2x8x8xf32>
    %163 = tpu.matmul %161, %162, %cst_61 {dimension_numbers = #tpu.dot_dimension_numbers<[2], [2], [1], [1], [0, 0, 0, 1, 1, 1], [0], [0]>} : vector<2x8x8xbf16>, vector<2x8x8xbf16>, vector<2x8x8xf32> -> vector<2x8x8xf32>
    "tpu.trace_stop"() : () -> ()
    %cst_62 = arith.constant dense<0xFF800000> : vector<2x8xf32>
    %164 = vector.multi_reduction <maximumf>, %163, %cst_62 [2] : vector<2x8x8xf32> to vector<2x8xf32>
    %165 = vector.shape_cast %164 : vector<2x8xf32> to vector<2x8x1xf32>
    %166 = vector.broadcast %165 : vector<2x8x1xf32> to vector<2x8x8xf32>
    %167 = arith.subf %163, %166 : vector<2x8x8xf32>
    %168 = math.exp %167 : vector<2x8x8xf32>
    %cst_63 = arith.constant dense<0.000000e+00> : vector<2x8xf32>
    %169 = vector.multi_reduction <add>, %168, %cst_63 [2] : vector<2x8x8xf32> to vector<2x8xf32>
    %170 = vector.shape_cast %169 : vector<2x8xf32> to vector<2x8x1xf32>
    %171 = tpu.reciprocal %170 {approx = true} : vector<2x8x1xf32> -> vector<2x8x1xf32>
    %172 = vector.broadcast %171 : vector<2x8x1xf32> to vector<2x8x8xf32>
    %173 = arith.mulf %168, %172 : vector<2x8x8xf32>
    %174 = arith.truncf %173 : vector<2x8x8xf32> to vector<2x8x8xbf16>
    %175 = arith.truncf %160 : vector<2x8x8xf32> to vector<2x8x8xbf16>
    "tpu.trace_start"() <{level = 10 : i32, message = "bqk,bkd->bqd"}> : () -> ()
    %cst_64 = arith.constant dense<0.000000e+00> : vector<2x8x8xf32>
    %176 = tpu.matmul %174, %175, %cst_64 {dimension_numbers = #tpu.dot_dimension_numbers<[2], [1], [1], [2], [0, 0, 0, 1, 1, 2], [0], [0]>} : vector<2x8x8xbf16>, vector<2x8x8xbf16>, vector<2x8x8xf32> -> vector<2x8x8xf32>
    "tpu.trace_stop"() : () -> ()
    %177 = vector.shape_cast %176 : vector<2x8x8xf32> to vector<16x8xf32>
    %178 = vector.extract_strided_slice %127 {offsets = [8, 0], sizes = [8, 32], strides = [1, 1]} : vector<32x32xf32> to vector<8x32xf32>
    %179 = arith.truncf %177 : vector<16x8xf32> to vector<16x8xbf16>
    %180 = arith.truncf %178 : vector<8x32xf32> to vector<8x32xbf16>
    %cst_65 = arith.constant dense<0.000000e+00> : vector<16x32xf32>
    %181 = tpu.matmul %179, %180, %cst_65 {dimension_numbers = #tpu.dot_dimension_numbers<[1], [0], [0], [1], [0, 0, 1, 1], [], []>} : vector<16x8xbf16>, vector<8x32xbf16>, vector<16x32xf32> -> vector<16x32xf32>
    %182 = vector.extract_strided_slice %112 {offsets = [0, 16], sizes = [16, 8], strides = [1, 1]} : vector<16x32xf32> to vector<16x8xf32>
    %183 = vector.shape_cast %182 : vector<16x8xf32> to vector<2x8x8xf32>
    %184 = vector.extract_strided_slice %119 {offsets = [0, 16], sizes = [16, 8], strides = [1, 1]} : vector<16x32xf32> to vector<16x8xf32>
    %185 = vector.shape_cast %184 : vector<16x8xf32> to vector<2x8x8xf32>
    %186 = vector.extract_strided_slice %126 {offsets = [0, 16], sizes = [16, 8], strides = [1, 1]} : vector<16x32xf32> to vector<16x8xf32>
    %187 = vector.shape_cast %186 : vector<16x8xf32> to vector<2x8x8xf32>
    %188 = arith.truncf %183 : vector<2x8x8xf32> to vector<2x8x8xbf16>
    %189 = arith.truncf %185 : vector<2x8x8xf32> to vector<2x8x8xbf16>
    "tpu.trace_start"() <{level = 10 : i32, message = "bqd,bkd->bqk"}> : () -> ()
    %cst_66 = arith.constant dense<0.000000e+00> : vector<2x8x8xf32>
    %190 = tpu.matmul %188, %189, %cst_66 {dimension_numbers = #tpu.dot_dimension_numbers<[2], [2], [1], [1], [0, 0, 0, 1, 1, 1], [0], [0]>} : vector<2x8x8xbf16>, vector<2x8x8xbf16>, vector<2x8x8xf32> -> vector<2x8x8xf32>
    "tpu.trace_stop"() : () -> ()
    %cst_67 = arith.constant dense<0xFF800000> : vector<2x8xf32>
    %191 = vector.multi_reduction <maximumf>, %190, %cst_67 [2] : vector<2x8x8xf32> to vector<2x8xf32>
    %192 = vector.shape_cast %191 : vector<2x8xf32> to vector<2x8x1xf32>
    %193 = vector.broadcast %192 : vector<2x8x1xf32> to vector<2x8x8xf32>
    %194 = arith.subf %190, %193 : vector<2x8x8xf32>
    %195 = math.exp %194 : vector<2x8x8xf32>
    %cst_68 = arith.constant dense<0.000000e+00> : vector<2x8xf32>
    %196 = vector.multi_reduction <add>, %195, %cst_68 [2] : vector<2x8x8xf32> to vector<2x8xf32>
    %197 = vector.shape_cast %196 : vector<2x8xf32> to vector<2x8x1xf32>
    %198 = tpu.reciprocal %197 {approx = true} : vector<2x8x1xf32> -> vector<2x8x1xf32>
    %199 = vector.broadcast %198 : vector<2x8x1xf32> to vector<2x8x8xf32>
    %200 = arith.mulf %195, %199 : vector<2x8x8xf32>
    %201 = arith.truncf %200 : vector<2x8x8xf32> to vector<2x8x8xbf16>
    %202 = arith.truncf %187 : vector<2x8x8xf32> to vector<2x8x8xbf16>
    "tpu.trace_start"() <{level = 10 : i32, message = "bqk,bkd->bqd"}> : () -> ()
    %cst_69 = arith.constant dense<0.000000e+00> : vector<2x8x8xf32>
    %203 = tpu.matmul %201, %202, %cst_69 {dimension_numbers = #tpu.dot_dimension_numbers<[2], [1], [1], [2], [0, 0, 0, 1, 1, 2], [0], [0]>} : vector<2x8x8xbf16>, vector<2x8x8xbf16>, vector<2x8x8xf32> -> vector<2x8x8xf32>
    "tpu.trace_stop"() : () -> ()
    %204 = vector.shape_cast %203 : vector<2x8x8xf32> to vector<16x8xf32>
    %205 = vector.extract_strided_slice %127 {offsets = [16, 0], sizes = [8, 32], strides = [1, 1]} : vector<32x32xf32> to vector<8x32xf32>
    %206 = arith.truncf %204 : vector<16x8xf32> to vector<16x8xbf16>
    %207 = arith.truncf %205 : vector<8x32xf32> to vector<8x32xbf16>
    %cst_70 = arith.constant dense<0.000000e+00> : vector<16x32xf32>
    %208 = tpu.matmul %206, %207, %cst_70 {dimension_numbers = #tpu.dot_dimension_numbers<[1], [0], [0], [1], [0, 0, 1, 1], [], []>} : vector<16x8xbf16>, vector<8x32xbf16>, vector<16x32xf32> -> vector<16x32xf32>
    %209 = vector.extract_strided_slice %112 {offsets = [0, 24], sizes = [16, 8], strides = [1, 1]} : vector<16x32xf32> to vector<16x8xf32>
    %210 = vector.shape_cast %209 : vector<16x8xf32> to vector<2x8x8xf32>
    %211 = vector.extract_strided_slice %119 {offsets = [0, 24], sizes = [16, 8], strides = [1, 1]} : vector<16x32xf32> to vector<16x8xf32>
    %212 = vector.shape_cast %211 : vector<16x8xf32> to vector<2x8x8xf32>
    %213 = vector.extract_strided_slice %126 {offsets = [0, 24], sizes = [16, 8], strides = [1, 1]} : vector<16x32xf32> to vector<16x8xf32>
    %214 = vector.shape_cast %213 : vector<16x8xf32> to vector<2x8x8xf32>
    %215 = arith.truncf %210 : vector<2x8x8xf32> to vector<2x8x8xbf16>
    %216 = arith.truncf %212 : vector<2x8x8xf32> to vector<2x8x8xbf16>
    "tpu.trace_start"() <{level = 10 : i32, message = "bqd,bkd->bqk"}> : () -> ()
    %cst_71 = arith.constant dense<0.000000e+00> : vector<2x8x8xf32>
    %217 = tpu.matmul %215, %216, %cst_71 {dimension_numbers = #tpu.dot_dimension_numbers<[2], [2], [1], [1], [0, 0, 0, 1, 1, 1], [0], [0]>} : vector<2x8x8xbf16>, vector<2x8x8xbf16>, vector<2x8x8xf32> -> vector<2x8x8xf32>
    "tpu.trace_stop"() : () -> ()
    %cst_72 = arith.constant dense<0xFF800000> : vector<2x8xf32>
    %218 = vector.multi_reduction <maximumf>, %217, %cst_72 [2] : vector<2x8x8xf32> to vector<2x8xf32>
    %219 = vector.shape_cast %218 : vector<2x8xf32> to vector<2x8x1xf32>
    %220 = vector.broadcast %219 : vector<2x8x1xf32> to vector<2x8x8xf32>
    %221 = arith.subf %217, %220 : vector<2x8x8xf32>
    %222 = math.exp %221 : vector<2x8x8xf32>
    %cst_73 = arith.constant dense<0.000000e+00> : vector<2x8xf32>
    %223 = vector.multi_reduction <add>, %222, %cst_73 [2] : vector<2x8x8xf32> to vector<2x8xf32>
    %224 = vector.shape_cast %223 : vector<2x8xf32> to vector<2x8x1xf32>
    %225 = tpu.reciprocal %224 {approx = true} : vector<2x8x1xf32> -> vector<2x8x1xf32>
    %226 = vector.broadcast %225 : vector<2x8x1xf32> to vector<2x8x8xf32>
    %227 = arith.mulf %222, %226 : vector<2x8x8xf32>
    %228 = arith.truncf %227 : vector<2x8x8xf32> to vector<2x8x8xbf16>
    %229 = arith.truncf %214 : vector<2x8x8xf32> to vector<2x8x8xbf16>
    "tpu.trace_start"() <{level = 10 : i32, message = "bqk,bkd->bqd"}> : () -> ()
    %cst_74 = arith.constant dense<0.000000e+00> : vector<2x8x8xf32>
    %230 = tpu.matmul %228, %229, %cst_74 {dimension_numbers = #tpu.dot_dimension_numbers<[2], [1], [1], [2], [0, 0, 0, 1, 1, 2], [0], [0]>} : vector<2x8x8xbf16>, vector<2x8x8xbf16>, vector<2x8x8xf32> -> vector<2x8x8xf32>
    "tpu.trace_stop"() : () -> ()
    %231 = vector.shape_cast %230 : vector<2x8x8xf32> to vector<16x8xf32>
    %232 = vector.extract_strided_slice %127 {offsets = [24, 0], sizes = [8, 32], strides = [1, 1]} : vector<32x32xf32> to vector<8x32xf32>
    %233 = arith.truncf %231 : vector<16x8xf32> to vector<16x8xbf16>
    %234 = arith.truncf %232 : vector<8x32xf32> to vector<8x32xbf16>
    %cst_75 = arith.constant dense<0.000000e+00> : vector<16x32xf32>
    %235 = tpu.matmul %233, %234, %cst_75 {dimension_numbers = #tpu.dot_dimension_numbers<[1], [0], [0], [1], [0, 0, 1, 1], [], []>} : vector<16x8xbf16>, vector<8x32xbf16>, vector<16x32xf32> -> vector<16x32xf32>
    %236 = arith.addf %154, %181 : vector<16x32xf32>
    %237 = arith.addf %236, %208 : vector<16x32xf32>
    %238 = arith.addf %237, %235 : vector<16x32xf32>
    %c0_76 = arith.constant 0 : index
    %c0_77 = arith.constant 0 : index
    %239 = vector.load %arg13[%c0_76, %c0_77] : memref<1x32xf32, #tpu.memory_space<vmem>>, vector<1x32xf32>
    %240 = vector.broadcast %239 : vector<1x32xf32> to vector<16x32xf32>
    %241 = arith.addf %238, %240 : vector<16x32xf32>
    %242 = arith.addf %43, %241 : vector<16x32xf32>
    %c0_78 = arith.constant 0 : index
    %c0_79 = arith.constant 0 : index
    %243 = vector.load %arg14[%c0_78, %c0_79] : memref<1x32xf32, #tpu.memory_space<vmem>>, vector<1x32xf32>
    %c0_80 = arith.constant 0 : index
    %c0_81 = arith.constant 0 : index
    %244 = vector.load %arg15[%c0_80, %c0_81] : memref<1x32xf32, #tpu.memory_space<vmem>>, vector<1x32xf32>
    %cst_82 = arith.constant dense<0.000000e+00> : vector<16xf32>
    %245 = vector.multi_reduction <add>, %242, %cst_82 [1] : vector<16x32xf32> to vector<16xf32>
    %246 = vector.shape_cast %245 : vector<16xf32> to vector<16x1xf32>
    %cst_83 = arith.constant 3.200000e+01 : f32
    %247 = vector.broadcast %cst_83 : f32 to vector<16x1xf32>
    %248 = arith.divf %246, %247 : vector<16x1xf32>
    %249 = vector.broadcast %248 : vector<16x1xf32> to vector<16x32xf32>
    %250 = arith.subf %242, %249 : vector<16x32xf32>
    %251 = arith.mulf %250, %250 : vector<16x32xf32>
    %cst_84 = arith.constant dense<0.000000e+00> : vector<16xf32>
    %252 = vector.multi_reduction <add>, %251, %cst_84 [1] : vector<16x32xf32> to vector<16xf32>
    %253 = vector.shape_cast %252 : vector<16xf32> to vector<16x1xf32>
    %cst_85 = arith.constant 3.200000e+01 : f32
    %254 = vector.broadcast %cst_85 : f32 to vector<16x1xf32>
    %255 = arith.divf %253, %254 : vector<16x1xf32>
    %cst_86 = arith.constant 9.99999974E-6 : f32
    %256 = vector.broadcast %cst_86 : f32 to vector<16x1xf32>
    %257 = arith.addf %255, %256 : vector<16x1xf32>
    %258 = math.rsqrt %257 : vector<16x1xf32>
    %259 = vector.broadcast %258 : vector<16x1xf32> to vector<16x32xf32>
    %260 = arith.mulf %250, %259 : vector<16x32xf32>
    %261 = vector.broadcast %243 : vector<1x32xf32> to vector<16x32xf32>
    %262 = arith.mulf %260, %261 : vector<16x32xf32>
    %263 = vector.broadcast %244 : vector<1x32xf32> to vector<16x32xf32>
    %264 = arith.addf %262, %263 : vector<16x32xf32>
    %c0_87 = arith.constant 0 : index
    %c0_88 = arith.constant 0 : index
    %265 = vector.load %arg16[%c0_87, %c0_88] : memref<32x128xf32, #tpu.memory_space<vmem>>, vector<32x128xf32>
    %266 = arith.truncf %264 : vector<16x32xf32> to vector<16x32xbf16>
    %267 = arith.truncf %265 : vector<32x128xf32> to vector<32x128xbf16>
    %cst_89 = arith.constant dense<0.000000e+00> : vector<16x128xf32>
    %268 = tpu.matmul %266, %267, %cst_89 {dimension_numbers = #tpu.dot_dimension_numbers<[1], [0], [0], [1], [0, 0, 1, 1], [], []>} : vector<16x32xbf16>, vector<32x128xbf16>, vector<16x128xf32> -> vector<16x128xf32>
    %c0_90 = arith.constant 0 : index
    %c0_91 = arith.constant 0 : index
    %269 = vector.load %arg17[%c0_90, %c0_91] : memref<1x128xf32, #tpu.memory_space<vmem>>, vector<1x128xf32>
    %270 = vector.broadcast %269 : vector<1x128xf32> to vector<16x128xf32>
    %271 = arith.addf %268, %270 : vector<16x128xf32>
    %cst_92 = arith.constant 5.000000e-01 : f32
    %272 = vector.broadcast %cst_92 : f32 to vector<16x128xf32>
    %273 = arith.mulf %272, %271 : vector<16x128xf32>
    %cst_93 = arith.constant 0.707106769 : f32
    %274 = vector.broadcast %cst_93 : f32 to vector<16x128xf32>
    %275 = arith.mulf %271, %274 : vector<16x128xf32>
    %276 = math.erf %275 : vector<16x128xf32>
    %cst_94 = arith.constant 1.000000e+00 : f32
    %277 = vector.broadcast %cst_94 : f32 to vector<16x128xf32>
    %278 = arith.addf %277, %276 : vector<16x128xf32>
    %279 = arith.mulf %273, %278 : vector<16x128xf32>
    %c0_95 = arith.constant 0 : index
    %c0_96 = arith.constant 0 : index
    %280 = vector.load %arg18[%c0_95, %c0_96] : memref<128x32xf32, #tpu.memory_space<vmem>>, vector<128x32xf32>
    %281 = arith.truncf %279 : vector<16x128xf32> to vector<16x128xbf16>
    %282 = arith.truncf %280 : vector<128x32xf32> to vector<128x32xbf16>
    %cst_97 = arith.constant dense<0.000000e+00> : vector<16x32xf32>
    %283 = tpu.matmul %281, %282, %cst_97 {dimension_numbers = #tpu.dot_dimension_numbers<[1], [0], [0], [1], [0, 0, 1, 1], [], []>} : vector<16x128xbf16>, vector<128x32xbf16>, vector<16x32xf32> -> vector<16x32xf32>
    %c0_98 = arith.constant 0 : index
    %c0_99 = arith.constant 0 : index
    %284 = vector.load %arg19[%c0_98, %c0_99] : memref<1x32xf32, #tpu.memory_space<vmem>>, vector<1x32xf32>
    %285 = vector.broadcast %284 : vector<1x32xf32> to vector<16x32xf32>
    %286 = arith.addf %283, %285 : vector<16x32xf32>
    %287 = arith.addf %242, %286 : vector<16x32xf32>
    %cst_100 = arith.constant 0.000000e+00 : f32
    %288 = vector.broadcast %cst_100 : f32 to vector<1x32xf32>
    %289 = vector.extract_strided_slice %287 {offsets = [0, 0], sizes = [15, 32], strides = [1, 1]} : vector<16x32xf32> to vector<15x32xf32>
    %290 = tpu.concatenate %288, %289 in 0 : vector<1x32xf32>, vector<15x32xf32> -> vector<16x32xf32>
    %291 = vector.extract_strided_slice %287 {offsets = [1, 0], sizes = [15, 32], strides = [1, 1]} : vector<16x32xf32> to vector<15x32xf32>
    %292 = tpu.concatenate %291, %288 in 0 : vector<15x32xf32>, vector<1x32xf32> -> vector<16x32xf32>
    %293 = tpu.iota {dimensions = array<i32: 0>} : vector<16x1xi32>
    %c8_i32 = arith.constant 8 : i32
    %c0_i32 = arith.constant 0 : i32
    %294 = arith.cmpi eq, %c8_i32, %c0_i32 : i32
    %c1_i32 = arith.constant 1 : i32
    %295 = arith.select %294, %c1_i32, %c8_i32 : i32
    %296 = vector.broadcast %295 : i32 to vector<16x1xi32>
    %297 = arith.remsi %293, %296 : vector<16x1xi32>
    %c0_i32_101 = arith.constant 0 : i32
    %298 = vector.broadcast %c0_i32_101 : i32 to vector<16x1xi32>
    %299 = arith.cmpi ne, %297, %298 : vector<16x1xi32>
    %c0_i32_102 = arith.constant 0 : i32
    %300 = vector.broadcast %c0_i32_102 : i32 to vector<16x1xi32>
    %301 = arith.cmpi slt, %297, %300 : vector<16x1xi32>
    %c0_i32_103 = arith.constant 0 : i32
    %302 = arith.cmpi slt, %295, %c0_i32_103 : i32
    %303 = vector.broadcast %302 : i1 to vector<16x1xi1>
    %304 = vector.broadcast %303 : vector<16x1xi1> to vector<16x1xi1>
    %305 = arith.xori %301, %304 : vector<16x1xi1>
    %306 = arith.andi %305, %299 : vector<16x1xi1>
    %307 = vector.broadcast %295 : i32 to vector<16x1xi32>
    %308 = arith.addi %297, %307 : vector<16x1xi32>
    %309 = arith.select %306, %308, %297 : vector<16x1xi1>, vector<16x1xi32>
    %c0_i32_104 = arith.constant 0 : i32
    %310 = vector.broadcast %c0_i32_104 : i32 to vector<16x1xi32>
    %311 = arith.cmpi ne, %309, %310 : vector<16x1xi32>
    %312 = arith.extui %311 : vector<16x1xi1> to vector<16x1xi32>
    %313 = arith.sitofp %312 : vector<16x1xi32> to vector<16x1xf32>
    %314 = vector.broadcast %313 : vector<16x1xf32> to vector<16x32xf32>
    %315 = arith.mulf %290, %314 : vector<16x32xf32>
    %c7_i32 = arith.constant 7 : i32
    %316 = vector.broadcast %c7_i32 : i32 to vector<16x1xi32>
    %317 = arith.cmpi ne, %309, %316 : vector<16x1xi32>
    %318 = arith.extui %317 : vector<16x1xi1> to vector<16x1xi32>
    %319 = arith.sitofp %318 : vector<16x1xi32> to vector<16x1xf32>
    %320 = vector.broadcast %319 : vector<16x1xf32> to vector<16x32xf32>
    %321 = arith.mulf %292, %320 : vector<16x32xf32>
    %c0_105 = arith.constant 0 : index
    %c0_106 = arith.constant 0 : index
    %c0_107 = arith.constant 0 : index
    %322 = vector.load %arg36[%c0_105, %c0_106, %c0_107] : memref<3x32x64xf32, #tpu.memory_space<vmem>>, vector<1x32x64xf32>
    %323 = vector.shape_cast %322 : vector<1x32x64xf32> to vector<32x64xf32>
    %324 = arith.truncf %315 : vector<16x32xf32> to vector<16x32xbf16>
    %325 = arith.truncf %323 : vector<32x64xf32> to vector<32x64xbf16>
    %cst_108 = arith.constant dense<0.000000e+00> : vector<16x64xf32>
    %326 = tpu.matmul %324, %325, %cst_108 {dimension_numbers = #tpu.dot_dimension_numbers<[1], [0], [0], [1], [0, 0, 1, 1], [], []>} : vector<16x32xbf16>, vector<32x64xbf16>, vector<16x64xf32> -> vector<16x64xf32>
    %c1 = arith.constant 1 : index
    %c0_109 = arith.constant 0 : index
    %c0_110 = arith.constant 0 : index
    %327 = vector.load %arg36[%c1, %c0_109, %c0_110] : memref<3x32x64xf32, #tpu.memory_space<vmem>>, vector<1x32x64xf32>
    %328 = vector.shape_cast %327 : vector<1x32x64xf32> to vector<32x64xf32>
    %329 = arith.truncf %287 : vector<16x32xf32> to vector<16x32xbf16>
    %330 = arith.truncf %328 : vector<32x64xf32> to vector<32x64xbf16>
    %cst_111 = arith.constant dense<0.000000e+00> : vector<16x64xf32>
    %331 = tpu.matmul %329, %330, %cst_111 {dimension_numbers = #tpu.dot_dimension_numbers<[1], [0], [0], [1], [0, 0, 1, 1], [], []>} : vector<16x32xbf16>, vector<32x64xbf16>, vector<16x64xf32> -> vector<16x64xf32>
    %332 = arith.addf %326, %331 : vector<16x64xf32>
    %c2 = arith.constant 2 : index
    %c0_112 = arith.constant 0 : index
    %c0_113 = arith.constant 0 : index
    %333 = vector.load %arg36[%c2, %c0_112, %c0_113] : memref<3x32x64xf32, #tpu.memory_space<vmem>>, vector<1x32x64xf32>
    %334 = vector.shape_cast %333 : vector<1x32x64xf32> to vector<32x64xf32>
    %335 = arith.truncf %321 : vector<16x32xf32> to vector<16x32xbf16>
    %336 = arith.truncf %334 : vector<32x64xf32> to vector<32x64xbf16>
    %cst_114 = arith.constant dense<0.000000e+00> : vector<16x64xf32>
    %337 = tpu.matmul %335, %336, %cst_114 {dimension_numbers = #tpu.dot_dimension_numbers<[1], [0], [0], [1], [0, 0, 1, 1], [], []>} : vector<16x32xbf16>, vector<32x64xbf16>, vector<16x64xf32> -> vector<16x64xf32>
    %338 = arith.addf %332, %337 : vector<16x64xf32>
    %c0_115 = arith.constant 0 : index
    %c0_116 = arith.constant 0 : index
    %339 = vector.load %arg37[%c0_115, %c0_116] : memref<1x64xf32, #tpu.memory_space<vmem>>, vector<1x64xf32>
    %340 = vector.broadcast %339 : vector<1x64xf32> to vector<16x64xf32>
    %341 = arith.addf %338, %340 : vector<16x64xf32>
    %c0_117 = arith.constant 0 : index
    %c0_118 = arith.constant 0 : index
    %342 = vector.load %arg38[%c0_117, %c0_118] : memref<64x16xf32, #tpu.memory_space<vmem>>, vector<64x16xf32>
    %343 = arith.truncf %341 : vector<16x64xf32> to vector<16x64xbf16>
    %344 = arith.truncf %342 : vector<64x16xf32> to vector<64x16xbf16>
    %cst_119 = arith.constant dense<0.000000e+00> : vector<16x16xf32>
    %345 = tpu.matmul %343, %344, %cst_119 {dimension_numbers = #tpu.dot_dimension_numbers<[1], [0], [0], [1], [0, 0, 1, 1], [], []>} : vector<16x64xbf16>, vector<64x16xbf16>, vector<16x16xf32> -> vector<16x16xf32>
    %c0_120 = arith.constant 0 : index
    %c0_121 = arith.constant 0 : index
    %346 = vector.load %arg39[%c0_120, %c0_121] : memref<1x16xf32, #tpu.memory_space<vmem>>, vector<1x16xf32>
    %347 = vector.broadcast %346 : vector<1x16xf32> to vector<16x16xf32>
    %348 = arith.addf %345, %347 : vector<16x16xf32>
    %c0_122 = arith.constant 0 : index
    %c0_123 = arith.constant 0 : index
    %349 = vector.load %arg20[%c0_122, %c0_123] : memref<1x32xf32, #tpu.memory_space<vmem>>, vector<1x32xf32>
    %c0_124 = arith.constant 0 : index
    %c0_125 = arith.constant 0 : index
    %350 = vector.load %arg21[%c0_124, %c0_125] : memref<1x32xf32, #tpu.memory_space<vmem>>, vector<1x32xf32>
    %cst_126 = arith.constant dense<0.000000e+00> : vector<16xf32>
    %351 = vector.multi_reduction <add>, %287, %cst_126 [1] : vector<16x32xf32> to vector<16xf32>
    %352 = vector.shape_cast %351 : vector<16xf32> to vector<16x1xf32>
    %cst_127 = arith.constant 3.200000e+01 : f32
    %353 = vector.broadcast %cst_127 : f32 to vector<16x1xf32>
    %354 = arith.divf %352, %353 : vector<16x1xf32>
    %355 = vector.broadcast %354 : vector<16x1xf32> to vector<16x32xf32>
    %356 = arith.subf %287, %355 : vector<16x32xf32>
    %357 = arith.mulf %356, %356 : vector<16x32xf32>
    %cst_128 = arith.constant dense<0.000000e+00> : vector<16xf32>
    %358 = vector.multi_reduction <add>, %357, %cst_128 [1] : vector<16x32xf32> to vector<16xf32>
    %359 = vector.shape_cast %358 : vector<16xf32> to vector<16x1xf32>
    %cst_129 = arith.constant 3.200000e+01 : f32
    %360 = vector.broadcast %cst_129 : f32 to vector<16x1xf32>
    %361 = arith.divf %359, %360 : vector<16x1xf32>
    %cst_130 = arith.constant 9.99999974E-6 : f32
    %362 = vector.broadcast %cst_130 : f32 to vector<16x1xf32>
    %363 = arith.addf %361, %362 : vector<16x1xf32>
    %364 = math.rsqrt %363 : vector<16x1xf32>
    %365 = vector.broadcast %364 : vector<16x1xf32> to vector<16x32xf32>
    %366 = arith.mulf %356, %365 : vector<16x32xf32>
    %367 = vector.broadcast %349 : vector<1x32xf32> to vector<16x32xf32>
    %368 = arith.mulf %366, %367 : vector<16x32xf32>
    %369 = vector.broadcast %350 : vector<1x32xf32> to vector<16x32xf32>
    %370 = arith.addf %368, %369 : vector<16x32xf32>
    %cst_131 = arith.constant -1.000000e+01 : f32
    %cst_132 = arith.constant 1.000000e+01 : f32
    %371 = vector.broadcast %cst_131 : f32 to vector<16x32xf32>
    %372 = arith.maximumf %371, %370 : vector<16x32xf32>
    %373 = vector.broadcast %cst_132 : f32 to vector<16x32xf32>
    %374 = arith.minimumf %373, %372 : vector<16x32xf32>
    %375 = arith.mulf %356, %356 : vector<16x32xf32>
    %cst_133 = arith.constant dense<0.000000e+00> : vector<16xf32>
    %376 = vector.multi_reduction <add>, %375, %cst_133 [1] : vector<16x32xf32> to vector<16xf32>
    %377 = vector.shape_cast %376 : vector<16xf32> to vector<16x1xf32>
    %cst_134 = arith.constant 3.100000e+01 : f32
    %378 = vector.broadcast %cst_134 : f32 to vector<16x1xf32>
    %379 = arith.divf %377, %378 : vector<16x1xf32>
    %cst_135 = arith.constant 9.99999974E-6 : f32
    %380 = vector.broadcast %cst_135 : f32 to vector<16x1xf32>
    %381 = arith.cmpf olt, %379, %380 : vector<16x1xf32>
    %cst_136 = arith.constant 1.000000e+00 : f32
    %cst_137 = arith.constant 0.000000e+00 : f32
    %382 = vector.broadcast %cst_136 : f32 to vector<16x1xf32>
    %383 = vector.broadcast %cst_137 : f32 to vector<16x1xf32>
    %384 = arith.select %381, %382, %383 : vector<16x1xi1>, vector<16x1xf32>
    %385 = vector.shape_cast %384 : vector<16x1xf32> to vector<1x16x1xf32>
    %cst_138 = arith.constant dense<0xFF800000> : vector<1xf32>
    %386 = vector.multi_reduction <maximumf>, %385, %cst_138 [1, 2] : vector<1x16x1xf32> to vector<1xf32>
    %387 = vector.shape_cast %386 : vector<1xf32> to vector<1x1x1xf32>
    %388 = vector.extract %387[0, 0, 0] : f32 from vector<1x1x1xf32>
    %cst_139 = arith.constant 9.99999974E-6 : f32
    %389 = arith.mulf %388, %cst_139 : f32
    %390 = vector.broadcast %389 : f32 to vector<16x32xf32>
    %391 = arith.addf %374, %390 : vector<16x32xf32>
    %cst_140 = arith.constant dense<0.000000e+00> : vector<16xf32>
    %392 = vector.multi_reduction <add>, %391, %cst_140 [1] : vector<16x32xf32> to vector<16xf32>
    %393 = vector.shape_cast %392 : vector<16xf32> to vector<16x1xf32>
    %cst_141 = arith.constant 3.200000e+01 : f32
    %394 = vector.broadcast %cst_141 : f32 to vector<16x1xf32>
    %395 = arith.divf %393, %394 : vector<16x1xf32>
    %396 = vector.broadcast %395 : vector<16x1xf32> to vector<16x32xf32>
    %397 = arith.subf %391, %396 : vector<16x32xf32>
    %398 = arith.mulf %397, %397 : vector<16x32xf32>
    %cst_142 = arith.constant dense<0.000000e+00> : vector<16xf32>
    %399 = vector.multi_reduction <add>, %398, %cst_142 [1] : vector<16x32xf32> to vector<16xf32>
    %400 = vector.shape_cast %399 : vector<16xf32> to vector<16x1xf32>
    %cst_143 = arith.constant 3.100000e+01 : f32
    %401 = vector.broadcast %cst_143 : f32 to vector<16x1xf32>
    %402 = arith.divf %400, %401 : vector<16x1xf32>
    %403 = math.sqrt %402 : vector<16x1xf32>
    %cst_144 = arith.constant 9.99999974E-6 : f32
    %404 = vector.broadcast %cst_144 : f32 to vector<16x1xf32>
    %405 = arith.addf %403, %404 : vector<16x1xf32>
    %406 = tpu.reciprocal %405 {approx = true} : vector<16x1xf32> -> vector<16x1xf32>
    %407 = vector.broadcast %406 : vector<16x1xf32> to vector<16x32xf32>
    %408 = arith.mulf %391, %407 : vector<16x32xf32>
    %cst_145 = arith.constant 5.000000e-01 : f32
    %409 = vector.broadcast %cst_145 : f32 to vector<16x32xf32>
    %410 = arith.mulf %408, %409 : vector<16x32xf32>
    %c0_146 = arith.constant 0 : index
    %c0_147 = arith.constant 0 : index
    %411 = vector.load %arg22[%c0_146, %c0_147] : memref<32x32xf32, #tpu.memory_space<vmem>>, vector<32x32xf32>
    %412 = arith.truncf %410 : vector<16x32xf32> to vector<16x32xbf16>
    %413 = arith.truncf %411 : vector<32x32xf32> to vector<32x32xbf16>
    %cst_148 = arith.constant dense<0.000000e+00> : vector<16x32xf32>
    %414 = tpu.matmul %412, %413, %cst_148 {dimension_numbers = #tpu.dot_dimension_numbers<[1], [0], [0], [1], [0, 0, 1, 1], [], []>} : vector<16x32xbf16>, vector<32x32xbf16>, vector<16x32xf32> -> vector<16x32xf32>
    %c0_149 = arith.constant 0 : index
    %c0_150 = arith.constant 0 : index
    %415 = vector.load %arg23[%c0_149, %c0_150] : memref<1x32xf32, #tpu.memory_space<vmem>>, vector<1x32xf32>
    %416 = vector.broadcast %415 : vector<1x32xf32> to vector<16x32xf32>
    %417 = arith.addf %414, %416 : vector<16x32xf32>
    %c0_151 = arith.constant 0 : index
    %c0_152 = arith.constant 0 : index
    %418 = vector.load %arg24[%c0_151, %c0_152] : memref<32x32xf32, #tpu.memory_space<vmem>>, vector<32x32xf32>
    %419 = arith.truncf %410 : vector<16x32xf32> to vector<16x32xbf16>
    %420 = arith.truncf %418 : vector<32x32xf32> to vector<32x32xbf16>
    %cst_153 = arith.constant dense<0.000000e+00> : vector<16x32xf32>
    %421 = tpu.matmul %419, %420, %cst_153 {dimension_numbers = #tpu.dot_dimension_numbers<[1], [0], [0], [1], [0, 0, 1, 1], [], []>} : vector<16x32xbf16>, vector<32x32xbf16>, vector<16x32xf32> -> vector<16x32xf32>
    %c0_154 = arith.constant 0 : index
    %c0_155 = arith.constant 0 : index
    %422 = vector.load %arg25[%c0_154, %c0_155] : memref<1x32xf32, #tpu.memory_space<vmem>>, vector<1x32xf32>
    %423 = vector.broadcast %422 : vector<1x32xf32> to vector<16x32xf32>
    %424 = arith.addf %421, %423 : vector<16x32xf32>
    %c0_156 = arith.constant 0 : index
    %c0_157 = arith.constant 0 : index
    %425 = vector.load %arg26[%c0_156, %c0_157] : memref<32x32xf32, #tpu.memory_space<vmem>>, vector<32x32xf32>
    %426 = arith.truncf %410 : vector<16x32xf32> to vector<16x32xbf16>
    %427 = arith.truncf %425 : vector<32x32xf32> to vector<32x32xbf16>
    %cst_158 = arith.constant dense<0.000000e+00> : vector<16x32xf32>
    %428 = tpu.matmul %426, %427, %cst_158 {dimension_numbers = #tpu.dot_dimension_numbers<[1], [0], [0], [1], [0, 0, 1, 1], [], []>} : vector<16x32xbf16>, vector<32x32xbf16>, vector<16x32xf32> -> vector<16x32xf32>
    %c0_159 = arith.constant 0 : index
    %c0_160 = arith.constant 0 : index
    %429 = vector.load %arg27[%c0_159, %c0_160] : memref<1x32xf32, #tpu.memory_space<vmem>>, vector<1x32xf32>
    %430 = vector.broadcast %429 : vector<1x32xf32> to vector<16x32xf32>
    %431 = arith.addf %428, %430 : vector<16x32xf32>
    %c0_161 = arith.constant 0 : index
    %c0_162 = arith.constant 0 : index
    %432 = vector.load %arg28[%c0_161, %c0_162] : memref<32x32xf32, #tpu.memory_space<vmem>>, vector<32x32xf32>
    %433 = vector.extract_strided_slice %417 {offsets = [0, 0], sizes = [16, 8], strides = [1, 1]} : vector<16x32xf32> to vector<16x8xf32>
    %434 = vector.shape_cast %433 : vector<16x8xf32> to vector<2x8x8xf32>
    %435 = vector.extract_strided_slice %424 {offsets = [0, 0], sizes = [16, 8], strides = [1, 1]} : vector<16x32xf32> to vector<16x8xf32>
    %436 = vector.shape_cast %435 : vector<16x8xf32> to vector<2x8x8xf32>
    %437 = vector.extract_strided_slice %431 {offsets = [0, 0], sizes = [16, 8], strides = [1, 1]} : vector<16x32xf32> to vector<16x8xf32>
    %438 = vector.shape_cast %437 : vector<16x8xf32> to vector<2x8x8xf32>
    %439 = arith.truncf %434 : vector<2x8x8xf32> to vector<2x8x8xbf16>
    %440 = arith.truncf %436 : vector<2x8x8xf32> to vector<2x8x8xbf16>
    "tpu.trace_start"() <{level = 10 : i32, message = "bqd,bkd->bqk"}> : () -> ()
    %cst_163 = arith.constant dense<0.000000e+00> : vector<2x8x8xf32>
    %441 = tpu.matmul %439, %440, %cst_163 {dimension_numbers = #tpu.dot_dimension_numbers<[2], [2], [1], [1], [0, 0, 0, 1, 1, 1], [0], [0]>} : vector<2x8x8xbf16>, vector<2x8x8xbf16>, vector<2x8x8xf32> -> vector<2x8x8xf32>
    "tpu.trace_stop"() : () -> ()
    %cst_164 = arith.constant dense<0xFF800000> : vector<2x8xf32>
    %442 = vector.multi_reduction <maximumf>, %441, %cst_164 [2] : vector<2x8x8xf32> to vector<2x8xf32>
    %443 = vector.shape_cast %442 : vector<2x8xf32> to vector<2x8x1xf32>
    %444 = vector.broadcast %443 : vector<2x8x1xf32> to vector<2x8x8xf32>
    %445 = arith.subf %441, %444 : vector<2x8x8xf32>
    %446 = math.exp %445 : vector<2x8x8xf32>
    %cst_165 = arith.constant dense<0.000000e+00> : vector<2x8xf32>
    %447 = vector.multi_reduction <add>, %446, %cst_165 [2] : vector<2x8x8xf32> to vector<2x8xf32>
    %448 = vector.shape_cast %447 : vector<2x8xf32> to vector<2x8x1xf32>
    %449 = tpu.reciprocal %448 {approx = true} : vector<2x8x1xf32> -> vector<2x8x1xf32>
    %450 = vector.broadcast %449 : vector<2x8x1xf32> to vector<2x8x8xf32>
    %451 = arith.mulf %446, %450 : vector<2x8x8xf32>
    %452 = arith.truncf %451 : vector<2x8x8xf32> to vector<2x8x8xbf16>
    %453 = arith.truncf %438 : vector<2x8x8xf32> to vector<2x8x8xbf16>
    "tpu.trace_start"() <{level = 10 : i32, message = "bqk,bkd->bqd"}> : () -> ()
    %cst_166 = arith.constant dense<0.000000e+00> : vector<2x8x8xf32>
    %454 = tpu.matmul %452, %453, %cst_166 {dimension_numbers = #tpu.dot_dimension_numbers<[2], [1], [1], [2], [0, 0, 0, 1, 1, 2], [0], [0]>} : vector<2x8x8xbf16>, vector<2x8x8xbf16>, vector<2x8x8xf32> -> vector<2x8x8xf32>
    "tpu.trace_stop"() : () -> ()
    %455 = vector.shape_cast %454 : vector<2x8x8xf32> to vector<16x8xf32>
    %456 = vector.extract_strided_slice %432 {offsets = [0, 0], sizes = [8, 32], strides = [1, 1]} : vector<32x32xf32> to vector<8x32xf32>
    %457 = arith.truncf %455 : vector<16x8xf32> to vector<16x8xbf16>
    %458 = arith.truncf %456 : vector<8x32xf32> to vector<8x32xbf16>
    %cst_167 = arith.constant dense<0.000000e+00> : vector<16x32xf32>
    %459 = tpu.matmul %457, %458, %cst_167 {dimension_numbers = #tpu.dot_dimension_numbers<[1], [0], [0], [1], [0, 0, 1, 1], [], []>} : vector<16x8xbf16>, vector<8x32xbf16>, vector<16x32xf32> -> vector<16x32xf32>
    %460 = vector.extract_strided_slice %417 {offsets = [0, 8], sizes = [16, 8], strides = [1, 1]} : vector<16x32xf32> to vector<16x8xf32>
    %461 = vector.shape_cast %460 : vector<16x8xf32> to vector<2x8x8xf32>
    %462 = vector.extract_strided_slice %424 {offsets = [0, 8], sizes = [16, 8], strides = [1, 1]} : vector<16x32xf32> to vector<16x8xf32>
    %463 = vector.shape_cast %462 : vector<16x8xf32> to vector<2x8x8xf32>
    %464 = vector.extract_strided_slice %431 {offsets = [0, 8], sizes = [16, 8], strides = [1, 1]} : vector<16x32xf32> to vector<16x8xf32>
    %465 = vector.shape_cast %464 : vector<16x8xf32> to vector<2x8x8xf32>
    %466 = arith.truncf %461 : vector<2x8x8xf32> to vector<2x8x8xbf16>
    %467 = arith.truncf %463 : vector<2x8x8xf32> to vector<2x8x8xbf16>
    "tpu.trace_start"() <{level = 10 : i32, message = "bqd,bkd->bqk"}> : () -> ()
    %cst_168 = arith.constant dense<0.000000e+00> : vector<2x8x8xf32>
    %468 = tpu.matmul %466, %467, %cst_168 {dimension_numbers = #tpu.dot_dimension_numbers<[2], [2], [1], [1], [0, 0, 0, 1, 1, 1], [0], [0]>} : vector<2x8x8xbf16>, vector<2x8x8xbf16>, vector<2x8x8xf32> -> vector<2x8x8xf32>
    "tpu.trace_stop"() : () -> ()
    %cst_169 = arith.constant dense<0xFF800000> : vector<2x8xf32>
    %469 = vector.multi_reduction <maximumf>, %468, %cst_169 [2] : vector<2x8x8xf32> to vector<2x8xf32>
    %470 = vector.shape_cast %469 : vector<2x8xf32> to vector<2x8x1xf32>
    %471 = vector.broadcast %470 : vector<2x8x1xf32> to vector<2x8x8xf32>
    %472 = arith.subf %468, %471 : vector<2x8x8xf32>
    %473 = math.exp %472 : vector<2x8x8xf32>
    %cst_170 = arith.constant dense<0.000000e+00> : vector<2x8xf32>
    %474 = vector.multi_reduction <add>, %473, %cst_170 [2] : vector<2x8x8xf32> to vector<2x8xf32>
    %475 = vector.shape_cast %474 : vector<2x8xf32> to vector<2x8x1xf32>
    %476 = tpu.reciprocal %475 {approx = true} : vector<2x8x1xf32> -> vector<2x8x1xf32>
    %477 = vector.broadcast %476 : vector<2x8x1xf32> to vector<2x8x8xf32>
    %478 = arith.mulf %473, %477 : vector<2x8x8xf32>
    %479 = arith.truncf %478 : vector<2x8x8xf32> to vector<2x8x8xbf16>
    %480 = arith.truncf %465 : vector<2x8x8xf32> to vector<2x8x8xbf16>
    "tpu.trace_start"() <{level = 10 : i32, message = "bqk,bkd->bqd"}> : () -> ()
    %cst_171 = arith.constant dense<0.000000e+00> : vector<2x8x8xf32>
    %481 = tpu.matmul %479, %480, %cst_171 {dimension_numbers = #tpu.dot_dimension_numbers<[2], [1], [1], [2], [0, 0, 0, 1, 1, 2], [0], [0]>} : vector<2x8x8xbf16>, vector<2x8x8xbf16>, vector<2x8x8xf32> -> vector<2x8x8xf32>
    "tpu.trace_stop"() : () -> ()
    %482 = vector.shape_cast %481 : vector<2x8x8xf32> to vector<16x8xf32>
    %483 = vector.extract_strided_slice %432 {offsets = [8, 0], sizes = [8, 32], strides = [1, 1]} : vector<32x32xf32> to vector<8x32xf32>
    %484 = arith.truncf %482 : vector<16x8xf32> to vector<16x8xbf16>
    %485 = arith.truncf %483 : vector<8x32xf32> to vector<8x32xbf16>
    %cst_172 = arith.constant dense<0.000000e+00> : vector<16x32xf32>
    %486 = tpu.matmul %484, %485, %cst_172 {dimension_numbers = #tpu.dot_dimension_numbers<[1], [0], [0], [1], [0, 0, 1, 1], [], []>} : vector<16x8xbf16>, vector<8x32xbf16>, vector<16x32xf32> -> vector<16x32xf32>
    %487 = vector.extract_strided_slice %417 {offsets = [0, 16], sizes = [16, 8], strides = [1, 1]} : vector<16x32xf32> to vector<16x8xf32>
    %488 = vector.shape_cast %487 : vector<16x8xf32> to vector<2x8x8xf32>
    %489 = vector.extract_strided_slice %424 {offsets = [0, 16], sizes = [16, 8], strides = [1, 1]} : vector<16x32xf32> to vector<16x8xf32>
    %490 = vector.shape_cast %489 : vector<16x8xf32> to vector<2x8x8xf32>
    %491 = vector.extract_strided_slice %431 {offsets = [0, 16], sizes = [16, 8], strides = [1, 1]} : vector<16x32xf32> to vector<16x8xf32>
    %492 = vector.shape_cast %491 : vector<16x8xf32> to vector<2x8x8xf32>
    %493 = arith.truncf %488 : vector<2x8x8xf32> to vector<2x8x8xbf16>
    %494 = arith.truncf %490 : vector<2x8x8xf32> to vector<2x8x8xbf16>
    "tpu.trace_start"() <{level = 10 : i32, message = "bqd,bkd->bqk"}> : () -> ()
    %cst_173 = arith.constant dense<0.000000e+00> : vector<2x8x8xf32>
    %495 = tpu.matmul %493, %494, %cst_173 {dimension_numbers = #tpu.dot_dimension_numbers<[2], [2], [1], [1], [0, 0, 0, 1, 1, 1], [0], [0]>} : vector<2x8x8xbf16>, vector<2x8x8xbf16>, vector<2x8x8xf32> -> vector<2x8x8xf32>
    "tpu.trace_stop"() : () -> ()
    %cst_174 = arith.constant dense<0xFF800000> : vector<2x8xf32>
    %496 = vector.multi_reduction <maximumf>, %495, %cst_174 [2] : vector<2x8x8xf32> to vector<2x8xf32>
    %497 = vector.shape_cast %496 : vector<2x8xf32> to vector<2x8x1xf32>
    %498 = vector.broadcast %497 : vector<2x8x1xf32> to vector<2x8x8xf32>
    %499 = arith.subf %495, %498 : vector<2x8x8xf32>
    %500 = math.exp %499 : vector<2x8x8xf32>
    %cst_175 = arith.constant dense<0.000000e+00> : vector<2x8xf32>
    %501 = vector.multi_reduction <add>, %500, %cst_175 [2] : vector<2x8x8xf32> to vector<2x8xf32>
    %502 = vector.shape_cast %501 : vector<2x8xf32> to vector<2x8x1xf32>
    %503 = tpu.reciprocal %502 {approx = true} : vector<2x8x1xf32> -> vector<2x8x1xf32>
    %504 = vector.broadcast %503 : vector<2x8x1xf32> to vector<2x8x8xf32>
    %505 = arith.mulf %500, %504 : vector<2x8x8xf32>
    %506 = arith.truncf %505 : vector<2x8x8xf32> to vector<2x8x8xbf16>
    %507 = arith.truncf %492 : vector<2x8x8xf32> to vector<2x8x8xbf16>
    "tpu.trace_start"() <{level = 10 : i32, message = "bqk,bkd->bqd"}> : () -> ()
    %cst_176 = arith.constant dense<0.000000e+00> : vector<2x8x8xf32>
    %508 = tpu.matmul %506, %507, %cst_176 {dimension_numbers = #tpu.dot_dimension_numbers<[2], [1], [1], [2], [0, 0, 0, 1, 1, 2], [0], [0]>} : vector<2x8x8xbf16>, vector<2x8x8xbf16>, vector<2x8x8xf32> -> vector<2x8x8xf32>
    "tpu.trace_stop"() : () -> ()
    %509 = vector.shape_cast %508 : vector<2x8x8xf32> to vector<16x8xf32>
    %510 = vector.extract_strided_slice %432 {offsets = [16, 0], sizes = [8, 32], strides = [1, 1]} : vector<32x32xf32> to vector<8x32xf32>
    %511 = arith.truncf %509 : vector<16x8xf32> to vector<16x8xbf16>
    %512 = arith.truncf %510 : vector<8x32xf32> to vector<8x32xbf16>
    %cst_177 = arith.constant dense<0.000000e+00> : vector<16x32xf32>
    %513 = tpu.matmul %511, %512, %cst_177 {dimension_numbers = #tpu.dot_dimension_numbers<[1], [0], [0], [1], [0, 0, 1, 1], [], []>} : vector<16x8xbf16>, vector<8x32xbf16>, vector<16x32xf32> -> vector<16x32xf32>
    %514 = vector.extract_strided_slice %417 {offsets = [0, 24], sizes = [16, 8], strides = [1, 1]} : vector<16x32xf32> to vector<16x8xf32>
    %515 = vector.shape_cast %514 : vector<16x8xf32> to vector<2x8x8xf32>
    %516 = vector.extract_strided_slice %424 {offsets = [0, 24], sizes = [16, 8], strides = [1, 1]} : vector<16x32xf32> to vector<16x8xf32>
    %517 = vector.shape_cast %516 : vector<16x8xf32> to vector<2x8x8xf32>
    %518 = vector.extract_strided_slice %431 {offsets = [0, 24], sizes = [16, 8], strides = [1, 1]} : vector<16x32xf32> to vector<16x8xf32>
    %519 = vector.shape_cast %518 : vector<16x8xf32> to vector<2x8x8xf32>
    %520 = arith.truncf %515 : vector<2x8x8xf32> to vector<2x8x8xbf16>
    %521 = arith.truncf %517 : vector<2x8x8xf32> to vector<2x8x8xbf16>
    "tpu.trace_start"() <{level = 10 : i32, message = "bqd,bkd->bqk"}> : () -> ()
    %cst_178 = arith.constant dense<0.000000e+00> : vector<2x8x8xf32>
    %522 = tpu.matmul %520, %521, %cst_178 {dimension_numbers = #tpu.dot_dimension_numbers<[2], [2], [1], [1], [0, 0, 0, 1, 1, 1], [0], [0]>} : vector<2x8x8xbf16>, vector<2x8x8xbf16>, vector<2x8x8xf32> -> vector<2x8x8xf32>
    "tpu.trace_stop"() : () -> ()
    %cst_179 = arith.constant dense<0xFF800000> : vector<2x8xf32>
    %523 = vector.multi_reduction <maximumf>, %522, %cst_179 [2] : vector<2x8x8xf32> to vector<2x8xf32>
    %524 = vector.shape_cast %523 : vector<2x8xf32> to vector<2x8x1xf32>
    %525 = vector.broadcast %524 : vector<2x8x1xf32> to vector<2x8x8xf32>
    %526 = arith.subf %522, %525 : vector<2x8x8xf32>
    %527 = math.exp %526 : vector<2x8x8xf32>
    %cst_180 = arith.constant dense<0.000000e+00> : vector<2x8xf32>
    %528 = vector.multi_reduction <add>, %527, %cst_180 [2] : vector<2x8x8xf32> to vector<2x8xf32>
    %529 = vector.shape_cast %528 : vector<2x8xf32> to vector<2x8x1xf32>
    %530 = tpu.reciprocal %529 {approx = true} : vector<2x8x1xf32> -> vector<2x8x1xf32>
    %531 = vector.broadcast %530 : vector<2x8x1xf32> to vector<2x8x8xf32>
    %532 = arith.mulf %527, %531 : vector<2x8x8xf32>
    %533 = arith.truncf %532 : vector<2x8x8xf32> to vector<2x8x8xbf16>
    %534 = arith.truncf %519 : vector<2x8x8xf32> to vector<2x8x8xbf16>
    "tpu.trace_start"() <{level = 10 : i32, message = "bqk,bkd->bqd"}> : () -> ()
    %cst_181 = arith.constant dense<0.000000e+00> : vector<2x8x8xf32>
    %535 = tpu.matmul %533, %534, %cst_181 {dimension_numbers = #tpu.dot_dimension_numbers<[2], [1], [1], [2], [0, 0, 0, 1, 1, 2], [0], [0]>} : vector<2x8x8xbf16>, vector<2x8x8xbf16>, vector<2x8x8xf32> -> vector<2x8x8xf32>
    "tpu.trace_stop"() : () -> ()
    %536 = vector.shape_cast %535 : vector<2x8x8xf32> to vector<16x8xf32>
    %537 = vector.extract_strided_slice %432 {offsets = [24, 0], sizes = [8, 32], strides = [1, 1]} : vector<32x32xf32> to vector<8x32xf32>
    %538 = arith.truncf %536 : vector<16x8xf32> to vector<16x8xbf16>
    %539 = arith.truncf %537 : vector<8x32xf32> to vector<8x32xbf16>
    %cst_182 = arith.constant dense<0.000000e+00> : vector<16x32xf32>
    %540 = tpu.matmul %538, %539, %cst_182 {dimension_numbers = #tpu.dot_dimension_numbers<[1], [0], [0], [1], [0, 0, 1, 1], [], []>} : vector<16x8xbf16>, vector<8x32xbf16>, vector<16x32xf32> -> vector<16x32xf32>
    %541 = arith.addf %459, %486 : vector<16x32xf32>
    %542 = arith.addf %541, %513 : vector<16x32xf32>
    %543 = arith.addf %542, %540 : vector<16x32xf32>
    %c0_183 = arith.constant 0 : index
    %c0_184 = arith.constant 0 : index
    %544 = vector.load %arg29[%c0_183, %c0_184] : memref<1x32xf32, #tpu.memory_space<vmem>>, vector<1x32xf32>
    %545 = vector.broadcast %544 : vector<1x32xf32> to vector<16x32xf32>
    %546 = arith.addf %543, %545 : vector<16x32xf32>
    %547 = arith.addf %287, %546 : vector<16x32xf32>
    %c0_185 = arith.constant 0 : index
    %c0_186 = arith.constant 0 : index
    %548 = vector.load %arg30[%c0_185, %c0_186] : memref<1x32xf32, #tpu.memory_space<vmem>>, vector<1x32xf32>
    %c0_187 = arith.constant 0 : index
    %c0_188 = arith.constant 0 : index
    %549 = vector.load %arg31[%c0_187, %c0_188] : memref<1x32xf32, #tpu.memory_space<vmem>>, vector<1x32xf32>
    %cst_189 = arith.constant dense<0.000000e+00> : vector<16xf32>
    %550 = vector.multi_reduction <add>, %547, %cst_189 [1] : vector<16x32xf32> to vector<16xf32>
    %551 = vector.shape_cast %550 : vector<16xf32> to vector<16x1xf32>
    %cst_190 = arith.constant 3.200000e+01 : f32
    %552 = vector.broadcast %cst_190 : f32 to vector<16x1xf32>
    %553 = arith.divf %551, %552 : vector<16x1xf32>
    %554 = vector.broadcast %553 : vector<16x1xf32> to vector<16x32xf32>
    %555 = arith.subf %547, %554 : vector<16x32xf32>
    %556 = arith.mulf %555, %555 : vector<16x32xf32>
    %cst_191 = arith.constant dense<0.000000e+00> : vector<16xf32>
    %557 = vector.multi_reduction <add>, %556, %cst_191 [1] : vector<16x32xf32> to vector<16xf32>
    %558 = vector.shape_cast %557 : vector<16xf32> to vector<16x1xf32>
    %cst_192 = arith.constant 3.200000e+01 : f32
    %559 = vector.broadcast %cst_192 : f32 to vector<16x1xf32>
    %560 = arith.divf %558, %559 : vector<16x1xf32>
    %cst_193 = arith.constant 9.99999974E-6 : f32
    %561 = vector.broadcast %cst_193 : f32 to vector<16x1xf32>
    %562 = arith.addf %560, %561 : vector<16x1xf32>
    %563 = math.rsqrt %562 : vector<16x1xf32>
    %564 = vector.broadcast %563 : vector<16x1xf32> to vector<16x32xf32>
    %565 = arith.mulf %555, %564 : vector<16x32xf32>
    %566 = vector.broadcast %548 : vector<1x32xf32> to vector<16x32xf32>
    %567 = arith.mulf %565, %566 : vector<16x32xf32>
    %568 = vector.broadcast %549 : vector<1x32xf32> to vector<16x32xf32>
    %569 = arith.addf %567, %568 : vector<16x32xf32>
    %c0_194 = arith.constant 0 : index
    %c0_195 = arith.constant 0 : index
    %570 = vector.load %arg32[%c0_194, %c0_195] : memref<32x128xf32, #tpu.memory_space<vmem>>, vector<32x128xf32>
    %571 = arith.truncf %569 : vector<16x32xf32> to vector<16x32xbf16>
    %572 = arith.truncf %570 : vector<32x128xf32> to vector<32x128xbf16>
    %cst_196 = arith.constant dense<0.000000e+00> : vector<16x128xf32>
    %573 = tpu.matmul %571, %572, %cst_196 {dimension_numbers = #tpu.dot_dimension_numbers<[1], [0], [0], [1], [0, 0, 1, 1], [], []>} : vector<16x32xbf16>, vector<32x128xbf16>, vector<16x128xf32> -> vector<16x128xf32>
    %c0_197 = arith.constant 0 : index
    %c0_198 = arith.constant 0 : index
    %574 = vector.load %arg33[%c0_197, %c0_198] : memref<1x128xf32, #tpu.memory_space<vmem>>, vector<1x128xf32>
    %575 = vector.broadcast %574 : vector<1x128xf32> to vector<16x128xf32>
    %576 = arith.addf %573, %575 : vector<16x128xf32>
    %cst_199 = arith.constant 5.000000e-01 : f32
    %577 = vector.broadcast %cst_199 : f32 to vector<16x128xf32>
    %578 = arith.mulf %577, %576 : vector<16x128xf32>
    %cst_200 = arith.constant 0.707106769 : f32
    %579 = vector.broadcast %cst_200 : f32 to vector<16x128xf32>
    %580 = arith.mulf %576, %579 : vector<16x128xf32>
    %581 = math.erf %580 : vector<16x128xf32>
    %cst_201 = arith.constant 1.000000e+00 : f32
    %582 = vector.broadcast %cst_201 : f32 to vector<16x128xf32>
    %583 = arith.addf %582, %581 : vector<16x128xf32>
    %584 = arith.mulf %578, %583 : vector<16x128xf32>
    %c0_202 = arith.constant 0 : index
    %c0_203 = arith.constant 0 : index
    %585 = vector.load %arg34[%c0_202, %c0_203] : memref<128x32xf32, #tpu.memory_space<vmem>>, vector<128x32xf32>
    %586 = arith.truncf %584 : vector<16x128xf32> to vector<16x128xbf16>
    %587 = arith.truncf %585 : vector<128x32xf32> to vector<128x32xbf16>
    %cst_204 = arith.constant dense<0.000000e+00> : vector<16x32xf32>
    %588 = tpu.matmul %586, %587, %cst_204 {dimension_numbers = #tpu.dot_dimension_numbers<[1], [0], [0], [1], [0, 0, 1, 1], [], []>} : vector<16x128xbf16>, vector<128x32xbf16>, vector<16x32xf32> -> vector<16x32xf32>
    %c0_205 = arith.constant 0 : index
    %c0_206 = arith.constant 0 : index
    %589 = vector.load %arg35[%c0_205, %c0_206] : memref<1x32xf32, #tpu.memory_space<vmem>>, vector<1x32xf32>
    %590 = vector.broadcast %589 : vector<1x32xf32> to vector<16x32xf32>
    %591 = arith.addf %588, %590 : vector<16x32xf32>
    %592 = arith.addf %547, %591 : vector<16x32xf32>
    %c0_207 = arith.constant 0 : index
    %c0_208 = arith.constant 0 : index
    %593 = vector.load %arg40[%c0_207, %c0_208] : memref<32x16xf32, #tpu.memory_space<vmem>>, vector<32x16xf32>
    %594 = arith.truncf %592 : vector<16x32xf32> to vector<16x32xbf16>
    %595 = arith.truncf %593 : vector<32x16xf32> to vector<32x16xbf16>
    %cst_209 = arith.constant dense<0.000000e+00> : vector<16x16xf32>
    %596 = tpu.matmul %594, %595, %cst_209 {dimension_numbers = #tpu.dot_dimension_numbers<[1], [0], [0], [1], [0, 0, 1, 1], [], []>} : vector<16x32xbf16>, vector<32x16xbf16>, vector<16x16xf32> -> vector<16x16xf32>
    %c0_210 = arith.constant 0 : index
    %c0_211 = arith.constant 0 : index
    %597 = vector.load %arg41[%c0_210, %c0_211] : memref<1x16xf32, #tpu.memory_space<vmem>>, vector<1x16xf32>
    %598 = vector.broadcast %597 : vector<1x16xf32> to vector<16x16xf32>
    %599 = arith.addf %596, %598 : vector<16x16xf32>
    %cst_212 = arith.constant 0.000000e+00 : f32
    %600 = vector.broadcast %cst_212 : f32 to vector<16x96xf32>
    %601 = tpu.concatenate %599, %348, %600 in 1 : vector<16x16xf32>, vector<16x16xf32>, vector<16x96xf32> -> vector<16x128xf32>
    %c0_213 = arith.constant 0 : index
    %c0_214 = arith.constant 0 : index
    %602 = vector.load %arg42[%c0_213, %c0_214] : memref<16x128xf32, #tpu.memory_space<vmem>>, vector<16x128xf32>
    tpu.vector_store %arg42[%c0_213, %c0_214], %601 {strides = array<i32>} : memref<16x128xf32, #tpu.memory_space<vmem>>, vector<16x128xf32>,
    return
  }
}

</mosaic_0001>

<bundles_post_ra>
// kernel: forward.1
= control target key start
LH: loop header
LB: loop body
LE: loop exit
PB: predicated region body
PF: predicated region fallthrough
CT: control target
= control target key end

     0   :  { %s5100_s6 = smov 1   ;;  %s5101_s10 = smov 2   ;;  %s6156_s0 = inlined_call_operand.smem [shape: u32[43], index: -1, kind: input, shape index: {}] }
   0x1   :  { %s5168_s5 = sld [smem:[%s6156_s0]]   ;;  %s5102_s14 = smov 3  }
   0x2   :  { %s5173_s9 = sld [smem:[%s6156_s0 + %s5100_s6]]   ;;  %s5103_s18 = smov 4  }
   0x3   :  { %s5178_s13 = sld [smem:[%s6156_s0 + %s5101_s10]]   ;;  %s5104_s22 = smov 5  }
   0x4   :  { %s5183_s17 = sld [smem:[%s6156_s0 + %s5102_s14]]   ;;  %s5105_s26 = smov 6  }
   0x5   :  { %s5188_s21 = sld [smem:[%s6156_s0 + %s5103_s18]]   ;;  %s5106_s30 = smov 7  }
   0x6   :  { %s5193_s25 = sld [smem:[%s6156_s0 + %s5104_s22]]   ;;  %s5107_s4 = smov 8  }
   0x7   :  { %s5198_s29 = sld [smem:[%s6156_s0 + %s5105_s26]]   ;;  %s5108_s10 = smov 9  }
   0x8   :  { %s5203_s3 = sld [smem:[%s6156_s0 + %s5106_s30]]   ;;  %s5109_s15 = smov 10  }
   0x9   :  { %s5208_s8 = sld [smem:[%s6156_s0 + %s5107_s4]]   ;;  %s5110_s20 = smov 11  }
   0xa   :  { %s5213_s14 = sld [smem:[%s6156_s0 + %s5108_s10]]   ;;  %s5111_s26 = smov 12  }
   0xb   :  { %s5218_s19 = sld [smem:[%s6156_s0 + %s5109_s15]]   ;;  %s5112_s1 = smov 13  }
   0xc   :  { %s5223_s24 = sld [smem:[%s6156_s0 + %s5110_s20]]   ;;  %s5113_s7 = smov 14  }
   0xd   :  { %6171 = sst [smem:[#allocation28_spill]] %s5198_s29  ;;  %s5114_s15 = smov 15  }
   0xe   :  { %s5228_s30 = sld [smem:[%s6156_s0 + %s5111_s26]]   ;;  %s5115_s22 = smov 16  }
   0xf   :  { %6172 = sst [smem:[#allocation29_spill]] %s5208_s8  ;;  %s5116_s28 = smov 17  }
  0x10   :  { %s5233_s6 = sld [smem:[%s6156_s0 + %s5112_s1]]  }
  0x11   :  { %6173 = sst [smem:[#allocation30_spill]] %s5218_s19 }
  0x12   :  { %s5238_s12 = sld [smem:[%s6156_s0 + %s5113_s7]]   ;;  %s5117_s7 = smov 18  }
  0x13   :  { %s5243_s20 = sld [smem:[%s6156_s0 + %s5114_s15]]   ;;  %s5118_s15 = smov 19  }
  0x14   :  { %6174 = sst [smem:[#allocation31_spill]] %s5228_s30 }
  0x15   :  { %s5248_s27 = sld [smem:[%s6156_s0 + %s5115_s22]]   ;;  %s5119_s22 = smov 20  }
  0x16   :  { %s5253_s4 = sld [smem:[%s6156_s0 + %s5116_s28]]   ;;  %s5120_s28 = smov 21  }
  0x17   :  { %s5263_s30 = sld [smem:[%s6156_s0 + %s5118_s15]]   ;;  %s5122_s15 = smov 23  }
  0x18   :  { %6175 = sst [smem:[#allocation32_spill]] %s5238_s12 }
  0x19   :  { %s5258_s12 = sld [smem:[%s6156_s0 + %s5117_s7]]   ;;  %s5121_s7 = smov 22  }
  0x1a   :  { %s5273_s19 = sld [smem:[%s6156_s0 + %s5120_s28]]   ;;  %s5124_s28 = smov 25  }
  0x1b   :  { %6176 = sst [smem:[#allocation33_spill]] %s5248_s27 }
  0x1c   :  { %s5268_s27 = sld [smem:[%s6156_s0 + %s5119_s22]]   ;;  %s5123_s22 = smov 24  }
  0x1d   :  { %s5283_s8 = sld [smem:[%s6156_s0 + %s5122_s15]]   ;;  %s5126_s15 = smov 27  }
  0x1f   :  { %6177 = sst [smem:[#allocation34_spill]] %s5258_s12 }
  0x20   :  { %6179 = sst [smem:[#allocation36_spill]] %s5273_s19 }
  0x21   :  { %s5278_s12 = sld [smem:[%s6156_s0 + %s5121_s7]]   ;;  %s5125_s7 = smov 26  }
  0x22   :  { %6178 = sst [smem:[#allocation35_spill]] %s5268_s27 }
  0x23   :  { %6181 = sst [smem:[#allocation38_spill]] %s5283_s8 }
  0x24   :  { %s5288_s27 = sld [smem:[%s6156_s0 + %s5123_s22]]   ;;  %s5127_s22 = smov 28  }
  0x25   :  { %s5293_s19 = sld [smem:[%s6156_s0 + %s5124_s28]]   ;;  %s5128_s28 = smov 29  }
  0x26   :  { %s5303_s8 = sld [smem:[%s6156_s0 + %s5126_s15]]   ;;  %s5130_s15 = smov 31  }
  0x27   :  { %6180 = sst [smem:[#allocation37_spill]] %s5278_s12 }
  0x28   :  { %s5298_s12 = sld [smem:[%s6156_s0 + %s5125_s7]]   ;;  %s5129_s7 = smov 30  }
  0x2a   :  { %6182 = sst [smem:[#allocation39_spill]] %s5288_s27 }
  0x2b   :  { %6183 = sst [smem:[#allocation40_spill]] %s5293_s19 }
  0x2c   :  { %6185 = sst [smem:[#allocation42_spill]] %s5303_s8 }
  0x2d   :  { %s5308_s27 = sld [smem:[%s6156_s0 + %s5127_s22]]   ;;  %s5131_s22 = smov 32  }
  0x2e   :  { %6184 = sst [smem:[#allocation41_spill]] %s5298_s12 }
  0x2f   :  { %s5313_s19 = sld [smem:[%s6156_s0 + %s5128_s28]]   ;;  %s5132_s28 = smov 33  }
  0x30   :  { %s5318_s12 = sld [smem:[%s6156_s0 + %s5129_s7]]   ;;  %s5133_s7 = smov 34  }
  0x31   :  { %s5323_s8 = sld [smem:[%s6156_s0 + %s5130_s15]]   ;;  %s5134_s15 = smov 35  }
  0x33   :  { %6186 = sst [smem:[#allocation43_spill]] %s5308_s27 }
  0x34   :  { %s5328_s27 = sld [smem:[%s6156_s0 + %s5131_s22]]   ;;  %s5135_s22 = smov 36  }
  0x35   :  { %6187 = sst [smem:[#allocation44_spill]] %s5313_s19 }
  0x36   :  { %6188 = sst [smem:[#allocation45_spill]] %s5318_s12 }
  0x37   :  { %6189 = sst [smem:[#allocation46_spill]] %s5323_s8 }
  0x38   :  { %s5333_s19 = sld [smem:[%s6156_s0 + %s5132_s28]]   ;;  %s5136_s28 = smov 37  }
  0x39   :  { %s5338_s12 = sld [smem:[%s6156_s0 + %s5133_s7]]   ;;  %s5137_s7 = smov 38  }
  0x3a   :  { %6190 = sst [smem:[#allocation47_spill]] %s5328_s27 }
  0x3b   :  { %s5343_s8 = sld [smem:[%s6156_s0 + %s5134_s15]]   ;;  %s5138_s15 = smov 39  }
  0x3c   :  { %s5348_s27 = sld [smem:[%s6156_s0 + %s5135_s22]]   ;;  %s5139_s22 = smov 40  }
  0x3e   :  { %6191 = sst [smem:[#allocation48_spill]] %s5333_s19 }
  0x3f   :  { %6192 = sst [smem:[#allocation49_spill]] %s5338_s12 }
  0x40   :  { %s5353_s19 = sld [smem:[%s6156_s0 + %s5136_s28]]   ;;  %s5140_s28 = smov 41  }
  0x41   :  { %6193 = sst [smem:[#allocation50_spill]] %s5343_s8 }
  0x42   :  { %6194 = sst [smem:[#allocation51_spill]] %s5348_s27 }
  0x43   :  { %s5358_s12 = sld [smem:[%s6156_s0 + %s5137_s7]]   ;;  %s5141_s7 = smov 42  }
  0x44   :  { %s5363_s8 = sld [smem:[%s6156_s0 + %s5138_s15]]  }
  0x45   :  { %s5368_s27 = sld [smem:[%s6156_s0 + %s5139_s22]]  }
  0x46   :  { %s5373_s29 = sld [smem:[%s6156_s0 + %s5140_s28]]  }
  0x49   :  { %6195 = sst [smem:[#allocation52_spill]] %s5358_s12 }
  0x4a   :  { %s5378_s12 = sld [smem:[%s6156_s0 + %s5141_s7]]  }
  0x4b   :  { %90 = vsyncpa [#allocation3], 0 }
  0x4c   :  { %91 = vsyncpa [#allocation5], 0 }
  0x4d   :  { %92 = vsyncpa [#allocation8], 0 }
  0x4e   :  { %93 = vsyncpa [#allocation11], 0 }
  0x4f   :  { %94 = vsyncpa [#allocation14], 0 }
  0x50   :  { %95 = vsyncpa [#allocation17], 0 }
  0x51   :  { %96 = vsyncpa [#allocation20], 0  ;;  %s5142_s15 = smov [#allocation4]   ;;  %s5143_s18 = smov [#allocation7]  }
  0x52   :  { %s121_s16 = sshll.u32 %s5142_s15, 4  ;;  %s145_s22 = sshll.u32 %s5143_s18, 4  ;;  %s122_s16 = int_to_ptr.vmem [resolvable:$true] %s121_s16  ;;  %s146_s22 = int_to_ptr.vmem [resolvable:$true] %s145_s22 }
  0x53   :  { %s4822_s23 = scalar_lea.hbm %s5193_s25, 16 }
  0x54   :  { %p4823_p0 = scmp.ne.s32.totalorder %s5193_s25, %s4822_s23  ;;  %p4826_p1 = scmp.lt.u32.totalorder %s4822_s23, %s5193_s25 }
  0x56   :  { %p4828_p2 = pnand %p4826_p1, %p4823_p0 }
  0x58   :  { %4831 = shalt.err (!%p4828_p2)
}
  0x59   :  { %s4832_s0 = scalar_lea.vmem %s122_s16, 16  ;;  %s4836_s26 = scalar_lea.vmem %s122_s16, 32 }
  0x5a   :  { %p4833_p3 = scmp.ne.s32.totalorder %s122_s16, %s4832_s0  ;;  %p4837_p4 = scmp.lt.s32.totalorder %s122_s16, %s122_s16 }
  0x5b   :  { %p4838_p5 = scmp.lt.s32.totalorder %s4836_s26, %s4832_s0 }
  0x5d   :  { %p4839_p6 = por %p4838_p5, %p4837_p4 }
  0x5f   :  { %p4840_p7 = pnand %p4839_p6, %p4833_p3 }
  0x61   :  { %4843 = shalt.err (!%p4840_p7)
}
  0x62   :  { %124 = dma.hbm_to_vmem [thread:$0]  %s5193_s25, 16, %s122_s16, [#allocation5]  }
  0x63   :  { %s4844_s28 = scalar_lea.hbm %s5213_s14, 16 }
  0x64   :  { %p4845_p8 = scmp.ne.s32.totalorder %s5213_s14, %s4844_s28  ;;  %p4848_p9 = scmp.lt.u32.totalorder %s4844_s28, %s5213_s14 }
  0x66   :  { %p4850_p10 = pnand %p4848_p9, %p4845_p8 }
  0x68   :  { %4853 = shalt.err (!%p4850_p10)
}
  0x69   :  { %s4854_s1 = scalar_lea.vmem %s146_s22, 16  ;;  %s4858_s2 = scalar_lea.vmem %s146_s22, 32 }
  0x6a   :  { %p4855_p11 = scmp.ne.s32.totalorder %s146_s22, %s4854_s1  ;;  %p4859_p12 = scmp.lt.s32.totalorder %s146_s22, %s146_s22 }
  0x6b   :  { %p4860_p13 = scmp.lt.s32.totalorder %s4858_s2, %s4854_s1 }
  0x6d   :  { %p4861_p0 = por %p4860_p13, %p4859_p12 }
  0x6f   :  { %p4862_p1 = pnand %p4861_p0, %p4855_p11 }
  0x71   :  { %4865 = shalt.err (!%p4862_p1)
}
  0x72   :  { %148 = dma.hbm_to_vmem [thread:$0]  %s5213_s14, 16, %s146_s22, [#allocation8]  }
  0x73   :  { %s5144_s7 = smov [#allocation10]   ;;  %s5145_s10 = smov [#allocation13]  }
  0x74   :  { %s169_s25 = sshll.u32 %s5144_s7, 4  ;;  %s193_s11 = sshll.u32 %s5145_s10, 4  ;;  %s170_s25 = int_to_ptr.vmem [resolvable:$true] %s169_s25  ;;  %s194_s11 = int_to_ptr.vmem [resolvable:$true] %s193_s11 }
  0x75   :  { %s4866_s15 = scalar_lea.hbm %s5233_s6, 16 }
  0x76   :  { %p4867_p2 = scmp.ne.s32.totalorder %s5233_s6, %s4866_s15  ;;  %p4870_p3 = scmp.lt.u32.totalorder %s4866_s15, %s5233_s6 }
  0x78   :  { %p4872_p4 = pnand %p4870_p3, %p4867_p2 }
  0x7a   :  { %4875 = shalt.err (!%p4872_p4)
}
  0x7b   :  { %s4876_s16 = scalar_lea.vmem %s170_s25, 16  ;;  %s4880_s18 = scalar_lea.vmem %s170_s25, 32 }
  0x7c   :  { %p4877_p5 = scmp.ne.s32.totalorder %s170_s25, %s4876_s16  ;;  %p4881_p6 = scmp.lt.s32.totalorder %s170_s25, %s170_s25 }
  0x7d   :  { %p4882_p7 = scmp.lt.s32.totalorder %s4880_s18, %s4876_s16 }
  0x7f   :  { %p4883_p8 = por %p4882_p7, %p4881_p6 }
  0x81   :  { %p4884_p9 = pnand %p4883_p8, %p4877_p5 }
  0x83   :  { %4887 = shalt.err (!%p4884_p9)
}
  0x84   :  { %172 = dma.hbm_to_vmem [thread:$0]  %s5233_s6, 16, %s170_s25, [#allocation11]  }
  0x85   :  { %s4888_s14 = scalar_lea.hbm %s5253_s4, 16 }
  0x86   :  { %p4889_p10 = scmp.ne.s32.totalorder %s5253_s4, %s4888_s14  ;;  %p4892_p11 = scmp.lt.u32.totalorder %s4888_s14, %s5253_s4 }
  0x88   :  { %p4894_p12 = pnand %p4892_p11, %p4889_p10 }
  0x8a   :  { %4897 = shalt.err (!%p4894_p12)
}
  0x8b   :  { %s4898_s22 = scalar_lea.vmem %s194_s11, 16  ;;  %s4902_s23 = scalar_lea.vmem %s194_s11, 32 }
  0x8c   :  { %p4899_p13 = scmp.ne.s32.totalorder %s194_s11, %s4898_s22  ;;  %p4903_p0 = scmp.lt.s32.totalorder %s194_s11, %s194_s11 }
  0x8d   :  { %p4904_p1 = scmp.lt.s32.totalorder %s4902_s23, %s4898_s22 }
  0x8f   :  { %p4905_p2 = por %p4904_p1, %p4903_p0 }
  0x91   :  { %p4906_p3 = pnand %p4905_p2, %p4899_p13 }
  0x93   :  { %4909 = shalt.err (!%p4906_p3)
}
  0x94   :  { %196 = dma.hbm_to_vmem [thread:$0]  %s5253_s4, 16, %s194_s11, [#allocation14]  }
  0x95   :  { %s5146_s0 = smov [#allocation16]   ;;  %s5147_s26 = smov [#allocation2]  }
  0x96   :  { %s249_s6 = sshll.u32 %s5146_s0, 4  ;;  %s111_s28 = sshll.u32 %s5147_s26, 4  ;;  %s250_s6 = int_to_ptr.vmem [resolvable:$true] %s249_s6  ;;  %s112_s28 = int_to_ptr.vmem [resolvable:$true] %s111_s28 }
  0x97   :  { %s4910_s1 = scalar_lea.hbm %s5353_s19, 16 }
  0x98   :  { %p4911_p4 = scmp.ne.s32.totalorder %s5353_s19, %s4910_s1  ;;  %p4914_p5 = scmp.lt.u32.totalorder %s4910_s1, %s5353_s19 }
  0x9a   :  { %p4916_p6 = pnand %p4914_p5, %p4911_p4 }
  0x9c   :  { %4919 = shalt.err (!%p4916_p6)
}
  0x9d   :  { %s4920_s2 = scalar_lea.vmem %s250_s6, 16  ;;  %s4924_s7 = scalar_lea.vmem %s250_s6, 32 }
  0x9e   :  { %p4921_p7 = scmp.ne.s32.totalorder %s250_s6, %s4920_s2  ;;  %p4925_p8 = scmp.lt.s32.totalorder %s250_s6, %s250_s6 }
  0x9f   :  { %p4926_p9 = scmp.lt.s32.totalorder %s4924_s7, %s4920_s2 }
  0xa1   :  { %p4927_p10 = por %p4926_p9, %p4925_p8 }
  0xa3   :  { %p4928_p11 = pnand %p4927_p10, %p4921_p7 }
  0xa5   :  { %4931 = shalt.err (!%p4928_p11)
}
  0xa6   :  { %252 = dma.hbm_to_vmem [thread:$0]  %s5353_s19, 16, %s250_s6, [#allocation17]  }
  0xa7   :  { %s4932_s4 = scalar_lea.hbm %s5188_s21, 16 }
  0xa8   :  { %p4933_p12 = scmp.ne.s32.totalorder %s5188_s21, %s4932_s4  ;;  %p4936_p13 = scmp.lt.u32.totalorder %s4932_s4, %s5188_s21 }
  0xaa   :  { %p4938_p0 = pnand %p4936_p13, %p4933_p12 }
  0xac   :  { %4941 = shalt.err (!%p4938_p0)
}
  0xad   :  { %s4942_s25 = scalar_lea.vmem %s112_s28, 16  ;;  %s4946_s10 = scalar_lea.vmem %s112_s28, 32 }
  0xae   :  { %p4943_p1 = scmp.ne.s32.totalorder %s112_s28, %s4942_s25  ;;  %p4947_p2 = scmp.lt.s32.totalorder %s112_s28, %s112_s28 }
  0xaf   :  { %p4948_p3 = scmp.lt.s32.totalorder %s4946_s10, %s4942_s25 }
  0xb1   :  { %p4949_p4 = por %p4948_p3, %p4947_p2 }
  0xb3   :  { %p4950_p5 = pnand %p4949_p4, %p4943_p1 }
  0xb5   :  { %4953 = shalt.err (!%p4950_p5)
}
  0xb6   :  { %114 = dma.hbm_to_vmem [thread:$0]  %s5188_s21, 16, %s112_s28, [#allocation3]  }
  0xb7   :  { %s5148_s11 = smov [#allocation6]   ;;  %s5149_s15 = smov [#allocation9]  }
  0xb8   :  { %s133_s19 = sshll.u32 %s5148_s11, 4  ;;  %s157_s16 = sshll.u32 %s5149_s15, 4  ;;  %s134_s19 = int_to_ptr.vmem [resolvable:$true] %s133_s19  ;;  %s158_s16 = int_to_ptr.vmem [resolvable:$true] %s157_s16 }
  0xb9   :  { %s4954_s18 = scalar_lea.hbm %s5203_s3, 16 }
  0xba   :  { %p4955_p6 = scmp.ne.s32.totalorder %s5203_s3, %s4954_s18  ;;  %p4958_p7 = scmp.lt.u32.totalorder %s4954_s18, %s5203_s3 }
  0xbc   :  { %p4960_p8 = pnand %p4958_p7, %p4955_p6 }
  0xbe   :  { %4963 = shalt.err (!%p4960_p8)
}
  0xbf   :  { %s4964_s14 = scalar_lea.vmem %s134_s19, 16  ;;  %s4968_s22 = scalar_lea.vmem %s134_s19, 32 }
  0xc0   :  { %p4965_p9 = scmp.ne.s32.totalorder %s134_s19, %s4964_s14  ;;  %p4969_p10 = scmp.lt.s32.totalorder %s134_s19, %s134_s19 }
  0xc1   :  { %p4970_p11 = scmp.lt.s32.totalorder %s4968_s22, %s4964_s14 }
  0xc3   :  { %p4971_p12 = por %p4970_p11, %p4969_p10 }
  0xc5   :  { %p4972_p13 = pnand %p4971_p12, %p4965_p9 }
  0xc7   :  { %4975 = shalt.err (!%p4972_p13)
}
  0xc8   :  { %136 = dma.hbm_to_vmem [thread:$0]  %s5203_s3, 16, %s134_s19, [#allocation5]  }
  0xc9   :  { %s4976_s21 = scalar_lea.hbm %s5223_s24, 16 }
  0xca   :  { %p4977_p0 = scmp.ne.s32.totalorder %s5223_s24, %s4976_s21  ;;  %p4980_p1 = scmp.lt.u32.totalorder %s4976_s21, %s5223_s24 }
  0xcc   :  { %p4982_p2 = pnand %p4980_p1, %p4977_p0 }
  0xce   :  { %4985 = shalt.err (!%p4982_p2)
}
  0xcf   :  { %s4986_s23 = scalar_lea.vmem %s158_s16, 16  ;;  %s4990_s0 = scalar_lea.vmem %s158_s16, 32 }
  0xd0   :  { %p4987_p3 = scmp.ne.s32.totalorder %s158_s16, %s4986_s23  ;;  %p4991_p4 = scmp.lt.s32.totalorder %s158_s16, %s158_s16 }
  0xd1   :  { %p4992_p5 = scmp.lt.s32.totalorder %s4990_s0, %s4986_s23 }
  0xd3   :  { %p4993_p6 = por %p4992_p5, %p4991_p4 }
  0xd5   :  { %p4994_p7 = pnand %p4993_p6, %p4987_p3 }
  0xd7   :  { %4997 = shalt.err (!%p4994_p7)
}
  0xd8   :  { %160 = dma.hbm_to_vmem [thread:$0]  %s5223_s24, 16, %s158_s16, [#allocation8]  }
  0xd9   :  { %s5150_s6 = smov [#allocation12]   ;;  %s5151_s26 = smov [#allocation15]  }
  0xda   :  { %s181_s3 = sshll.u32 %s5150_s6, 4  ;;  %s205_s28 = sshll.u32 %s5151_s26, 4  ;;  %s182_s3 = int_to_ptr.vmem [resolvable:$true] %s181_s3  ;;  %s206_s28 = int_to_ptr.vmem [resolvable:$true] %s205_s28 }
  0xdb   :  { %s4998_s1 = scalar_lea.hbm %s5243_s20, 16 }
  0xdc   :  { %p4999_p8 = scmp.ne.s32.totalorder %s5243_s20, %s4998_s1  ;;  %p5002_p9 = scmp.lt.u32.totalorder %s4998_s1, %s5243_s20 }
  0xde   :  { %p5004_p10 = pnand %p5002_p9, %p4999_p8 }
  0xe0   :  { %5007 = shalt.err (!%p5004_p10)
}
  0xe1   :  { %s5008_s2 = scalar_lea.vmem %s182_s3, 16  ;;  %s5012_s7 = scalar_lea.vmem %s182_s3, 32 }
  0xe2   :  { %p5009_p11 = scmp.ne.s32.totalorder %s182_s3, %s5008_s2  ;;  %p5013_p12 = scmp.lt.s32.totalorder %s182_s3, %s182_s3 }
  0xe3   :  { %p5014_p13 = scmp.lt.s32.totalorder %s5012_s7, %s5008_s2 }
  0xe5   :  { %p5015_p0 = por %p5014_p13, %p5013_p12 }
  0xe7   :  { %p5016_p1 = pnand %p5015_p0, %p5009_p11 }
  0xe9   :  { %5019 = shalt.err (!%p5016_p1)
}
  0xea   :  { %184 = dma.hbm_to_vmem [thread:$0]  %s5243_s20, 16, %s182_s3, [#allocation11]  }
  0xeb   :  { %s5020_s24 = scalar_lea.hbm %s5263_s30, 16 }
  0xec   :  { %p5021_p2 = scmp.ne.s32.totalorder %s5263_s30, %s5020_s24  ;;  %p5024_p3 = scmp.lt.u32.totalorder %s5020_s24, %s5263_s30 }
  0xee   :  { %p5026_p4 = pnand %p5024_p3, %p5021_p2 }
  0xf0   :  { %5029 = shalt.err (!%p5026_p4)
}
  0xf1   :  { %s5030_s4 = scalar_lea.vmem %s206_s28, 16  ;;  %s5034_s25 = scalar_lea.vmem %s206_s28, 32 }
  0xf2   :  { %p5031_p5 = scmp.ne.s32.totalorder %s206_s28, %s5030_s4  ;;  %p5035_p6 = scmp.lt.s32.totalorder %s206_s28, %s206_s28 }
  0xf3   :  { %p5036_p7 = scmp.lt.s32.totalorder %s5034_s25, %s5030_s4 }
  0xf5   :  { %p5037_p8 = por %p5036_p7, %p5035_p6 }
  0xf7   :  { %p5038_p9 = pnand %p5037_p8, %p5031_p5 }
  0xf9   :  { %5041 = shalt.err (!%p5038_p9)
}
  0xfa   :  { %208 = dma.hbm_to_vmem [thread:$0]  %s5263_s30, 16, %s206_s28, [#allocation14]  }
  0xfb   :  { %s5152_s10 = smov [#allocation18]   ;;  %s5153_s11 = smov [#allocation19]  }
  0xfc   :  { %s261_s20 = sshll.u32 %s5152_s10, 4  ;;  %s273_s19 = sshll.u32 %s5153_s11, 4  ;;  %s262_s20 = int_to_ptr.vmem [resolvable:$true] %s261_s20  ;;  %s274_s19 = int_to_ptr.vmem [resolvable:$true] %s273_s19 }
  0xfd   :  { %s5042_s15 = scalar_lea.hbm %s5363_s8, 16 }
  0xfe   :  { %p5043_p10 = scmp.ne.s32.totalorder %s5363_s8, %s5042_s15  ;;  %p5046_p11 = scmp.lt.u32.totalorder %s5042_s15, %s5363_s8 }
 0x100   :  { %p5048_p12 = pnand %p5046_p11, %p5043_p10 }
 0x102   :  { %5051 = shalt.err (!%p5048_p12)
}
 0x103   :  { %s5052_s16 = scalar_lea.vmem %s262_s20, 16  ;;  %s5056_s18 = scalar_lea.vmem %s262_s20, 32 }
 0x104   :  { %p5053_p13 = scmp.ne.s32.totalorder %s262_s20, %s5052_s16  ;;  %p5057_p0 = scmp.lt.s32.totalorder %s262_s20, %s262_s20 }
 0x105   :  { %p5058_p1 = scmp.lt.s32.totalorder %s5056_s18, %s5052_s16 }
 0x107   :  { %p5059_p2 = por %p5058_p1, %p5057_p0 }
 0x109   :  { %p5060_p3 = pnand %p5059_p2, %p5053_p13 }
 0x10b   :  { %5063 = shalt.err (!%p5060_p3)
}
 0x10c   :  { %264 = dma.hbm_to_vmem [thread:$0]  %s5363_s8, 16, %s262_s20, [#allocation17]  }
 0x10d   :  { %s5064_s30 = scalar_lea.hbm %s5373_s29, 16 }
 0x10e   :  { %p5065_p4 = scmp.ne.s32.totalorder %s5373_s29, %s5064_s30  ;;  %p5068_p5 = scmp.lt.u32.totalorder %s5064_s30, %s5373_s29 }
 0x110   :  { %p5070_p6 = pnand %p5068_p5, %p5065_p4 }
 0x112   :  { %5073 = shalt.err (!%p5070_p6)
}
 0x113   :  { %s5074_s14 = scalar_lea.vmem %s274_s19, 16  ;;  %s5078_s22 = scalar_lea.vmem %s274_s19, 32 }
 0x114   :  { %p5075_p7 = scmp.ne.s32.totalorder %s274_s19, %s5074_s14  ;;  %p5079_p8 = scmp.lt.s32.totalorder %s274_s19, %s274_s19 }
 0x115   :  { %p5080_p9 = scmp.lt.s32.totalorder %s5078_s22, %s5074_s14 }
 0x117   :  { %p5081_p10 = por %p5080_p9, %p5079_p8 }
 0x119   :  { %p5082_p11 = pnand %p5081_p10, %p5075_p7 }
 0x11b   :  { %5085 = shalt.err (!%p5082_p11)
}
 0x11c   :  { %276 = dma.hbm_to_vmem [thread:$0]  %s5373_s29, 16, %s274_s19, [#allocation20]  }
 0x11d   :  { %5086 = dma.done.wait [#allocation3], 16  }
 0x11e   :  { %5087 = vsyncadd [#allocation3], 4294967280 }
 0x11f   :  { %5088 = dma.done.wait [#allocation5], 32  }
 0x120   :  { %5089 = vsyncadd [#allocation5], 4294967264 }
 0x121   :  { %5090 = dma.done.wait [#allocation8], 32  }
 0x122   :  { %5091 = vsyncadd [#allocation8], 4294967264 }
 0x123   :  { %5092 = dma.done.wait [#allocation11], 32  }
 0x124   :  { %5093 = vsyncadd [#allocation11], 4294967264 }
 0x125   :  { %5094 = dma.done.wait [#allocation14], 32  }
 0x126   :  { %5095 = vsyncadd [#allocation14], 4294967264 }
 0x127   :  { %5096 = dma.done.wait [#allocation17], 32  }
 0x128   :  { %5097 = vsyncadd [#allocation17], 4294967264 }
 0x129   :  { %5098 = dma.done.wait [#allocation20], 16  }
 0x12a   :  { %5099 = vsyncadd [#allocation20], 4294967280  ;;  %v5429_v0 = vld [vmem:[%s5168_s5] sm:$0xff]  ;;  %s5154_s8 = smov 112   ;;  %v5434_v1 = vld [vmem:[%s5168_s5 + $0x8] sm:$0xff]  ;;  %vm316_vm0 = vcmask 130048  }
 0x12b   :  { %359 = vrot.lane.b32.xlu0 %v5429_v0, %s5154_s8  ;;  %v317_v2 = vsel %vm316_vm0, %v5429_v0, 0.0  ;;  %v320_v7 = vsel %vm316_vm0, %v5434_v1, 0.0  ;;  %v414_v30 = vld [vmem:[%s5173_s9] sm:$0xff]  ;;  %v415_v31 = vld [vmem:[%s5173_s9 + $0x8] sm:$0xff]  ;;  %v416_v32 = vld [vmem:[%s5173_s9 + $0x10] sm:$0xff]  ;;  %v5155_v33 = vmov 0.0  }
 0x12c   :  { %4242 = vmatprep.subr.bf16.mxu1 %v5155_v33  ;;  %v419_v34 = vpack.c.bf16 %v415_v31, %v414_v30  ;;  %v417_v35 = vld [vmem:[%s5173_s9 + $0x18] sm:$0xff]  ;;  %4258 = vmatprep.subr.bf16.mxu0 %v5155_v33  ;;  %vm5156_vm1 = vmmov 0   ;;  %vm428_vm10 = vcmask 261120   ;;  %s6198_s29 = sld [smem:[#allocation30_spill]]  ;;  %s5157_s21 = smov 120  }
 0x12d   :  { %4246 = vmatprep.mubr.msk.bf16.mxu1 %vm5156_vm1, %v5155_v33  ;;  %4262 = vmatprep.mubr.msk.bf16.mxu0 %vm5156_vm1, %v5155_v33  ;;  %v420_v36 = vpack.c.bf16 %v417_v35, %v416_v32  ;;  %s6199_s23 = sld [smem:[#allocation31_spill]]  ;;  %s5158_s0 = smov 104  }
 0x12e   :  { %4243 = vmatpush3.bf16.msra.mxu1 %v419_v34  ;;  %s6200_s6 = sld [smem:[#allocation33_spill]]  ;;  %s6201_s3 = sld [smem:[#allocation34_spill]] }
 0x12f   :  { %361 = vrot.lane.b32.xlu0 %v5434_v1, %s5154_s8  ;;  %4244 = vmatprep.subr.bf16.mxu1 %v5155_v33  ;;  %s6202_s26 = sld [smem:[#allocation32_spill]]  ;;  %s6203_s28 = sld [smem:[#allocation51_spill]] }
 0x130   :  { %s6204_s1 = sld [smem:[#allocation52_spill]]  ;;  %s6205_s2 = sld [smem:[#allocation35_spill]] }
 0x131   :  { %s6206_s7 = sld [smem:[#allocation36_spill]]  ;;  %s6207_s25 = sld [smem:[#allocation37_spill]] }
 0x132   :  { %4245 = vmatpush3.bf16.msra.mxu1 %v420_v36  ;;  %s6208_s10 = sld [smem:[#allocation41_spill]]  ;;  %s6209_s20 = sld [smem:[#allocation39_spill]] }
 0x133   :  { %4250 = vmatprep.subr.bf16.mxu1 %v5155_v33  ;;  %s6210_s11 = sld [smem:[#allocation40_spill]]  ;;  %s6211_s19 = sld [smem:[#allocation42_spill]] }
 0x134   :  { %s6212_s15 = sld [smem:[#allocation38_spill]]  ;;  %s6213_s16 = sld [smem:[#allocation43_spill]] }
 0x135   :  { %s6214_s18 = sld [smem:[#allocation44_spill]]  ;;  %s6215_s30 = sld [smem:[#allocation47_spill]] }
 0x136   :  { %s6216_s14 = sld [smem:[#allocation49_spill]]  ;;  %s5159_s22 = smov 16  }
 0x14e   :  { %318 = vadd.xlane.f32.xlu0 %v317_v2 }
 0x19d   :  { %v360_v3 = vpop.permute.xlu0 %359 }
 0x19e   :  { %v365_v4 = vsel %vm316_vm0, %v360_v3, 0.0 }
 0x19f   :  { %366 = vadd.xlane.f32.xlu1 %v365_v4 }
 0x1a1   :  { %v362_v5 = vpop.permute.xlu0 %361 }
 0x1a2   :  { %v368_v6 = vsel %vm316_vm0, %v362_v5, 0.0 }
 0x1a3   :  { %369 = vadd.xlane.f32.xlu1 %v368_v6 }
 0x1a7   :  { %321 = vadd.xlane.f32.xlu1 %v320_v7 }
 0x1db   :  { %v319_v21 = vpop.xlane.xlu0 %318 }
 0x1dc   :  { %v324_v22 = vmul.f32 0.0625, %v319_v21 }
 0x1de   :  { %v326_v23 = vsub.f32 %v5429_v0, %v324_v22 }
 0x1e0   :  { %v328_v24 = vmul.f32 %v326_v23, %v326_v23 }
 0x1e2   :  { %v330_v25 = vsel %vm316_vm0, %v328_v24, 0.0 }
 0x22c   :  { %v367_v8 = vpop.xlane.xlu1 %366 }
 0x22d   :  { %v371_v9 = vmul.f32 0.0625, %v367_v8 }
 0x22f   :  { %v373_v10 = vsub.f32 %v5429_v0, %v371_v9 }
 0x230   :  { %v370_v11 = vpop.xlane.xlu1 %369 }
 0x231   :  { %v372_v12 = vmul.f32 0.0625, %v370_v11  ;;  %v375_v13 = vmul.f32 %v373_v10, %v373_v10 }
 0x233   :  { %v374_v14 = vsub.f32 %v5434_v1, %v372_v12  ;;  %379 = vrot.lane.b32.xlu1 %v375_v13, %s5154_s8 }
 0x234   :  { %v322_v15 = vpop.xlane.xlu1 %321 }
 0x235   :  { %v376_v16 = vmul.f32 %v374_v14, %v374_v14  ;;  %v325_v17 = vmul.f32 0.0625, %v322_v15  ;;  %v4006_v14 = vld [vmem:[%s5178_s13] ss:$0 sm:$0xff]  ;;  %s6196_s13 = sld [smem:[#allocation28_spill]] }
 0x236   :  { %v413_v15 = vld [vmem:[%s5183_s17] sm:$0xff]  ;;  %s6197_s17 = sld [smem:[#allocation29_spill]] }
 0x237   :  { %381 = vrot.lane.b32.xlu1 %v376_v16, %s5154_s8  ;;  %v327_v18 = vsub.f32 %v5434_v1, %v325_v17 }
 0x239   :  { %v329_v19 = vmul.f32 %v327_v18, %v327_v18 }
 0x23b   :  { %v333_v20 = vsel %vm316_vm0, %v329_v19, 0.0 }
 0x23c   :  { %334 = vadd.xlane.f32.xlu0 %v333_v20 }
 0x25b   :  { %331 = vadd.xlane.f32.xlu1 %v330_v25 }
 0x2a5   :  { %v380_v26 = vpop.permute.xlu1 %379 }
 0x2a6   :  { %v385_v27 = vsel %vm316_vm0, %v380_v26, 0.0 }
 0x2a7   :  { %386 = vadd.xlane.f32.xlu0 %v385_v27 }
 0x2a9   :  { %v382_v28 = vpop.permute.xlu1 %381 }
 0x2aa   :  { %v388_v29 = vsel %vm316_vm0, %v382_v28, 0.0 }
 0x2ab   :  { %389 = vadd.xlane.f32.xlu0 %v388_v29 }
 0x2c9   :  { %v335_v37 = vpop.xlane.xlu0 %334 }
 0x2ca   :  { %v338_v39 = vmul.f32 0.06666667, %v335_v37 }
 0x2cc   :  { %4702 = vrsqrt.f32 %v338_v39  ;;  %vm348_vm2 = vcmp.eq.f32.partialorder %v338_v39, inf  ;;  %v351_v49 = vand.u32 2147483648, %v338_v39  ;;  %vm350_vm4 = vcmp.eq.f32.partialorder %v338_v39, 0.0 }
 0x2d6   :  { %v4703_v45 = vpop.eup %4702 }
 0x2d7   :  { %v347_v47 = vmul.f32 %v4703_v45, %v338_v39 }
 0x2d9   :  { %v349_v51 = vsel %vm348_vm2, %v338_v39, %v347_v47 }
 0x2da   :  { %v352_v56 = vsel %vm350_vm4, %v351_v49, %v349_v51  ;;  %vm881_vm4 = vcmask 1043456  }
 0x2e8   :  { %v332_v38 = vpop.xlane.xlu1 %331 }
 0x2e9   :  { %v337_v40 = vmul.f32 0.06666667, %v332_v38 }
 0x2eb   :  { %4704 = vrsqrt.f32 %v337_v40  ;;  %vm341_vm3 = vcmp.eq.f32.partialorder %v337_v40, inf  ;;  %v344_v52 = vand.u32 2147483648, %v337_v40  ;;  %vm343_vm5 = vcmp.eq.f32.partialorder %v337_v40, 0.0 }
 0x2f5   :  { %v4705_v46 = vpop.eup %4704 }
 0x2f6   :  { %v340_v48 = vmul.f32 %v4705_v46, %v337_v40 }
 0x2f8   :  { %v342_v53 = vsel %vm341_vm3, %v337_v40, %v340_v48  ;;  %vm759_vm3 = vcmask 64512  }
 0x2f9   :  { %v345_v59 = vsel %vm343_vm5, %v344_v52, %v342_v53 }
 0x334   :  { %v387_v41 = vpop.xlane.xlu0 %386 }
 0x335   :  { %v391_v42 = vmul.f32 0.06666667, %v387_v41 }
 0x337   :  { %4706 = vrsqrt.f32 %v391_v42  ;;  %vm395_vm6 = vcmp.eq.f32.partialorder %v391_v42, inf  ;;  %v398_v55 = vand.u32 2147483648, %v391_v42  ;;  %vm397_vm7 = vcmp.eq.f32.partialorder %v391_v42, 0.0 }
 0x338   :  { %v390_v43 = vpop.xlane.xlu0 %389 }
 0x339   :  { %v392_v44 = vmul.f32 0.06666667, %v390_v43 }
 0x33b   :  { %4708 = vrsqrt.f32 %v392_v44  ;;  %vm402_vm8 = vcmp.eq.f32.partialorder %v392_v44, inf  ;;  %v405_v62 = vand.u32 2147483648, %v392_v44  ;;  %vm404_vm9 = vcmp.eq.f32.partialorder %v392_v44, 0.0 }
 0x341   :  { %v4707_v50 = vpop.eup %4706 }
 0x342   :  { %v394_v54 = vmul.f32 %v4707_v50, %v391_v42 }
 0x344   :  { %v396_v57 = vsel %vm395_vm6, %v391_v42, %v394_v54  ;;  %vm2037_vm6 = vcmask 1040384  }
 0x345   :  { %v4709_v58 = vpop.eup %4708  ;;  %v399_v60 = vsel %vm397_vm7, %v398_v55, %v396_v57 }
 0x346   :  { %4710 = vrcp.f32 %v399_v60  ;;  %v401_v61 = vmul.f32 %v4709_v58, %v392_v44 }
 0x347   :  { %4712 = vrcp.f32 %v352_v56  ;;  %v4008_v56 = vld [vmem:[#allocation2] ss:$0 sm:$0xff] }
 0x348   :  { %4714 = vrcp.f32 %v345_v59  ;;  %v403_v63 = vsel %vm402_vm8, %v392_v44, %v401_v61  ;;  %v4009_v59 = vld [vmem:[#allocation4] ss:$0 sm:$0xff]  ;;  %vm2044_vm8 = vcmask 1046528  }
 0x349   :  { %v406_v2 = vsel %vm404_vm9, %v405_v62, %v403_v63 }
 0x34a   :  { %4716 = vrcp.f32 %v406_v2 }
 0x350   :  { %v4711_v3 = vpop.eup %4710 }
 0x351   :  { %v4713_v4 = vpop.eup %4712  ;;  %v409_v6 = vmul.f32 %v4711_v3, %v5429_v0 }
 0x352   :  { %v4715_v5 = vpop.eup %4714  ;;  %v356_v9 = vmul.f32 %v4713_v4, %v5434_v1 }
 0x353   :  { %v355_v8 = vmul.f32 %v4715_v5, %v5429_v0 }
 0x354   :  { %v4717_v7 = vpop.eup %4716 }
 0x355   :  { %v410_v10 = vmul.f32 %v4717_v7, %v5434_v1  ;;  %v411_v11 = vsel %vm316_vm0, %v355_v8, %v409_v6 }
 0x357   :  { %v412_v12 = vsel %vm316_vm0, %v356_v9, %v410_v10 }
 0x358   :  { %v418_v13 = vpack.c.bf16 %v412_v12, %v411_v11 }
 0x35a   :  { %4247 = vmatmul.mubr.msk.bf16.vlgmr.msra.gmra.mrb[0].mxu1 %vm428_vm10, %v418_v13 }
 0x35b   :  { %4254 = vmatprep.mubr.msk.bf16.mxu1 %vm5156_vm1, %v5155_v33 }
 0x42d   :  { %v466_v16 = vpop.f32.mrb[0].mxu1 }
 0x42e   :  { %v467_v17 = vadd.f32 %v4006_v14, %v466_v16  ;;  %v4248_v0 = vpop.f32.mrb[1].mxu1 }
 0x42f   :  { %v469_v18 = vpop.f32.mrb[2].mxu1  ;;  %v586_v0 = vld [vmem:[%s6196_s13 + $0x8] sm:$0xff] }
 0x430   :  { %v5477_v19 = vadd.f32 %v467_v17, %v413_v15  ;;  %v470_v1 = vadd.f32 %v4006_v14, %v469_v18  ;;  %v4249_v20 = vpop.f32.mrb[3].mxu1  ;;  %v585_v17 = vld [vmem:[%s6196_s13] sm:$0xff] }
 0x431   :  { %v643_v18 = vld [vmem:[%s6197_s17] sm:$0xff]  ;;  %v644_v20 = vld [vmem:[%s6197_s17 + $0x8] sm:$0xff] }
 0x432   :  { %v5479_v21 = vadd.f32 %v470_v1, %v413_v15  ;;  %v477_v22 = vsel %vm428_vm10, %v5477_v19, 0.0  ;;  %v590_v1 = vpack.c.bf16 %v586_v0, %v585_v17 }
 0x433   :  { %478 = vadd.xlane.f32.xlu0 %v477_v22  ;;  %v587_v22 = vld [vmem:[%s6196_s13 + $0x10] sm:$0xff] }
 0x434   :  { %v480_v23 = vsel %vm428_vm10, %v5479_v21, 0.0  ;;  %4251 = vmatpush3.bf16.msra.mxu1 %v590_v1 }
 0x435   :  { %4252 = vmatprep.subr.bf16.mxu1 %v5155_v33 }
 0x437   :  { %481 = vadd.xlane.f32.xlu0 %v480_v23  ;;  %v588_v23 = vld [vmem:[%s6196_s13 + $0x18] sm:$0xff]  ;;  %s6220_s13 = sld [smem:[#allocation50_spill]] }
 0x4c0   :  { %v479_v24 = vpop.xlane.xlu0 %478 }
 0x4c1   :  { %v484_v25 = vmul.f32 0.03125, %v479_v24  ;;  %v647_v24 = vpack.c.bf16 %v644_v20, %v643_v18 }
 0x4c3   :  { %v486_v26 = vsub.f32 %v5477_v19, %v484_v25  ;;  %v645_v25 = vld [vmem:[%s6197_s17 + $0x10] sm:$0xff]  ;;  %4259 = vmatpush3.bf16.msra.mxu0 %v647_v24 }
 0x4c4   :  { %v482_v27 = vpop.xlane.xlu0 %481  ;;  %4260 = vmatprep.subr.bf16.mxu0 %v5155_v33 }
 0x4c5   :  { %v485_v28 = vmul.f32 0.03125, %v482_v27  ;;  %v488_v29 = vmul.f32 %v486_v26, %v486_v26  ;;  %v591_v27 = vpack.c.bf16 %v588_v23, %v587_v22 }
 0x4c7   :  { %v487_v30 = vsub.f32 %v5479_v21, %v485_v28  ;;  %v490_v31 = vsel %vm428_vm10, %v488_v29, 0.0  ;;  %4253 = vmatpush3.bf16.msra.mxu1 %v591_v27 }
 0x4c8   :  { %491 = vadd.xlane.f32.xlu0 %v490_v31  ;;  %4266 = vmatprep.subr.bf16.mxu1 %v5155_v33 }
 0x4c9   :  { %v489_v32 = vmul.f32 %v487_v30, %v487_v30 }
 0x4cb   :  { %v493_v34 = vsel %vm428_vm10, %v489_v32, 0.0 }
 0x4cc   :  { %494 = vadd.xlane.f32.xlu0 %v493_v34 }
 0x555   :  { %v492_v35 = vpop.xlane.xlu0 %491 }
 0x556   :  { %v525_v36 = vmul.f32 0.032258064, %v492_v35  ;;  %v496_v48 = vmul.f32 0.03125, %v492_v35 }
 0x558   :  { %vm527_vm11 = vcmp.lt.f32.partialorder %v525_v36, 1e-05  ;;  %v498_v50 = vadd.f32 1e-05, %v496_v48 }
 0x559   :  { %v495_v37 = vpop.xlane.xlu0 %494  ;;  %v529_v39 = vsel %vm527_vm11, 1.0, %v5155_v33 }
 0x55a   :  { %v526_v38 = vmul.f32 0.032258064, %v495_v37  ;;  %v497_v49 = vmul.f32 0.03125, %v495_v37  ;;  %4718 = vrsqrt.f32 %v498_v50  ;;  %v697_v50 = vld [vmem:[%s6198_s29] sm:$0xff] }
 0x55c   :  { %vm528_vm12 = vcmp.lt.f32.partialorder %v526_v38, 1e-05  ;;  %v499_v51 = vadd.f32 1e-05, %v497_v49 }
 0x55d   :  { %v530_v40 = vsel %vm528_vm12, 1.0, %v5155_v33  ;;  %vm2280_vm12 = vcmask 523264  }
 0x55e   :  { %v531_v41 = vmax.f32 %v529_v39, %v530_v40  ;;  %4720 = vrsqrt.f32 %v499_v51  ;;  %v698_v51 = vld [vmem:[%s6198_s29 + $0x8] sm:$0xff] }
 0x560   :  { %v532_v42 = vrot.slane %v531_v41, 4 }
 0x562   :  { %v533_v43 = vmax.f32 %v531_v41, %v532_v42 }
 0x564   :  { %v534_v44 = vrot.slane %v533_v43, 2  ;;  %v4719_v52 = vpop.eup %4718 }
 0x565   :  { %v502_v54 = vmul.f32 %v4719_v52, %v486_v26  ;;  %v646_v26 = vld [vmem:[%s6197_s17 + $0x18] sm:$0xff] }
 0x566   :  { %v535_v45 = vmax.f32 %v533_v43, %v534_v44  ;;  %v648_v28 = vpack.c.bf16 %v646_v26, %v645_v25 }
 0x567   :  { %v510_v57 = vmul.f32 %v4008_v56, %v502_v54  ;;  %v701_v54 = vpack.c.bf16 %v698_v51, %v697_v50 }
 0x568   :  { %v536_v46 = vrot.slane %v535_v45, 1  ;;  %v4721_v53 = vpop.eup %4720  ;;  %4261 = vmatpush3.bf16.msra.mxu0 %v648_v28 }
 0x569   :  { %v503_v55 = vmul.f32 %v4721_v53, %v487_v30  ;;  %v518_v60 = vadd.f32 %v4009_v59, %v510_v57  ;;  %4274 = vmatprep.subr.bf16.mxu0 %v5155_v33  ;;  %v700_v57 = vld [vmem:[%s6198_s29 + $0x18] sm:$0xff] }
 0x56a   :  { %v537_v47 = vmax.f32 %v535_v45, %v536_v46 }
 0x56b   :  { %v511_v58 = vmul.f32 %v4008_v56, %v503_v55  ;;  %v4010_v62 = vclamps-f32 %v518_v60, 10.0  ;;  %v699_v56 = vld [vmem:[%s6198_s29 + $0x10] sm:$0xff] }
 0x56c   :  { %4638 = vpush %v537_v47 }
 0x56d   :  { %v519_v61 = vadd.f32 %v4009_v59, %v511_v58  ;;  %v702_v58 = vpack.c.bf16 %v700_v57, %v699_v56  ;;  %v4014_v59 = vld [vmem:[#allocation7] ss:$0 sm:$0xff] }
 0x56f   :  { %v4011_v63 = vclamps-f32 %v519_v61, 10.0 }
 0x59d   :  { %s4639_s5 = spop %4638 }
 0x59e   :  { %s539_s9 = smul.f32 1e-05, %s4639_s5  ;;  %s6218_s5 = sld [smem:[#allocation46_spill]] }
 0x5a0   :  { %v540_v2 = vstv %s539_s9  ;;  %s6219_s9 = sld [smem:[#allocation48_spill]] }
 0x5a1   :  { %v5491_v3 = vadd.f32 %v4010_v62, %v540_v2  ;;  %v5493_v4 = vadd.f32 %v4011_v63, %v540_v2 }
 0x5a3   :  { %v543_v5 = vsel %vm428_vm10, %v5491_v3, 0.0  ;;  %v546_v6 = vsel %vm428_vm10, %v5493_v4, 0.0 }
 0x5a4   :  { %544 = vadd.xlane.f32.xlu0 %v543_v5  ;;  %547 = vadd.xlane.f32.xlu1 %v546_v6 }
 0x631   :  { %v545_v7 = vpop.xlane.xlu0 %544  ;;  %v548_v8 = vpop.xlane.xlu1 %547 }
 0x632   :  { %v549_v9 = vmul.f32 0.03125, %v545_v7  ;;  %v550_v10 = vmul.f32 0.03125, %v548_v8 }
 0x634   :  { %v551_v11 = vsub.f32 %v5491_v3, %v549_v9  ;;  %v552_v12 = vsub.f32 %v5493_v4, %v550_v10  ;;  %v4012_v9 = vld [vmem:[#allocation6] ss:$0 sm:$0xff] }
 0x636   :  { %v553_v13 = vmul.f32 %v551_v11, %v551_v11  ;;  %v554_v14 = vmul.f32 %v552_v12, %v552_v12  ;;  %v4016_v12 = vld [vmem:[#allocation9] ss:$0 sm:$0xff] }
 0x638   :  { %v555_v15 = vsel %vm428_vm10, %v553_v13, 0.0  ;;  %v558_v16 = vsel %vm428_vm10, %v554_v14, 0.0 }
 0x639   :  { %556 = vadd.xlane.f32.xlu0 %v555_v15  ;;  %559 = vadd.xlane.f32.xlu1 %v558_v16 }
 0x6c6   :  { %v557_v29 = vpop.xlane.xlu0 %556  ;;  %v560_v30 = vpop.xlane.xlu1 %559 }
 0x6c7   :  { %v561_v31 = vmul.f32 0.032258064, %v557_v29  ;;  %v562_v32 = vmul.f32 0.032258064, %v560_v30 }
 0x6c9   :  { %4722 = vrsqrt.f32 %v561_v31  ;;  %vm565_vm13 = vcmp.eq.f32.partialorder %v561_v31, inf  ;;  %v568_v37 = vand.u32 2147483648, %v561_v31  ;;  %vm567_vm14 = vcmp.eq.f32.partialorder %v561_v31, 0.0 }
 0x6ca   :  { %4724 = vrsqrt.f32 %v562_v32  ;;  %vm572_vm15 = vcmp.eq.f32.partialorder %v562_v32, inf  ;;  %v575_v40 = vand.u32 2147483648, %v562_v32  ;;  %vm574_vm2 = vcmp.eq.f32.partialorder %v562_v32, 0.0 }
 0x6d3   :  { %v4723_v34 = vpop.eup %4722 }
 0x6d4   :  { %v4725_v35 = vpop.eup %4724  ;;  %v564_v36 = vmul.f32 %v4723_v34, %v561_v31 }
 0x6d5   :  { %v571_v38 = vmul.f32 %v4725_v35, %v562_v32 }
 0x6d6   :  { %v566_v39 = vsel %vm565_vm13, %v561_v31, %v564_v36 }
 0x6d7   :  { %v569_v41 = vsel %vm567_vm14, %v568_v37, %v566_v39  ;;  %v573_v42 = vsel %vm572_vm15, %v562_v32, %v571_v38 }
 0x6d8   :  { %v577_v43 = vadd.f32 1e-05, %v569_v41  ;;  %v576_v44 = vsel %vm574_vm2, %v575_v40, %v573_v42 }
 0x6d9   :  { %v578_v45 = vadd.f32 1e-05, %v576_v44 }
 0x6da   :  { %4726 = vrcp.f32 %v577_v43 }
 0x6db   :  { %4728 = vrcp.f32 %v578_v45 }
 0x6e4   :  { %v4727_v46 = vpop.eup %4726 }
 0x6e5   :  { %v4729_v47 = vpop.eup %4728  ;;  %v581_v48 = vmul.f32 %v4727_v46, %v5491_v3 }
 0x6e6   :  { %v582_v49 = vmul.f32 %v4729_v47, %v5493_v4 }
 0x6e7   :  { %v583_v52 = vmul.f32 0.5, %v581_v48 }
 0x6e8   :  { %v584_v53 = vmul.f32 0.5, %v582_v49 }
 0x6ea   :  { %v589_v55 = vpack.c.bf16 %v584_v53, %v583_v52 }
 0x6ec   :  { %4255 = vmatmul.mubr.msk.bf16.vlgmr.msra.gmra.mrb[4].mxu1 %vm428_vm10, %v589_v55  ;;  %4263 = vmatmul.mubr.msk.bf16.vlgmr.msra.gmra.mrb[0].mxu0 %vm428_vm10, %v589_v55 }
 0x6ed   :  { %4267 = vmatpush3.bf16.msra.mxu1 %v701_v54  ;;  %4270 = vmatprep.mubr.msk.bf16.mxu1 %vm5156_vm1, %v5155_v33 }
 0x6ee   :  { %4268 = vmatprep.subr.bf16.mxu1 %v5155_v33  ;;  %4276 = vmatprep.mubr.msk.bf16.mxu0 %vm5156_vm1, %v5155_v33 }
 0x6f1   :  { %4269 = vmatpush3.bf16.msra.mxu1 %v702_v58 }
 0x6f2   :  { %4280 = vmatprep.subr.bf16.mxu1 %v5155_v33 }
 0x6f4   :  { %4271 = vmatmul.mubr.msk.bf16.vlgmr.msra.gmra.mrb[8].mxu1 %vm428_vm10, %v589_v55 }
 0x6f5   :  { %4282 = vmatprep.mubr.msk.bf16.mxu1 %vm5156_vm1, %v5155_v33 }
 0x7bf   :  { %v636_v60 = vpop.f32.mrb[4].mxu1  ;;  %v690_v61 = vpop.f32.mrb[0].mxu0 }
 0x7c0   :  { %v691_v62 = vadd.f32 %v4014_v59, %v690_v61  ;;  %v4256_v63 = vpop.f32.mrb[5].mxu1  ;;  %v4264_v2 = vpop.f32.mrb[1].mxu0  ;;  %v637_v13 = vadd.f32 %v4012_v9, %v636_v60 }
 0x7c1   :  { %v639_v3 = vpop.f32.mrb[6].mxu1  ;;  %v693_v4 = vpop.f32.mrb[2].mxu0 }
 0x7c2   :  { %v5532_v5 = vpack.c.bf16 %v691_v62, %v691_v62  ;;  %v694_v6 = vadd.f32 %v4014_v59, %v693_v4  ;;  %v4257_v7 = vpop.f32.mrb[7].mxu1  ;;  %v4265_v8 = vpop.f32.mrb[3].mxu0  ;;  %v640_v16 = vadd.f32 %v4012_v9, %v639_v3  ;;  %v5542_v1 = vpack.c.bf16 %v637_v13, %v637_v13 }
 0x7c4   :  { %v5534_v10 = vpack.c.bf16 %v694_v6, %v694_v6  ;;  %v764_v11 = vsel %vm759_vm3, %v5532_v5, 0  ;;  %v5546_v24 = vpack.c.bf16 %v640_v16, %v640_v16 }
 0x7c5   :  { %4275 = vmatpush3.bf16.xpose.msra.mxu0 %v764_v11 }
 0x7c6   :  { %v810_v14 = vsel %vm759_vm3, %v5534_v10, 0  ;;  %4286 = vmatprep.subr.bf16.mxu0 %v5155_v33 }
 0x7c7   :  { %v744_v15 = vpop.f32.mrb[8].mxu1  ;;  %4281 = vmatpush3.bf16.xpose.msra.mxu1 %v810_v14 }
 0x7c8   :  { %v745_v17 = vadd.f32 %v4016_v12, %v744_v15  ;;  %v4272_v0 = vpop.f32.mrb[9].mxu1  ;;  %4292 = vmatprep.subr.bf16.mxu1 %v5155_v33 }
 0x7c9   :  { %v747_v18 = vpop.f32.mrb[10].mxu1 }
 0x7ca   :  { %v5544_v20 = vpack.c.bf16 %v745_v17, %v745_v17  ;;  %v748_v22 = vadd.f32 %v4016_v12, %v747_v18  ;;  %v4273_v23 = vpop.f32.mrb[11].mxu1 }
 0x7cc   :  { %v5548_v25 = vpack.c.bf16 %v748_v22, %v748_v22  ;;  %4277 = vmatmul.mubr.msk.bf16.vlgmr.msra.gmra.mrb[4].mxu0 %vm759_vm3, %v5542_v1  ;;  %v883_v26 = vsel %vm881_vm4, %v5544_v20, 0 }
 0x7cd   :  { %4287 = vmatpush3.bf16.msra.mxu0 %v883_v26  ;;  %4288 = vmatprep.mubr.msk.bf16.mxu0 %vm5156_vm1, %v5155_v33 }
 0x7ce   :  { %4283 = vmatmul.mubr.msk.bf16.vlgmr.msra.gmra.mrb[12].mxu1 %vm759_vm3, %v5546_v24  ;;  %v929_v27 = vsel %vm881_vm4, %v5548_v25, 0  ;;  %4298 = vmatprep.subr.bf16.mxu0 %v5155_v33 }
 0x7cf   :  { %4293 = vmatpush3.bf16.msra.mxu1 %v929_v27  ;;  %4294 = vmatprep.mubr.msk.bf16.mxu1 %vm5156_vm1, %v5155_v33 }
 0x7d0   :  { %4304 = vmatprep.subr.bf16.mxu1 %v5155_v33 }
 0x89f   :  { %v800_v28 = vpop.f32.mrb[4].mxu0 }
 0x8a0   :  { %v4278_v29 = vpop.f32.mrb[5].mxu0  ;;  %v852_v30 = vsel %vm759_vm3, %v800_v28, -inf }
 0x8a1   :  { %853 = vmax.xlane.f32.xlu0 %v852_v30  ;;  %v803_v31 = vpop.f32.mrb[6].mxu0  ;;  %v846_v32 = vpop.f32.mrb[12].mxu1 }
 0x8a2   :  { %v4279_v34 = vpop.f32.mrb[7].mxu0  ;;  %v4284_v35 = vpop.f32.mrb[13].mxu1  ;;  %v855_v36 = vsel %vm759_vm3, %v846_v32, -inf }
 0x8a3   :  { %856 = vmax.xlane.f32.xlu1 %v855_v36  ;;  %v849_v37 = vpop.f32.mrb[14].mxu1 }
 0x8a4   :  { %v4285_v38 = vpop.f32.mrb[15].mxu1 }
 0x92e   :  { %v854_v39 = vpop.xlane.xlu0 %853 }
 0x92f   :  { %v858_v40 = vsub.f32 %v800_v28, %v854_v39 }
 0x930   :  { %v857_v41 = vpop.xlane.xlu1 %856 }
 0x931   :  { %v860_v42 = vmul.f32 1.442695, %v858_v40  ;;  %v859_v43 = vsub.f32 %v846_v32, %v857_v41 }
 0x933   :  { %4730 = vpow2.f32 %v860_v42  ;;  %v862_v44 = vmul.f32 1.442695, %v859_v43  ;;  %v752_v43 = vld [vmem:[%s6199_s23 + $0x8] sm:$0xff] }
 0x935   :  { %4732 = vpow2.f32 %v862_v44  ;;  %v1200_v44 = vpack.c.bf16 %v752_v43, %v752_v43  ;;  %v753_v43 = vld [vmem:[%s6199_s23 + $0x10] sm:$0xff] }
 0x93d   :  { %v4731_v45 = vpop.eup %4730 }
 0x93e   :  { %v864_v46 = vsel %vm759_vm3, %v4731_v45, 0.0 }
 0x93f   :  { %v4733_v47 = vpop.eup %4732  ;;  %865 = vadd.xlane.f32.xlu0 %v864_v46 }
 0x940   :  { %v867_v48 = vsel %vm759_vm3, %v4733_v47, 0.0 }
 0x941   :  { %868 = vadd.xlane.f32.xlu1 %v867_v48 }
 0x952   :  { %1029 = vrot.lane.b32.xlu1 %v5534_v10, %s5157_s21 }
 0x955   :  { %977 = vrot.lane.b32.xlu0 %v5532_v5, %s5157_s21 }
 0x956   :  { %974 = vrot.lane.b32.xlu1 %v5542_v1, %s5157_s21 }
 0x959   :  { %1026 = vrot.lane.b32.xlu0 %v5546_v24, %s5157_s21 }
 0x9cc   :  { %v866_v49 = vpop.xlane.xlu0 %865 }
 0x9cd   :  { %4734 = vrcp.f32 %v866_v49 }
 0x9ce   :  { %v869_v50 = vpop.xlane.xlu1 %868 }
 0x9cf   :  { %4736 = vrcp.f32 %v869_v50  ;;  %v1205_v50 = vsel %vm881_vm4, %v1200_v44, 0  ;;  %v1469_v44 = vpack.c.bf16 %v753_v43, %v753_v43 }
 0x9d0   :  { %v978_v54 = vpop.permute.xlu0 %977 }
 0x9d1   :  { %v983_v58 = vsel %vm759_vm3, %v978_v54, 0 }
 0x9d2   :  { %v1030_v57 = vpop.permute.xlu1 %1029 }
 0x9d3   :  { %v1035_v60 = vsel %vm759_vm3, %v1030_v57, 0 }
 0x9d4   :  { %v1027_v62 = vpop.permute.xlu0 %1026 }
 0x9d6   :  { %v975_v61 = vpop.permute.xlu1 %974 }
 0x9d7   :  { %v4735_v51 = vpop.eup %4734 }
 0x9d8   :  { %v872_v52 = vmul.f32 %v4735_v51, %v4731_v45 }
 0x9d9   :  { %v4737_v53 = vpop.eup %4736 }
 0x9da   :  { %v873_v55 = vmul.f32 %v4737_v53, %v4733_v47  ;;  %v874_v56 = vpack.c.bf16 %v872_v52, %v872_v52 }
 0x9dc   :  { %4289 = vmatmul.mubr.msk.bf16.vlgmr.msra.gmra.mrb[8].mxu0 %vm759_vm3, %v874_v56  ;;  %v875_v59 = vpack.c.bf16 %v873_v55, %v873_v55 }
 0x9dd   :  { %4299 = vmatpush3.bf16.xpose.msra.mxu0 %v983_v58  ;;  %4300 = vmatprep.mubr.msk.bf16.mxu0 %vm5156_vm1, %v5155_v33 }
 0x9de   :  { %4295 = vmatmul.mubr.msk.bf16.vlgmr.msra.gmra.mrb[16].mxu1 %vm759_vm3, %v875_v59  ;;  %4310 = vmatprep.subr.bf16.mxu0 %v5155_v33 }
 0x9df   :  { %4305 = vmatpush3.bf16.xpose.msra.mxu1 %v1035_v60  ;;  %4306 = vmatprep.mubr.msk.bf16.mxu1 %vm5156_vm1, %v5155_v33 }
 0x9e0   :  { %4316 = vmatprep.subr.bf16.mxu1 %v5155_v33 }
 0x9e4   :  { %4301 = vmatmul.mubr.msk.bf16.vlgmr.msra.gmra.mrb[12].mxu0 %vm759_vm3, %v975_v61 }
 0x9e5   :  { %4312 = vmatprep.mubr.msk.bf16.mxu0 %vm5156_vm1, %v5155_v33 }
 0x9e6   :  { %4307 = vmatmul.mubr.msk.bf16.vlgmr.msra.gmra.mrb[20].mxu1 %vm759_vm3, %v1027_v62 }
 0x9e7   :  { %4318 = vmatprep.mubr.msk.bf16.mxu1 %vm5156_vm1, %v5155_v33 }
 0xaaf   :  { %v5592_v63 = vpop.f32.mrb[8].mxu0 }
 0xab0   :  { %v4290_v2 = vpop.f32.mrb[9].mxu0 }
 0xab1   :  { %v922_v3 = vpop.f32.mrb[10].mxu0  ;;  %v5594_v4 = vpop.f32.mrb[16].mxu1 }
 0xab2   :  { %v971_v6 = vpack.c.bf16 %v5594_v4, %v5592_v63  ;;  %v4291_v7 = vpop.f32.mrb[11].mxu0  ;;  %v4296_v8 = vpop.f32.mrb[17].mxu1 }
 0xab3   :  { %v968_v9 = vpop.f32.mrb[18].mxu1 }
 0xab4   :  { %v4297_v11 = vpop.f32.mrb[19].mxu1 }
 0xab7   :  { %v1019_v12 = vpop.f32.mrb[12].mxu0 }
 0xab8   :  { %v4302_v13 = vpop.f32.mrb[13].mxu0  ;;  %v1077_v14 = vsel %vm759_vm3, %v1019_v12, -inf }
 0xab9   :  { %1078 = vmax.xlane.f32.xlu1 %v1077_v14  ;;  %v1022_v15 = vpop.f32.mrb[14].mxu0  ;;  %v1071_v16 = vpop.f32.mrb[20].mxu1 }
 0xaba   :  { %v4303_v17 = vpop.f32.mrb[15].mxu0  ;;  %v4308_v0 = vpop.f32.mrb[21].mxu1  ;;  %v1080_v18 = vsel %vm759_vm3, %v1071_v16, -inf }
 0xabb   :  { %1081 = vmax.xlane.f32.xlu0 %v1080_v18  ;;  %v1074_v22 = vpop.f32.mrb[22].mxu1 }
 0xabc   :  { %v4309_v23 = vpop.f32.mrb[23].mxu1 }
 0xb46   :  { %v1079_v26 = vpop.xlane.xlu1 %1078 }
 0xb47   :  { %v1083_v27 = vsub.f32 %v1019_v12, %v1079_v26 }
 0xb48   :  { %v1082_v28 = vpop.xlane.xlu0 %1081 }
 0xb49   :  { %v1085_v29 = vmul.f32 1.442695, %v1083_v27  ;;  %v1084_v30 = vsub.f32 %v1071_v16, %v1082_v28 }
 0xb4b   :  { %4738 = vpow2.f32 %v1085_v29  ;;  %v1087_v31 = vmul.f32 1.442695, %v1084_v30 }
 0xb4d   :  { %4740 = vpow2.f32 %v1087_v31 }
 0xb55   :  { %v4739_v32 = vpop.eup %4738 }
 0xb56   :  { %v1089_v34 = vsel %vm759_vm3, %v4739_v32, 0.0 }
 0xb57   :  { %v4741_v35 = vpop.eup %4740  ;;  %1090 = vadd.xlane.f32.xlu0 %v1089_v34 }
 0xb58   :  { %v1092_v36 = vsel %vm759_vm3, %v4741_v35, 0.0 }
 0xb59   :  { %1093 = vadd.xlane.f32.xlu1 %v1092_v36 }
 0xb6a   :  { %1151 = vrot.lane.b32.xlu1 %v5548_v25, %s5157_s21 }
 0xb6d   :  { %1102 = vrot.lane.b32.xlu0 %v5544_v20, %s5157_s21 }
 0xb6e   :  { %1250 = vrot.lane.b32.xlu1 %v5532_v5, %s5154_s8 }
 0xb71   :  { %1300 = vrot.lane.b32.xlu0 %v5534_v10, %s5154_s8 }
 0xb72   :  { %1248 = vrot.lane.b32.xlu1 %v5542_v1, %s5154_s8 }
 0xb75   :  { %1298 = vrot.lane.b32.xlu0 %v5546_v24, %s5154_s8 }
 0xbe4   :  { %v1091_v37 = vpop.xlane.xlu0 %1090 }
 0xbe5   :  { %4742 = vrcp.f32 %v1091_v37 }
 0xbe6   :  { %v1094_v38 = vpop.xlane.xlu1 %1093 }
 0xbe7   :  { %4744 = vrcp.f32 %v1094_v38 }
 0xbe8   :  { %v1103_v39 = vpop.permute.xlu0 %1102 }
 0xbe9   :  { %v1108_v40 = vsel %vm881_vm4, %v1103_v39, 0 }
 0xbea   :  { %v1152_v41 = vpop.permute.xlu1 %1151  ;;  %4311 = vmatpush3.bf16.msra.mxu0 %v1108_v40 }
 0xbeb   :  { %v1157_v42 = vsel %vm881_vm4, %v1152_v41, 0  ;;  %4322 = vmatprep.subr.bf16.mxu0 %v5155_v33 }
 0xbec   :  { %4317 = vmatpush3.bf16.msra.mxu1 %v1157_v42  ;;  %v1301_v56 = vpop.permute.xlu0 %1300 }
 0xbed   :  { %4328 = vmatprep.subr.bf16.mxu1 %v5155_v33  ;;  %v1306_v3 = vsel %vm759_vm3, %v1301_v56, 0 }
 0xbee   :  { %v1251_v51 = vpop.permute.xlu1 %1250 }
 0xbef   :  { %v4743_v45 = vpop.eup %4742  ;;  %v1256_v53 = vsel %vm759_vm3, %v1251_v51, 0 }
 0xbf0   :  { %v1097_v46 = vmul.f32 %v4743_v45, %v4739_v32  ;;  %v1299_v12 = vpop.permute.xlu0 %1298  ;;  %v1474_v45 = vsel %vm881_vm4, %v1469_v44, 0 }
 0xbf1   :  { %v4745_v47 = vpop.eup %4744 }
 0xbf2   :  { %v1098_v48 = vmul.f32 %v4745_v47, %v4741_v35  ;;  %v1099_v49 = vpack.c.bf16 %v1097_v46, %v1097_v46  ;;  %v1249_v54 = vpop.permute.xlu1 %1248 }
 0xbf4   :  { %4313 = vmatmul.mubr.msk.bf16.vlgmr.msra.gmra.mrb[16].mxu0 %vm759_vm3, %v1099_v49  ;;  %v1100_v52 = vpack.c.bf16 %v1098_v48, %v1098_v48 }
 0xbf5   :  { %4323 = vmatpush3.bf16.msra.mxu0 %v1205_v50  ;;  %4324 = vmatprep.mubr.msk.bf16.mxu0 %vm5156_vm1, %v5155_v33 }
 0xbf6   :  { %4319 = vmatmul.mubr.msk.bf16.vlgmr.msra.gmra.mrb[24].mxu1 %vm759_vm3, %v1100_v52  ;;  %4334 = vmatprep.subr.bf16.mxu0 %v5155_v33 }
 0xbf7   :  { %4329 = vmatpush3.bf16.xpose.msra.mxu1 %v1256_v53  ;;  %4330 = vmatprep.mubr.msk.bf16.mxu1 %vm5156_vm1, %v5155_v33 }
 0xbf8   :  { %4340 = vmatprep.subr.bf16.mxu1 %v5155_v33 }
 0xbfe   :  { %4331 = vmatmul.mubr.msk.bf16.vlgmr.msra.gmra.mrb[28].mxu1 %vm759_vm3, %v1249_v54 }
 0xbff   :  { %4342 = vmatprep.mubr.msk.bf16.mxu1 %vm5156_vm1, %v5155_v33 }
 0xcc7   :  { %v1144_v55 = vpop.f32.mrb[16].mxu0 }
 0xcc8   :  { %v4314_v57 = vpop.f32.mrb[17].mxu0 }
 0xcc9   :  { %v1147_v58 = vpop.f32.mrb[18].mxu0  ;;  %v1193_v59 = vpop.f32.mrb[24].mxu1 }
 0xcca   :  { %v1199_v60 = vpack.c.bf16 %v1193_v59, %v1144_v55  ;;  %v4315_v61 = vpop.f32.mrb[19].mxu0  ;;  %v4320_v62 = vpop.f32.mrb[25].mxu1 }
 0xccb   :  { %v1196_v2 = vpop.f32.mrb[26].mxu1 }
 0xccc   :  { %v4321_v7 = vpop.f32.mrb[27].mxu1  ;;  %4325 = vmatmul.mubr.msk.bf16.vlgmr.msra.gmra.mrb[20].mxu0 %vm759_vm3, %v1199_v60 }
 0xccd   :  { %4335 = vmatpush3.bf16.xpose.msra.mxu0 %v1306_v3  ;;  %4336 = vmatprep.mubr.msk.bf16.mxu0 %vm5156_vm1, %v5155_v33 }
 0xcce   :  { %4346 = vmatprep.subr.bf16.mxu0 %v5155_v33 }
 0xcd1   :  { %v1292_v8 = vpop.f32.mrb[28].mxu1 }
 0xcd2   :  { %v4332_v9 = vpop.f32.mrb[29].mxu1  ;;  %v1348_v11 = vsel %vm759_vm3, %v1292_v8, -inf }
 0xcd3   :  { %1349 = vmax.xlane.f32.xlu1 %v1348_v11  ;;  %v1295_v13 = vpop.f32.mrb[30].mxu1 }
 0xcd4   :  { %v4333_v14 = vpop.f32.mrb[31].mxu1  ;;  %4337 = vmatmul.mubr.msk.bf16.vlgmr.msra.gmra.mrb[24].mxu0 %vm759_vm3, %v1299_v12 }
 0xcd5   :  { %4348 = vmatprep.mubr.msk.bf16.mxu0 %vm5156_vm1, %v5155_v33 }
 0xd60   :  { %v1350_v15 = vpop.xlane.xlu1 %1349 }
 0xd61   :  { %v1354_v16 = vsub.f32 %v1292_v8, %v1350_v15 }
 0xd63   :  { %v1356_v17 = vmul.f32 1.442695, %v1354_v16 }
 0xd65   :  { %4746 = vpow2.f32 %v1356_v17 }
 0xd6f   :  { %v4747_v29 = vpop.eup %4746 }
 0xd70   :  { %v1360_v32 = vsel %vm759_vm3, %v4747_v29, 0.0 }
 0xd9f   :  { %v5641_v0 = vpop.f32.mrb[20].mxu0 }
 0xda0   :  { %v4326_v18 = vpop.f32.mrb[21].mxu0 }
 0xda1   :  { %v5643_v22 = vpop.f32.mrb[22].mxu0 }
 0xda2   :  { %v4327_v23 = vpop.f32.mrb[23].mxu0 }
 0xda7   :  { %v1342_v26 = vpop.f32.mrb[24].mxu0 }
 0xda8   :  { %v4338_v27 = vpop.f32.mrb[25].mxu0  ;;  %v1351_v28 = vsel %vm759_vm3, %v1342_v26, -inf }
 0xda9   :  { %1352 = vmax.xlane.f32.xlu0 %v1351_v28  ;;  %v1345_v30 = vpop.f32.mrb[26].mxu0 }
 0xdaa   :  { %v4339_v31 = vpop.f32.mrb[27].mxu0 }
 0xdad   :  { %1361 = vadd.xlane.f32.xlu0 %v1360_v32 }
 0xdc3   :  { %1372 = vrot.lane.b32.xlu0 %v5544_v20, %s5154_s8 }
 0xdc7   :  { %1569 = vrot.lane.b32.xlu0 %v5534_v10, %s5158_s0 }
 0xdcb   :  { %1567 = vrot.lane.b32.xlu0 %v5546_v24, %s5158_s0 }
 0xe36   :  { %v1353_v34 = vpop.xlane.xlu0 %1352 }
 0xe37   :  { %v1355_v35 = vsub.f32 %v1342_v26, %v1353_v34 }
 0xe39   :  { %v1358_v36 = vmul.f32 1.442695, %v1355_v35 }
 0xe3a   :  { %v1362_v37 = vpop.xlane.xlu0 %1361 }
 0xe3b   :  { %4748 = vpow2.f32 %v1358_v36 }
 0xe3c   :  { %4750 = vrcp.f32 %v1362_v37 }
 0xe3e   :  { %v1373_v38 = vpop.permute.xlu0 %1372 }
 0xe3f   :  { %v1378_v39 = vsel %vm881_vm4, %v1373_v38, 0 }
 0xe40   :  { %4341 = vmatpush3.bf16.msra.mxu1 %v1378_v39 }
 0xe41   :  { %4352 = vmatprep.subr.bf16.mxu1 %v5155_v33 }
 0xe42   :  { %v1570_v57 = vpop.permute.xlu0 %1569 }
 0xe43   :  { %v1575_v62 = vsel %vm759_vm3, %v1570_v57, 0 }
 0xe45   :  { %v4749_v40 = vpop.eup %4748 }
 0xe46   :  { %v4751_v41 = vpop.eup %4750  ;;  %v1363_v10 = vsel %vm759_vm3, %v4749_v40, 0.0  ;;  %v1568_v9 = vpop.permute.xlu0 %1567 }
 0xe47   :  { %v1368_v42 = vmul.f32 %v4751_v41, %v4747_v29  ;;  %1364 = vadd.xlane.f32.xlu1 %v1363_v10 }
 0xe49   :  { %v1370_v24 = vpack.c.bf16 %v1368_v42, %v1368_v42 }
 0xe4b   :  { %4343 = vmatmul.mubr.msk.bf16.vlgmr.msra.gmra.mrb[32].mxu1 %vm759_vm3, %v1370_v24  ;;  %v754_v24 = vld [vmem:[%s6199_s23 + $0x18] sm:$0xff] }
 0xe4c   :  { %4354 = vmatprep.mubr.msk.bf16.mxu1 %vm5156_vm1, %v5155_v33  ;;  %4353 = vmatpush3.bf16.msra.mxu1 %v1474_v45  ;;  %v1738_v43 = vpack.c.bf16 %v754_v24, %v754_v24 }
 0xe4d   :  { %4364 = vmatprep.subr.bf16.mxu1 %v5155_v33 }
 0xe4e   :  { %v1743_v44 = vsel %vm881_vm4, %v1738_v43, 0 }
 0xe58   :  { %1420 = vrot.lane.b32.xlu1 %v5548_v25, %s5154_s8 }
 0xe5c   :  { %1519 = vrot.lane.b32.xlu1 %v5532_v5, %s5158_s0 }
 0xe60   :  { %1517 = vrot.lane.b32.xlu1 %v5542_v1, %s5158_s0 }
 0xed4   :  { %v1365_v46 = vpop.xlane.xlu1 %1364 }
 0xed5   :  { %4752 = vrcp.f32 %v1365_v46 }
 0xed8   :  { %v1421_v47 = vpop.permute.xlu1 %1420 }
 0xed9   :  { %v1426_v48 = vsel %vm881_vm4, %v1421_v47, 0 }
 0xeda   :  { %4347 = vmatpush3.bf16.msra.mxu0 %v1426_v48  ;;  %v751_v48 = vld [vmem:[%s6199_s23] sm:$0xff] }
 0xedb   :  { %4358 = vmatprep.subr.bf16.mxu0 %v5155_v33 }
 0xedc   :  { %v1520_v50 = vpop.permute.xlu1 %1519 }
 0xedd   :  { %v1525_v1 = vsel %vm759_vm3, %v1520_v50, 0 }
 0xedf   :  { %v4753_v49 = vpop.eup %4752 }
 0xee0   :  { %v1369_v5 = vmul.f32 %v4753_v49, %v4749_v40  ;;  %v1518_v52 = vpop.permute.xlu1 %1517  ;;  %v972_v49 = vpack.c.bf16 %v751_v48, %v751_v48 }
 0xee2   :  { %v1371_v51 = vpack.c.bf16 %v1369_v5, %v1369_v5 }
 0xee4   :  { %4349 = vmatmul.mubr.msk.bf16.vlgmr.msra.gmra.mrb[28].mxu0 %vm759_vm3, %v1371_v51  ;;  %v1790_v51 = vsel %vm881_vm4, %v972_v49, 0 }
 0xee5   :  { %4359 = vmatpush3.bf16.xpose.msra.mxu0 %v1525_v1  ;;  %4360 = vmatprep.mubr.msk.bf16.mxu0 %vm5156_vm1, %v5155_v33 }
 0xee6   :  { %4370 = vmatprep.subr.bf16.mxu0 %v5155_v33 }
 0xeec   :  { %4361 = vmatmul.mubr.msk.bf16.vlgmr.msra.gmra.mrb[32].mxu0 %vm759_vm3, %v1518_v52 }
 0xeed   :  { %4372 = vmatprep.mubr.msk.bf16.mxu0 %vm5156_vm1, %v5155_v33 }
 0xf1e   :  { %v1414_v53 = vpop.f32.mrb[32].mxu1 }
 0xf1f   :  { %v4344_v54 = vpop.f32.mrb[33].mxu1 }
 0xf20   :  { %v1417_v55 = vpop.f32.mrb[34].mxu1 }
 0xf21   :  { %v4345_v56 = vpop.f32.mrb[35].mxu1 }
 0xfb7   :  { %v1462_v58 = vpop.f32.mrb[28].mxu0 }
 0xfb8   :  { %v1468_v59 = vpack.c.bf16 %v1462_v58, %v1414_v53  ;;  %v4350_v60 = vpop.f32.mrb[29].mxu0 }
 0xfb9   :  { %v1465_v61 = vpop.f32.mrb[30].mxu0 }
 0xfba   :  { %v4351_v2 = vpop.f32.mrb[31].mxu0  ;;  %4355 = vmatmul.mubr.msk.bf16.vlgmr.msra.gmra.mrb[36].mxu1 %vm759_vm3, %v1468_v59 }
 0xfbb   :  { %4365 = vmatpush3.bf16.xpose.msra.mxu1 %v1575_v62  ;;  %4366 = vmatprep.mubr.msk.bf16.mxu1 %vm5156_vm1, %v5155_v33 }
 0xfbc   :  { %4376 = vmatprep.subr.bf16.mxu1 %v5155_v33 }
 0xfbf   :  { %v1561_v3 = vpop.f32.mrb[32].mxu0 }
 0xfc0   :  { %v4362_v7 = vpop.f32.mrb[33].mxu0  ;;  %v1617_v8 = vsel %vm759_vm3, %v1561_v3, -inf }
 0xfc1   :  { %1618 = vmax.xlane.f32.xlu1 %v1617_v8  ;;  %v1564_v11 = vpop.f32.mrb[34].mxu0  ;;  %v4038_v8 = vld [vmem:[#allocation10] ss:$0 sm:$0xff] }
 0xfc2   :  { %v4363_v12 = vpop.f32.mrb[35].mxu0  ;;  %4367 = vmatmul.mubr.msk.bf16.vlgmr.msra.gmra.mrb[40].mxu1 %vm759_vm3, %v1568_v9 }
 0xfc3   :  { %4378 = vmatprep.mubr.msk.bf16.mxu1 %vm5156_vm1, %v5155_v33 }
0x104e   :  { %v1619_v13 = vpop.xlane.xlu1 %1618 }
0x104f   :  { %v1623_v14 = vsub.f32 %v1561_v3, %v1619_v13 }
0x1051   :  { %v1625_v15 = vmul.f32 1.442695, %v1623_v14 }
0x1053   :  { %4754 = vpow2.f32 %v1625_v15 }
0x105d   :  { %v4755_v29 = vpop.eup %4754 }
0x105e   :  { %v1629_v32 = vsel %vm759_vm3, %v4755_v29, 0.0 }
0x108d   :  { %v5687_v16 = vpop.f32.mrb[36].mxu1 }
0x108e   :  { %v4356_v17 = vpop.f32.mrb[37].mxu1 }
0x108f   :  { %v5689_v18 = vpop.f32.mrb[38].mxu1 }
0x1090   :  { %v4357_v23 = vpop.f32.mrb[39].mxu1 }
0x1095   :  { %v1611_v26 = vpop.f32.mrb[40].mxu1 }
0x1096   :  { %v4368_v27 = vpop.f32.mrb[41].mxu1  ;;  %v1620_v28 = vsel %vm759_vm3, %v1611_v26, -inf }
0x1097   :  { %1621 = vmax.xlane.f32.xlu0 %v1620_v28  ;;  %v1614_v30 = vpop.f32.mrb[42].mxu1 }
0x1098   :  { %v4369_v31 = vpop.f32.mrb[43].mxu1 }
0x109b   :  { %1630 = vadd.xlane.f32.xlu0 %v1629_v32 }
0x10b1   :  { %1641 = vrot.lane.b32.xlu0 %v5544_v20, %s5158_s0 }
0x1124   :  { %v1622_v34 = vpop.xlane.xlu0 %1621 }
0x1125   :  { %v1624_v35 = vsub.f32 %v1611_v26, %v1622_v34  ;;  %v1892_v34 = vld [vmem:[%s6200_s6] sm:$0xff] }
0x1127   :  { %v1627_v36 = vmul.f32 1.442695, %v1624_v35  ;;  %v1893_v35 = vld [vmem:[%s6200_s6 + $0x8] sm:$0xff] }
0x1128   :  { %v1631_v37 = vpop.xlane.xlu0 %1630 }
0x1129   :  { %4756 = vpow2.f32 %v1627_v36  ;;  %v1897_v36 = vpack.c.bf16 %v1893_v35, %v1892_v34 }
0x112a   :  { %4758 = vrcp.f32 %v1631_v37  ;;  %v1894_v37 = vld [vmem:[%s6200_s6 + $0x10] sm:$0xff] }
0x112c   :  { %v1642_v38 = vpop.permute.xlu0 %1641 }
0x112d   :  { %v1647_v39 = vsel %vm881_vm4, %v1642_v38, 0  ;;  %v1895_v38 = vld [vmem:[%s6200_s6 + $0x18] sm:$0xff] }
0x112e   :  { %4371 = vmatpush3.bf16.msra.mxu0 %v1647_v39  ;;  %v1898_v39 = vpack.c.bf16 %v1895_v38, %v1894_v37  ;;  %v4048_v38 = vld [vmem:[%s6203_s28 + $0x20] sm:$0xff] }
0x112f   :  { %4382 = vmatprep.subr.bf16.mxu0 %v5155_v33 }
0x1133   :  { %v4757_v40 = vpop.eup %4756 }
0x1134   :  { %v4759_v41 = vpop.eup %4758  ;;  %v1632_v10 = vsel %vm759_vm3, %v4757_v40, 0.0 }
0x1135   :  { %v1637_v42 = vmul.f32 %v4759_v41, %v4755_v29  ;;  %1633 = vadd.xlane.f32.xlu1 %v1632_v10  ;;  %v1961_v41 = vld [vmem:[%s6201_s3 + $0x8] sm:$0xff]  ;;  %v1962_v10 = vld [vmem:[%s6201_s3 + $0x10] sm:$0xff] }
0x1137   :  { %v1639_v20 = vpack.c.bf16 %v1637_v42, %v1637_v42 }
0x1139   :  { %4373 = vmatmul.mubr.msk.bf16.vlgmr.msra.gmra.mrb[36].mxu0 %vm759_vm3, %v1639_v20  ;;  %v1963_v20 = vld [vmem:[%s6201_s3 + $0x18] sm:$0xff] }
0x113a   :  { %4384 = vmatprep.mubr.msk.bf16.mxu0 %vm5156_vm1, %v5155_v33  ;;  %4383 = vmatpush3.bf16.msra.mxu0 %v1743_v44  ;;  %v1978_v24 = vpack.c.bf16 %v1963_v20, %v1962_v10  ;;  %v4051_v10 = vld [vmem:[%s6203_s28 + $0x38] sm:$0xff]  ;;  %v2051_v20 = vlaneseq }
0x113b   :  { %4394 = vmatprep.subr.bf16.mxu0 %v5155_v33 }
0x1146   :  { %1689 = vrot.lane.b32.xlu1 %v5548_v25, %s5158_s0 }
0x11c2   :  { %v1634_v45 = vpop.xlane.xlu1 %1633 }
0x11c3   :  { %4760 = vrcp.f32 %v1634_v45 }
0x11c6   :  { %v1690_v46 = vpop.permute.xlu1 %1689 }
0x11c7   :  { %v1695_v47 = vsel %vm881_vm4, %v1690_v46, 0 }
0x11c8   :  { %4377 = vmatpush3.bf16.msra.mxu1 %v1695_v47 }
0x11c9   :  { %4388 = vmatprep.subr.bf16.mxu1 %v5155_v33 }
0x11cd   :  { %v4761_v5 = vpop.eup %4760 }
0x11ce   :  { %v1638_v50 = vmul.f32 %v4761_v5, %v4757_v40  ;;  %v1960_v40 = vld [vmem:[%s6201_s3] sm:$0xff] }
0x11cf   :  { %v1977_v42 = vpack.c.bf16 %v1961_v41, %v1960_v40  ;;  %v4039_v5 = vld [vmem:[%s6202_s26] ss:$0 sm:$0xff]  ;;  %v4050_v41 = vld [vmem:[%s6203_s28 + $0x30] sm:$0xff] }
0x11d0   :  { %v1640_v25 = vpack.c.bf16 %v1638_v50, %v1638_v50 }
0x11d2   :  { %4379 = vmatmul.mubr.msk.bf16.vlgmr.msra.gmra.mrb[44].mxu1 %vm759_vm3, %v1640_v25 }
0x11d3   :  { %4389 = vmatpush3.bf16.msra.mxu1 %v1790_v51  ;;  %4390 = vmatprep.mubr.msk.bf16.mxu1 %vm5156_vm1, %v5155_v33 }
0x11d4   :  { %4402 = vmatprep.subr.bf16.mxu1 %v5155_v33 }
0x11da   :  { %4391 = vmatmul.mubr.msk.bf16.vlgmr.msra.gmra.mrb[48].mxu1 %vm759_vm3, %v971_v6 }
0x11db   :  { %4418 = vmatprep.mubr.msk.bf16.mxu1 %vm5156_vm1, %v5155_v33  ;;  %4403 = vmatpush3.bf16.msra.mxu1 %v1977_v42  ;;  %v2108_v42 = vpack.c.bf16 %v4051_v10, %v4050_v41 }
0x11dc   :  { %4404 = vmatprep.subr.bf16.mxu1 %v5155_v33 }
0x11df   :  { %4405 = vmatpush3.bf16.msra.mxu1 %v1978_v24  ;;  %v2052_v24 = vshrl.u32 %v2051_v20, 7 }
0x11e0   :  { %4406 = vmatprep.subr.bf16.mxu1 %v5155_v33 }
0x120c   :  { %v1683_v1 = vpop.f32.mrb[36].mxu0 }
0x120d   :  { %v4374_v52 = vpop.f32.mrb[37].mxu0 }
0x120e   :  { %v1686_v53 = vpop.f32.mrb[38].mxu0  ;;  %v4040_v52 = vld [vmem:[#allocation12] ss:$0 sm:$0xff] }
0x120f   :  { %v4375_v54 = vpop.f32.mrb[39].mxu0 }
0x12a5   :  { %v1731_v55 = vpop.f32.mrb[44].mxu1 }
0x12a6   :  { %v1737_v56 = vpack.c.bf16 %v1731_v55, %v1683_v1  ;;  %v4380_v57 = vpop.f32.mrb[45].mxu1 }
0x12a7   :  { %v1734_v58 = vpop.f32.mrb[46].mxu1  ;;  %v1964_v57 = vld [vmem:[%s6201_s3 + $0x20] sm:$0xff] }
0x12a8   :  { %v4381_v59 = vpop.f32.mrb[47].mxu1  ;;  %4385 = vmatmul.mubr.msk.bf16.vlgmr.msra.gmra.mrb[40].mxu0 %vm759_vm3, %v1737_v56  ;;  %v1965_v58 = vld [vmem:[%s6201_s3 + $0x28] sm:$0xff] }
0x12a9   :  { %4398 = vmatprep.mubr.msk.bf16.mxu0 %vm5156_vm1, %v5155_v33  ;;  %4395 = vmatpush3.bf16.msra.mxu0 %v1897_v36  ;;  %v1979_v59 = vpack.c.bf16 %v1965_v58, %v1964_v57  ;;  %v2096_v58 = vld [vmem:[%s6203_s28 + $0x10] sm:$0xff] }
0x12aa   :  { %4396 = vmatprep.subr.bf16.mxu0 %v5155_v33 }
0x12ab   :  { %4407 = vmatpush3.bf16.msra.mxu1 %v1979_v59 }
0x12ac   :  { %4408 = vmatprep.subr.bf16.mxu1 %v5155_v33 }
0x12ad   :  { %v1826_v63 = vpop.f32.mrb[48].mxu1  ;;  %4397 = vmatpush3.bf16.msra.mxu0 %v1898_v39  ;;  %v4049_v39 = vld [vmem:[%s6203_s28 + $0x28] sm:$0xff] }
0x12ae   :  { %v1827_v4 = vadd.f32 %v1826_v63, %v5641_v0  ;;  %v4392_v6 = vpop.f32.mrb[49].mxu1  ;;  %4422 = vmatprep.subr.bf16.mxu0 %v5155_v33  ;;  %v1966_v63 = vld [vmem:[%s6201_s3 + $0x30] sm:$0xff]  ;;  %v2107_v40 = vpack.c.bf16 %v4049_v39, %v4048_v38  ;;  %v2267_v38 = vld [vmem:[%s6204_s1 + $0x38] sm:$0xff] }
0x12af   :  { %v1829_v60 = vpop.f32.mrb[50].mxu1 }
0x12b0   :  { %v1830_v61 = vadd.f32 %v1829_v60, %v5643_v22  ;;  %v4393_v62 = vpop.f32.mrb[51].mxu1  ;;  %v1833_v2 = vadd.f32 %v1827_v4, %v5687_v16  ;;  %v1967_v4 = vld [vmem:[%s6201_s3 + $0x38] sm:$0xff]  ;;  %v1968_v60 = vld [vmem:[%s6201_s3 + $0x40] sm:$0xff] }
0x12b1   :  { %v1980_v6 = vpack.c.bf16 %v1967_v4, %v1966_v63 }
0x12b2   :  { %v1834_v3 = vadd.f32 %v1830_v61, %v5689_v18  ;;  %v1969_v61 = vld [vmem:[%s6201_s3 + $0x48] sm:$0xff] }
0x12b3   :  { %4409 = vmatpush3.bf16.msra.mxu1 %v1980_v6  ;;  %v1981_v62 = vpack.c.bf16 %v1969_v61, %v1968_v60 }
0x12b4   :  { %4410 = vmatprep.subr.bf16.mxu1 %v5155_v33 }
0x12b7   :  { %4411 = vmatpush3.bf16.msra.mxu1 %v1981_v62 }
0x12b8   :  { %4412 = vmatprep.subr.bf16.mxu1 %v5155_v33 }
0x137b   :  { %v1779_v7 = vpop.f32.mrb[40].mxu0 }
0x137c   :  { %v1835_v9 = vadd.f32 %v1833_v2, %v1779_v7  ;;  %v4386_v11 = vpop.f32.mrb[41].mxu0  ;;  %v1970_v2 = vld [vmem:[%s6201_s3 + $0x50] sm:$0xff] }
0x137d   :  { %v1782_v12 = vpop.f32.mrb[42].mxu0 }
0x137e   :  { %v1844_v13 = vadd.f32 %v4038_v8, %v1835_v9  ;;  %v1836_v14 = vadd.f32 %v1834_v3, %v1782_v12  ;;  %v4387_v15 = vpop.f32.mrb[43].mxu0  ;;  %v1971_v3 = vld [vmem:[%s6201_s3 + $0x58] sm:$0xff]  ;;  %v1973_v9 = vld [vmem:[%s6201_s3 + $0x68] sm:$0xff]  ;;  %v1974_v12 = vld [vmem:[%s6201_s3 + $0x70] sm:$0xff] }
0x137f   :  { %v1982_v7 = vpack.c.bf16 %v1971_v3, %v1970_v2  ;;  %v4041_v15 = vld [vmem:[#allocation13] ss:$0 sm:$0xff]  ;;  %v4054_v2 = vld [vmem:[%s6203_s28 + $0x40] sm:$0xff]  ;;  %v4055_v3 = vld [vmem:[%s6203_s28 + $0x48] sm:$0xff] }
0x1380   :  { %v5728_v17 = vadd.f32 %v1844_v13, %v5477_v19  ;;  %v1845_v0 = vadd.f32 %v4038_v8, %v1836_v14  ;;  %v1972_v8 = vld [vmem:[%s6201_s3 + $0x60] sm:$0xff]  ;;  %v1975_v13 = vld [vmem:[%s6201_s3 + $0x78] sm:$0xff] }
0x1381   :  { %4413 = vmatpush3.bf16.msra.mxu1 %v1982_v7  ;;  %v1983_v11 = vpack.c.bf16 %v1973_v9, %v1972_v8  ;;  %v1984_v14 = vpack.c.bf16 %v1975_v13, %v1974_v12  ;;  %v2203_v9 = vpack.c.bf16 %v4055_v3, %v4054_v2  ;;  %v4056_v13 = vld [vmem:[%s6203_s28 + $0x50] sm:$0xff] }
0x1382   :  { %v5731_v23 = vadd.f32 %v1845_v0, %v5479_v21  ;;  %v1850_v22 = vsel %vm428_vm10, %v5728_v17, 0.0  ;;  %4414 = vmatprep.subr.bf16.mxu1 %v5155_v33 }
0x1383   :  { %1851 = vadd.xlane.f32.xlu1 %v1850_v22 }
0x1384   :  { %v1853_v16 = vsel %vm428_vm10, %v5731_v23, 0.0 }
0x1385   :  { %1854 = vadd.xlane.f32.xlu0 %v1853_v16  ;;  %4415 = vmatpush3.bf16.msra.mxu1 %v1983_v11 }
0x1386   :  { %4416 = vmatprep.subr.bf16.mxu1 %v5155_v33 }
0x1389   :  { %4417 = vmatpush3.bf16.msra.mxu1 %v1984_v14  ;;  %v4057_v14 = vld [vmem:[%s6203_s28 + $0x58] sm:$0xff] }
0x138a   :  { %4458 = vmatprep.subr.bf16.mxu1 %v5155_v33 }
0x1410   :  { %v1852_v18 = vpop.xlane.xlu1 %1851 }
0x1411   :  { %v1856_v26 = vmul.f32 0.03125, %v1852_v18 }
0x1412   :  { %v1855_v19 = vpop.xlane.xlu0 %1854 }
0x1413   :  { %v1858_v27 = vsub.f32 %v5728_v17, %v1856_v26  ;;  %v1857_v28 = vmul.f32 0.03125, %v1855_v19 }
0x1415   :  { %v1859_v21 = vsub.f32 %v5731_v23, %v1857_v28  ;;  %v1860_v29 = vmul.f32 %v1858_v27, %v1858_v27 }
0x1417   :  { %v1862_v30 = vsel %vm428_vm10, %v1860_v29, 0.0  ;;  %v1861_v31 = vmul.f32 %v1859_v21, %v1859_v21 }
0x1418   :  { %1863 = vadd.xlane.f32.xlu0 %v1862_v30 }
0x1419   :  { %v1865_v32 = vsel %vm428_vm10, %v1861_v31, 0.0 }
0x141a   :  { %1866 = vadd.xlane.f32.xlu1 %v1865_v32 }
0x14a5   :  { %v1864_v43 = vpop.xlane.xlu0 %1863 }
0x14a6   :  { %v1868_v44 = vmul.f32 0.03125, %v1864_v43  ;;  %v2053_v43 = vadd.s32 8, %v2052_v24 }
0x14a7   :  { %v1867_v45 = vpop.xlane.xlu1 %1866 }
0x14a8   :  { %v1870_v46 = vadd.f32 1e-05, %v1868_v44  ;;  %v1869_v47 = vmul.f32 0.03125, %v1867_v45  ;;  %v4043_v44 = vld [vmem:[#allocation15] ss:$0 sm:$0xff] }
0x14aa   :  { %4762 = vrsqrt.f32 %v1870_v46  ;;  %v1871_v48 = vadd.f32 1e-05, %v1869_v47 }
0x14ac   :  { %4764 = vrsqrt.f32 %v1871_v48  ;;  %v2065_v48 = vand.u32 7, %v2053_v43 }
0x14ae   :  { %vm2079_vm5 = vcmp.ne.s32.totalorder %v2065_v48, 0  ;;  %vm2087_vm11 = vcmp.ne.s32.totalorder %v2065_v48, 7 }
0x14af   :  { %v4045_v63 = vsel %vm2079_vm5, 1.0, %v5155_v33 }
0x14b4   :  { %v4763_v49 = vpop.eup %4762 }
0x14b5   :  { %v1874_v50 = vmul.f32 %v4763_v49, %v1858_v27 }
0x14b6   :  { %v4765_v25 = vpop.eup %4764 }
0x14b7   :  { %v1882_v51 = vmul.f32 %v4039_v5, %v1874_v50  ;;  %v1875_v1 = vmul.f32 %v4765_v25, %v1859_v21 }
0x14b9   :  { %v1883_v53 = vmul.f32 %v4039_v5, %v1875_v1  ;;  %v1890_v54 = vadd.f32 %v4040_v52, %v1882_v51  ;;  %v2094_v51 = vld [vmem:[%s6203_s28] sm:$0xff]  ;;  %v2095_v1 = vld [vmem:[%s6203_s28 + $0x8] sm:$0xff] }
0x14bb   :  { %v1891_v55 = vadd.f32 %v4040_v52, %v1883_v53  ;;  %v2058_v52 = vand.u32 7, %v2052_v24 }
0x14bd   :  { %v1896_v56 = vpack.c.bf16 %v1891_v55, %v1890_v54  ;;  %v2099_v55 = vpack.c.bf16 %v2095_v1, %v2094_v51  ;;  %vm2078_vm7 = vcmp.ne.s32.totalorder %v2058_v52, 0  ;;  %vm2086_vm9 = vcmp.ne.s32.totalorder %v2058_v52, 7 }
0x14be   :  { %v4044_v61 = vsel %vm2078_vm7, 1.0, %v5155_v33 }
0x14bf   :  { %4399 = vmatmul.mubr.msk.bf16.vlgmr.msra.gmra.mrb[44].mxu0 %vm428_vm10, %v1896_v56 }
0x14c0   :  { %4426 = vmatprep.mubr.msk.bf16.mxu0 %vm5156_vm1, %v5155_v33  ;;  %4423 = vmatpush3.bf16.msra.mxu0 %v2107_v40 }
0x14c1   :  { %4424 = vmatprep.subr.bf16.mxu0 %v5155_v33 }
0x14c4   :  { %4425 = vmatpush3.bf16.msra.mxu0 %v2108_v42 }
0x14c5   :  { %4430 = vmatprep.subr.bf16.mxu0 %v5155_v33 }
0x1592   :  { %v1943_v0 = vpop.f32.mrb[44].mxu0 }
0x1593   :  { %v1944_v22 = vadd.f32 %v4041_v15, %v1943_v0  ;;  %v4400_v16 = vpop.f32.mrb[45].mxu0 }
0x1594   :  { %v1946_v18 = vpop.f32.mrb[46].mxu0  ;;  %v4047_v16 = vsel %vm2087_vm11, 1.0, %v5155_v33 }
0x1595   :  { %v1952_v26 = vmul.f32 0.70710677, %v1944_v22  ;;  %v1947_v19 = vadd.f32 %v4041_v15, %v1946_v18  ;;  %v4401_v27 = vpop.f32.mrb[47].mxu0  ;;  %v1950_v31 = vmul.f32 0.5, %v1944_v22  ;;  %v4046_v22 = vsel %vm2086_vm9, 1.0, %v5155_v33 }
0x1596   :  { %v2204_v18 = vpack.c.bf16 %v4057_v14, %v4056_v13 }
0x1597   :  { %4766 = verf.f32 %v1952_v26  ;;  %v1953_v28 = vmul.f32 0.70710677, %v1947_v19  ;;  %v1951_v32 = vmul.f32 0.5, %v1947_v19 }
0x1599   :  { %4768 = verf.f32 %v1953_v28  ;;  %v2260_v28 = vld [vmem:[%s6204_s1] sm:$0xff] }
0x15a1   :  { %v4767_v21 = vpop.eup %4766 }
0x15a2   :  { %v1956_v29 = vadd.f32 1.0, %v4767_v21  ;;  %v2261_v21 = vld [vmem:[%s6204_s1 + $0x8] sm:$0xff] }
0x15a3   :  { %v4769_v30 = vpop.eup %4768 }
0x15a4   :  { %v1957_v34 = vadd.f32 1.0, %v4769_v30  ;;  %v1958_v35 = vmul.f32 %v1956_v29, %v1950_v31  ;;  %v2269_v29 = vpack.c.bf16 %v2261_v21, %v2260_v28  ;;  %v2262_v30 = vld [vmem:[%s6204_s1 + $0x10] sm:$0xff]  ;;  %v2263_v31 = vld [vmem:[%s6204_s1 + $0x18] sm:$0xff] }
0x15a6   :  { %v1959_v36 = vmul.f32 %v1957_v34, %v1951_v32  ;;  %v2270_v32 = vpack.c.bf16 %v2263_v31, %v2262_v30  ;;  %v2264_v34 = vld [vmem:[%s6204_s1 + $0x20] sm:$0xff] }
0x15a8   :  { %v1976_v37 = vpack.c.bf16 %v1959_v36, %v1958_v35  ;;  %v2265_v35 = vld [vmem:[%s6204_s1 + $0x28] sm:$0xff] }
0x15a9   :  { %v2271_v36 = vpack.c.bf16 %v2265_v35, %v2264_v34 }
0x15aa   :  { %4419 = vmatmul.mubr.bf16.vlgmr.msra.gmra.mrb[52].mxu1 %v1976_v37  ;;  %v2266_v37 = vld [vmem:[%s6204_s1 + $0x30] sm:$0xff] }
0x15ab   :  { %4462 = vmatprep.mubr.msk.bf16.mxu1 %vm5156_vm1, %v5155_v33  ;;  %v2272_v39 = vpack.c.bf16 %v2267_v38, %v2266_v37 }
0x167d   :  { %v2026_v45 = vpop.f32.mrb[52].mxu1 }
0x167e   :  { %v2027_v46 = vadd.f32 %v4043_v44, %v2026_v45  ;;  %v4420_v47 = vpop.f32.mrb[53].mxu1 }
0x167f   :  { %v2029_v49 = vpop.f32.mrb[54].mxu1 }
0x1680   :  { %v5784_v5 = vadd.f32 %v2027_v46, %v5728_v17  ;;  %v2030_v50 = vadd.f32 %v4043_v44, %v2029_v49  ;;  %v4421_v25 = vpop.f32.mrb[55].mxu1 }
0x1682   :  { %v5789_v53 = vadd.f32 %v2030_v50, %v5731_v23  ;;  %v2327_v54 = vsel %vm428_vm10, %v5784_v5, 0.0  ;;  %v2038_v56 = vrot.slane %v5784_v5, 7  ;;  %v2097_v23 = vld [vmem:[%s6203_s28 + $0x18] sm:$0xff]  ;;  %v2045_v11 = vrot.slane %v5784_v5, 1 }
0x1683   :  { %2328 = vadd.xlane.f32.xlu0 %v2327_v54  ;;  %v2100_v6 = vpack.c.bf16 %v2097_v23, %v2096_v58  ;;  %v4059_v58 = vld [vmem:[#allocation16] ss:$0 sm:$0xff] }
0x1684   :  { %v2330_v17 = vsel %vm428_vm10, %v5789_v53, 0.0  ;;  %v2106_v57 = vpack.c.bf16 %v5789_v53, %v5784_v5  ;;  %v2039_v59 = vrot.slane %v5789_v53, 7  ;;  %v2043_v60 = vsel %vm2037_vm6, 0.0, %v2038_v56 }
0x1685   :  { %2331 = vadd.xlane.f32.xlu1 %v2330_v17  ;;  %v2046_v7 = vrot.slane %v5789_v53, 1  ;;  %v2084_v8 = vmul.f32 %v4044_v61, %v2043_v60 }
0x1686   :  { %4427 = vmatmul.mubr.msk.bf16.vlgmr.msra.gmra.mrb[48].mxu0 %vm428_vm10, %v2106_v57  ;;  %v2040_v4 = vsel %vm2037_vm6, %v2038_v56, %v2039_v59 }
0x1687   :  { %4431 = vmatpush3.bf16.msra.mxu0 %v2099_v55  ;;  %4434 = vmatprep.mubr.msk.bf16.mxu0 %vm5156_vm1, %v5155_v33  ;;  %v2085_v62 = vmul.f32 %v4045_v63, %v2040_v4  ;;  %v2047_v15 = vsel %vm2044_vm8, %v2045_v11, %v2046_v7  ;;  %v2050_v0 = vsel %vm2044_vm8, %v2046_v7, 0.0 }
0x1688   :  { %4432 = vmatprep.subr.bf16.mxu0 %v5155_v33  ;;  %v2092_v26 = vmul.f32 %v4046_v22, %v2047_v15  ;;  %v2093_v19 = vmul.f32 %v4047_v16, %v2050_v0 }
0x1689   :  { %v2098_v12 = vpack.c.bf16 %v2085_v62, %v2084_v8 }
0x168a   :  { %v2202_v27 = vpack.c.bf16 %v2093_v19, %v2092_v26 }
0x168b   :  { %4433 = vmatpush3.bf16.msra.mxu0 %v2100_v6 }
0x168c   :  { %4438 = vmatprep.subr.bf16.mxu0 %v5155_v33 }
0x168e   :  { %4435 = vmatmul.mubr.msk.bf16.vlgmr.msra.gmra.mrb[52].mxu0 %vm428_vm10, %v2098_v12 }
0x168f   :  { %4439 = vmatpush3.bf16.msra.mxu0 %v2203_v9  ;;  %4442 = vmatprep.mubr.msk.bf16.mxu0 %vm5156_vm1, %v5155_v33 }
0x1690   :  { %4440 = vmatprep.subr.bf16.mxu0 %v5155_v33 }
0x1693   :  { %4441 = vmatpush3.bf16.msra.mxu0 %v2204_v18 }
0x1694   :  { %4446 = vmatprep.subr.bf16.mxu0 %v5155_v33 }
0x1696   :  { %4443 = vmatmul.mubr.msk.bf16.vlgmr.msra.gmra.mrb[56].mxu0 %vm428_vm10, %v2202_v27 }
0x1697   :  { %4454 = vmatprep.mubr.msk.bf16.mxu0 %vm5156_vm1, %v5155_v33  ;;  %4447 = vmatpush3.bf16.msra.mxu0 %v2269_v29  ;;  %v4062_v29 = vld [vmem:[%s6205_s2] ss:$0 sm:$0xff] }
0x1698   :  { %4448 = vmatprep.subr.bf16.mxu0 %v5155_v33 }
0x169b   :  { %4449 = vmatpush3.bf16.msra.mxu0 %v2270_v32  ;;  %v4063_v32 = vld [vmem:[%s6206_s7] ss:$0 sm:$0xff] }
0x169c   :  { %4450 = vmatprep.subr.bf16.mxu0 %v5155_v33 }
0x169f   :  { %4451 = vmatpush3.bf16.msra.mxu0 %v2271_v36 }
0x16a0   :  { %4452 = vmatprep.subr.bf16.mxu0 %v5155_v33 }
0x16a3   :  { %4453 = vmatpush3.bf16.msra.mxu0 %v2272_v39 }
0x16a4   :  { %4474 = vmatprep.subr.bf16.mxu0 %v5155_v33 }
0x1710   :  { %v2329_v40 = vpop.xlane.xlu0 %2328 }
0x1711   :  { %v2333_v41 = vmul.f32 0.03125, %v2329_v40 }
0x1712   :  { %v2332_v10 = vpop.xlane.xlu1 %2331 }
0x1713   :  { %v2335_v42 = vsub.f32 %v5784_v5, %v2333_v41  ;;  %v2334_v20 = vmul.f32 0.03125, %v2332_v10 }
0x1715   :  { %v2336_v24 = vsub.f32 %v5789_v53, %v2334_v20  ;;  %v2337_v43 = vmul.f32 %v2335_v42, %v2335_v42 }
0x1717   :  { %v2339_v44 = vsel %vm428_vm10, %v2337_v43, 0.0  ;;  %v2338_v45 = vmul.f32 %v2336_v24, %v2336_v24 }
0x1718   :  { %2340 = vadd.xlane.f32.xlu0 %v2339_v44 }
0x1719   :  { %v2342_v46 = vsel %vm428_vm10, %v2338_v45, 0.0 }
0x171a   :  { %2343 = vadd.xlane.f32.xlu1 %v2342_v46 }
0x1759   :  { %v2146_v47 = vpop.f32.mrb[48].mxu0 }
0x175a   :  { %v4428_v48 = vpop.f32.mrb[49].mxu0 }
0x175b   :  { %v2149_v49 = vpop.f32.mrb[50].mxu0 }
0x175c   :  { %v4429_v50 = vpop.f32.mrb[51].mxu0 }
0x1761   :  { %v2190_v25 = vpop.f32.mrb[52].mxu0 }
0x1762   :  { %v2191_v51 = vadd.f32 %v2190_v25, %v2146_v47  ;;  %v4436_v1 = vpop.f32.mrb[53].mxu0 }
0x1763   :  { %v2193_v52 = vpop.f32.mrb[54].mxu0 }
0x1764   :  { %v2194_v54 = vadd.f32 %v2193_v52, %v2149_v49  ;;  %v4437_v55 = vpop.f32.mrb[55].mxu0  ;;  %v2433_v52 = vld [vmem:[%s6207_s25] sm:$0xff] }
0x1765   :  { %v2545_v55 = vld [vmem:[%s6208_s10] sm:$0xff] }
0x1769   :  { %v2242_v56 = vpop.f32.mrb[56].mxu0 }
0x176a   :  { %v2249_v17 = vadd.f32 %v2242_v56, %v2191_v51  ;;  %v4444_v57 = vpop.f32.mrb[57].mxu0 }
0x176b   :  { %v2245_v23 = vpop.f32.mrb[58].mxu0  ;;  %v2435_v57 = vld [vmem:[%s6207_s25 + $0x10] sm:$0xff] }
0x176c   :  { %v2250_v59 = vadd.f32 %v2245_v23, %v2194_v54  ;;  %v4445_v63 = vpop.f32.mrb[59].mxu0  ;;  %v2258_v4 = vadd.f32 %v4059_v58, %v2249_v17  ;;  %v2434_v54 = vld [vmem:[%s6207_s25 + $0x8] sm:$0xff] }
0x176d   :  { %v2438_v56 = vpack.c.bf16 %v2434_v54, %v2433_v52  ;;  %v2546_v17 = vld [vmem:[%s6208_s10 + $0x8] sm:$0xff]  ;;  %v2548_v63 = vld [vmem:[%s6208_s10 + $0x18] sm:$0xff] }
0x176e   :  { %v2259_v6 = vadd.f32 %v4059_v58, %v2250_v59  ;;  %v2436_v58 = vld [vmem:[%s6207_s25 + $0x18] sm:$0xff]  ;;  %v2549_v23 = vpack.c.bf16 %v2546_v17, %v2545_v55  ;;  %v2547_v59 = vld [vmem:[%s6208_s10 + $0x10] sm:$0xff] }
0x176f   :  { %4459 = vmatpush3.bf16.msra.mxu1 %v2438_v56 }
0x1770   :  { %v2268_v60 = vpack.c.bf16 %v2259_v6, %v2258_v4  ;;  %v2439_v4 = vpack.c.bf16 %v2436_v58, %v2435_v57  ;;  %4460 = vmatprep.subr.bf16.mxu1 %v5155_v33  ;;  %v2550_v6 = vpack.c.bf16 %v2548_v63, %v2547_v59 }
0x1772   :  { %4455 = vmatmul.mubr.msk.bf16.vlgmr.msra.gmra.mrb[60].mxu0 %vm2280_vm12, %v2268_v60 }
0x1773   :  { %4478 = vmatprep.mubr.msk.bf16.mxu0 %vm5156_vm1, %v5155_v33  ;;  %4475 = vmatpush3.bf16.msra.mxu0 %v2549_v23 }
0x1774   :  { %4476 = vmatprep.subr.bf16.mxu0 %v5155_v33  ;;  %4461 = vmatpush3.bf16.msra.mxu1 %v2439_v4 }
0x1775   :  { %4466 = vmatprep.subr.bf16.mxu1 %v5155_v33 }
0x1777   :  { %4477 = vmatpush3.bf16.msra.mxu0 %v2550_v6 }
0x1778   :  { %4488 = vmatprep.subr.bf16.mxu0 %v5155_v33 }
0x17a5   :  { %v2341_v61 = vpop.xlane.xlu0 %2340 }
0x17a6   :  { %v2373_v62 = vmul.f32 0.032258064, %v2341_v61  ;;  %v2345_v22 = vmul.f32 0.03125, %v2341_v61 }
0x17a7   :  { %v2344_v2 = vpop.xlane.xlu1 %2343 }
0x17a8   :  { %vm2375_vm13 = vcmp.lt.f32.partialorder %v2373_v62, 1e-05  ;;  %v2374_v3 = vmul.f32 0.032258064, %v2344_v2  ;;  %v2346_v16 = vmul.f32 0.03125, %v2344_v2 }
0x17a9   :  { %v2377_v7 = vsel %vm2375_vm13, 1.0, %v5155_v33  ;;  %v2347_v18 = vadd.f32 1e-05, %v2345_v22 }
0x17aa   :  { %vm2376_vm14 = vcmp.lt.f32.partialorder %v2374_v3, 1e-05  ;;  %v2348_v26 = vadd.f32 1e-05, %v2346_v16 }
0x17ab   :  { %v2378_v8 = vsel %vm2376_vm14, 1.0, %v5155_v33  ;;  %4770 = vrsqrt.f32 %v2347_v18 }
0x17ac   :  { %v2379_v9 = vmax.f32 %v2377_v7, %v2378_v8  ;;  %4772 = vrsqrt.f32 %v2348_v26 }
0x17ae   :  { %v2380_v11 = vrot.slane %v2379_v9, 4 }
0x17b0   :  { %v2381_v12 = vmax.f32 %v2379_v9, %v2380_v11 }
0x17b2   :  { %v2382_v13 = vrot.slane %v2381_v12, 2 }
0x17b4   :  { %v2383_v14 = vmax.f32 %v2381_v12, %v2382_v13 }
0x17b5   :  { %v4771_v19 = vpop.eup %4770 }
0x17b6   :  { %v2384_v15 = vrot.slane %v2383_v14, 1  ;;  %v4773_v27 = vpop.eup %4772  ;;  %v2351_v28 = vmul.f32 %v4771_v19, %v2335_v42 }
0x17b7   :  { %v2352_v21 = vmul.f32 %v4773_v27, %v2336_v24 }
0x17b8   :  { %v2385_v0 = vmax.f32 %v2383_v14, %v2384_v15  ;;  %v2359_v30 = vmul.f32 %v4062_v29, %v2351_v28  ;;  %v2491_v28 = vld [vmem:[%s6209_s20] sm:$0xff] }
0x17b9   :  { %v2360_v31 = vmul.f32 %v4062_v29, %v2352_v21  ;;  %v2492_v21 = vld [vmem:[%s6209_s20 + $0x8] sm:$0xff] }
0x17ba   :  { %4640 = vpush %v2385_v0  ;;  %v2367_v34 = vadd.f32 %v4063_v32, %v2359_v30 }
0x17bb   :  { %v2368_v35 = vadd.f32 %v4063_v32, %v2360_v31  ;;  %v2495_v31 = vpack.c.bf16 %v2492_v21, %v2491_v28 }
0x17bc   :  { %v4064_v36 = vclamps-f32 %v2367_v34, 10.0  ;;  %v2493_v34 = vld [vmem:[%s6209_s20 + $0x10] sm:$0xff] }
0x17bd   :  { %v4065_v37 = vclamps-f32 %v2368_v35, 10.0  ;;  %v2494_v35 = vld [vmem:[%s6209_s20 + $0x18] sm:$0xff] }
0x17eb   :  { %s4641_s24 = spop %4640 }
0x17ec   :  { %s2387_s4 = smul.f32 1e-05, %s4641_s24 }
0x17ee   :  { %v2388_v38 = vstv %s2387_s4 }
0x17ef   :  { %v5846_v39 = vadd.f32 %v4064_v36, %v2388_v38  ;;  %v5848_v40 = vadd.f32 %v4065_v37, %v2388_v38  ;;  %v2496_v36 = vpack.c.bf16 %v2494_v35, %v2493_v34 }
0x17f1   :  { %v2391_v41 = vsel %vm428_vm10, %v5846_v39, 0.0  ;;  %v2394_v10 = vsel %vm428_vm10, %v5848_v40, 0.0 }
0x17f2   :  { %2392 = vadd.xlane.f32.xlu0 %v2391_v41  ;;  %2395 = vadd.xlane.f32.xlu1 %v2394_v10 }
0x1845   :  { %v5854_v42 = vpop.f32.mrb[60].mxu0 }
0x1846   :  { %v4456_v20 = vpop.f32.mrb[61].mxu0 }
0x1847   :  { %v5856_v24 = vpop.f32.mrb[62].mxu0 }
0x1848   :  { %v4457_v43 = vpop.f32.mrb[63].mxu0 }
0x187f   :  { %v2393_v44 = vpop.xlane.xlu0 %2392  ;;  %v2396_v45 = vpop.xlane.xlu1 %2395 }
0x1880   :  { %v2397_v46 = vmul.f32 0.03125, %v2393_v44  ;;  %v2398_v47 = vmul.f32 0.03125, %v2396_v45  ;;  %v4068_v44 = vld [vmem:[%s6210_s11] ss:$0 sm:$0xff] }
0x1882   :  { %v2399_v48 = vsub.f32 %v5846_v39, %v2397_v46  ;;  %v2400_v49 = vsub.f32 %v5848_v40, %v2398_v47 }
0x1884   :  { %v2401_v50 = vmul.f32 %v2399_v48, %v2399_v48  ;;  %v2402_v25 = vmul.f32 %v2400_v49, %v2400_v49  ;;  %v4070_v48 = vld [vmem:[%s6211_s19] ss:$0 sm:$0xff] }
0x1886   :  { %v2403_v51 = vsel %vm428_vm10, %v2401_v50, 0.0  ;;  %v2406_v1 = vsel %vm428_vm10, %v2402_v25, 0.0 }
0x1887   :  { %2404 = vadd.xlane.f32.xlu0 %v2403_v51  ;;  %2407 = vadd.xlane.f32.xlu1 %v2406_v1  ;;  %v4066_v1 = vld [vmem:[%s6212_s15] ss:$0 sm:$0xff] }
0x1914   :  { %v2405_v60 = vpop.xlane.xlu0 %2404  ;;  %v2408_v61 = vpop.xlane.xlu1 %2407 }
0x1915   :  { %v2409_v62 = vmul.f32 0.032258064, %v2405_v60  ;;  %v2410_v2 = vmul.f32 0.032258064, %v2408_v61 }
0x1917   :  { %4774 = vrsqrt.f32 %v2409_v62  ;;  %vm2413_vm15 = vcmp.eq.f32.partialorder %v2409_v62, inf  ;;  %v2416_v9 = vand.u32 2147483648, %v2409_v62  ;;  %vm2415_vm2 = vcmp.eq.f32.partialorder %v2409_v62, 0.0 }
0x1918   :  { %4776 = vrsqrt.f32 %v2410_v2  ;;  %vm2420_vm5 = vcmp.eq.f32.partialorder %v2410_v2, inf  ;;  %v2423_v13 = vand.u32 2147483648, %v2410_v2  ;;  %vm2422_vm6 = vcmp.eq.f32.partialorder %v2410_v2, 0.0 }
0x1921   :  { %v4775_v3 = vpop.eup %4774 }
0x1922   :  { %v4777_v7 = vpop.eup %4776  ;;  %v2412_v8 = vmul.f32 %v4775_v3, %v2409_v62 }
0x1923   :  { %v2419_v11 = vmul.f32 %v4777_v7, %v2410_v2 }
0x1924   :  { %v2414_v12 = vsel %vm2413_vm15, %v2409_v62, %v2412_v8 }
0x1925   :  { %v2417_v14 = vsel %vm2415_vm2, %v2416_v9, %v2414_v12  ;;  %v2421_v15 = vsel %vm2420_vm5, %v2410_v2, %v2419_v11 }
0x1926   :  { %v2425_v0 = vadd.f32 1e-05, %v2417_v14  ;;  %v2424_v22 = vsel %vm2422_vm6, %v2423_v13, %v2421_v15 }
0x1927   :  { %v2426_v16 = vadd.f32 1e-05, %v2424_v22 }
0x1928   :  { %4778 = vrcp.f32 %v2425_v0 }
0x1929   :  { %4780 = vrcp.f32 %v2426_v16 }
0x1932   :  { %v4779_v18 = vpop.eup %4778 }
0x1933   :  { %v4781_v26 = vpop.eup %4780  ;;  %v2429_v19 = vmul.f32 %v4779_v18, %v5846_v39 }
0x1934   :  { %v2430_v27 = vmul.f32 %v4781_v26, %v5848_v40 }
0x1935   :  { %v2431_v29 = vmul.f32 0.5, %v2429_v19 }
0x1936   :  { %v2432_v30 = vmul.f32 0.5, %v2430_v27 }
0x1938   :  { %v2437_v32 = vpack.c.bf16 %v2432_v30, %v2431_v29 }
0x193a   :  { %4463 = vmatmul.mubr.msk.bf16.vlgmr.msra.gmra.mrb[56].mxu1 %vm428_vm10, %v2437_v32  ;;  %4479 = vmatmul.mubr.msk.bf16.vlgmr.msra.gmra.mrb[64].mxu0 %vm428_vm10, %v2437_v32 }
0x193b   :  { %4467 = vmatpush3.bf16.msra.mxu1 %v2495_v31  ;;  %4470 = vmatprep.mubr.msk.bf16.mxu1 %vm5156_vm1, %v5155_v33 }
0x193c   :  { %4468 = vmatprep.subr.bf16.mxu1 %v5155_v33  ;;  %4490 = vmatprep.mubr.msk.bf16.mxu0 %vm5156_vm1, %v5155_v33 }
0x193f   :  { %4469 = vmatpush3.bf16.msra.mxu1 %v2496_v36 }
0x1940   :  { %4482 = vmatprep.subr.bf16.mxu1 %v5155_v33 }
0x1942   :  { %4471 = vmatmul.mubr.msk.bf16.vlgmr.msra.gmra.mrb[60].mxu1 %vm428_vm10, %v2437_v32 }
0x1943   :  { %4484 = vmatprep.mubr.msk.bf16.mxu1 %vm5156_vm1, %v5155_v33 }
0x1a0d   :  { %v2484_v37 = vpop.f32.mrb[56].mxu1  ;;  %v2592_v38 = vpop.f32.mrb[64].mxu0 }
0x1a0e   :  { %v4464_v39 = vpop.f32.mrb[57].mxu1  ;;  %v4480_v40 = vpop.f32.mrb[65].mxu0  ;;  %v2593_v52 = vadd.f32 %v4070_v48, %v2592_v38  ;;  %v2485_v56 = vadd.f32 %v4066_v1, %v2484_v37 }
0x1a0f   :  { %v2487_v41 = vpop.f32.mrb[58].mxu1  ;;  %v2595_v10 = vpop.f32.mrb[66].mxu0 }
0x1a10   :  { %v4465_v20 = vpop.f32.mrb[59].mxu1  ;;  %v4481_v43 = vpop.f32.mrb[67].mxu0  ;;  %v2596_v17 = vadd.f32 %v4070_v48, %v2595_v10  ;;  %v5903_v58 = vpack.c.bf16 %v2593_v52, %v2593_v52  ;;  %v2488_v23 = vadd.f32 %v4066_v1, %v2487_v41  ;;  %v5906_v59 = vpack.c.bf16 %v2485_v56, %v2485_v56 }
0x1a12   :  { %v5908_v63 = vpack.c.bf16 %v2596_v17, %v2596_v17  ;;  %v5910_v4 = vpack.c.bf16 %v2488_v23, %v2488_v23  ;;  %v2729_v6 = vsel %vm881_vm4, %v5903_v58, 0 }
0x1a14   :  { %v2775_v60 = vsel %vm881_vm4, %v5908_v63, 0 }
0x1a15   :  { %v2538_v45 = vpop.f32.mrb[60].mxu1 }
0x1a16   :  { %v2539_v46 = vadd.f32 %v4068_v44, %v2538_v45  ;;  %v4472_v47 = vpop.f32.mrb[61].mxu1 }
0x1a17   :  { %v2541_v49 = vpop.f32.mrb[62].mxu1 }
0x1a18   :  { %v5893_v50 = vpack.c.bf16 %v2539_v46, %v2539_v46  ;;  %v2542_v25 = vadd.f32 %v4068_v44, %v2541_v49  ;;  %v4473_v51 = vpop.f32.mrb[63].mxu1 }
0x1a1a   :  { %v5896_v54 = vpack.c.bf16 %v2542_v25, %v2542_v25  ;;  %v2611_v55 = vsel %vm759_vm3, %v5893_v50, 0 }
0x1a1b   :  { %4483 = vmatpush3.bf16.xpose.msra.mxu1 %v2611_v55 }
0x1a1c   :  { %v2657_v57 = vsel %vm759_vm3, %v5896_v54, 0  ;;  %4494 = vmatprep.subr.bf16.mxu1 %v5155_v33 }
0x1a1d   :  { %4489 = vmatpush3.bf16.xpose.msra.mxu0 %v2657_v57 }
0x1a1e   :  { %4500 = vmatprep.subr.bf16.mxu0 %v5155_v33 }
0x1a22   :  { %4485 = vmatmul.mubr.msk.bf16.vlgmr.msra.gmra.mrb[64].mxu1 %vm759_vm3, %v5906_v59 }
0x1a23   :  { %4495 = vmatpush3.bf16.msra.mxu1 %v2729_v6  ;;  %4496 = vmatprep.mubr.msk.bf16.mxu1 %vm5156_vm1, %v5155_v33 }
0x1a24   :  { %4491 = vmatmul.mubr.msk.bf16.vlgmr.msra.gmra.mrb[68].mxu0 %vm759_vm3, %v5910_v4  ;;  %4506 = vmatprep.subr.bf16.mxu1 %v5155_v33 }
0x1a25   :  { %4501 = vmatpush3.bf16.msra.mxu0 %v2775_v60  ;;  %4502 = vmatprep.mubr.msk.bf16.mxu0 %vm5156_vm1, %v5155_v33 }
0x1a26   :  { %4512 = vmatprep.subr.bf16.mxu0 %v5155_v33 }
0x1af5   :  { %v2647_v61 = vpop.f32.mrb[64].mxu1 }
0x1af6   :  { %v4486_v62 = vpop.f32.mrb[65].mxu1  ;;  %v2699_v2 = vsel %vm759_vm3, %v2647_v61, -inf }
0x1af7   :  { %v2693_v3 = vpop.f32.mrb[68].mxu0  ;;  %2700 = vmax.xlane.f32.xlu0 %v2699_v2  ;;  %v2650_v7 = vpop.f32.mrb[66].mxu1 }
0x1af8   :  { %v4487_v8 = vpop.f32.mrb[67].mxu1  ;;  %v4492_v9 = vpop.f32.mrb[69].mxu0  ;;  %v2702_v11 = vsel %vm759_vm3, %v2693_v3, -inf }
0x1af9   :  { %2703 = vmax.xlane.f32.xlu1 %v2702_v11  ;;  %v2696_v12 = vpop.f32.mrb[70].mxu0 }
0x1afa   :  { %v4493_v13 = vpop.f32.mrb[71].mxu0 }
0x1b84   :  { %v2701_v14 = vpop.xlane.xlu0 %2700 }
0x1b85   :  { %v2705_v15 = vsub.f32 %v2647_v61, %v2701_v14 }
0x1b86   :  { %v2704_v0 = vpop.xlane.xlu1 %2703 }
0x1b87   :  { %v2707_v22 = vmul.f32 1.442695, %v2705_v15  ;;  %v2706_v16 = vsub.f32 %v2693_v3, %v2704_v0 }
0x1b89   :  { %4782 = vpow2.f32 %v2707_v22  ;;  %v2709_v18 = vmul.f32 1.442695, %v2706_v16 }
0x1b8b   :  { %4784 = vpow2.f32 %v2709_v18 }
0x1b93   :  { %v4783_v26 = vpop.eup %4782 }
0x1b94   :  { %v2711_v19 = vsel %vm759_vm3, %v4783_v26, 0.0 }
0x1b95   :  { %v4785_v27 = vpop.eup %4784  ;;  %2712 = vadd.xlane.f32.xlu0 %v2711_v19 }
0x1b96   :  { %v2714_v28 = vsel %vm759_vm3, %v4785_v27, 0.0 }
0x1b97   :  { %2715 = vadd.xlane.f32.xlu1 %v2714_v28 }
0x1ba8   :  { %2875 = vrot.lane.b32.xlu1 %v5896_v54, %s5157_s21 }
0x1bab   :  { %2823 = vrot.lane.b32.xlu0 %v5893_v50, %s5157_s21 }
0x1bac   :  { %2820 = vrot.lane.b32.xlu1 %v5906_v59, %s5157_s21 }
0x1baf   :  { %2872 = vrot.lane.b32.xlu0 %v5910_v4, %s5157_s21 }
0x1c22   :  { %v2713_v21 = vpop.xlane.xlu0 %2712 }
0x1c23   :  { %4786 = vrcp.f32 %v2713_v21 }
0x1c24   :  { %v2716_v29 = vpop.xlane.xlu1 %2715 }
0x1c25   :  { %4788 = vrcp.f32 %v2716_v29 }
0x1c26   :  { %v2824_v34 = vpop.permute.xlu0 %2823 }
0x1c27   :  { %v2829_v38 = vsel %vm759_vm3, %v2824_v34, 0 }
0x1c28   :  { %v2876_v37 = vpop.permute.xlu1 %2875 }
0x1c29   :  { %v2881_v40 = vsel %vm759_vm3, %v2876_v37, 0 }
0x1c2a   :  { %v2873_v10 = vpop.permute.xlu0 %2872 }
0x1c2c   :  { %v2821_v41 = vpop.permute.xlu1 %2820 }
0x1c2d   :  { %v4787_v30 = vpop.eup %4786 }
0x1c2e   :  { %v2719_v31 = vmul.f32 %v4787_v30, %v4783_v26  ;;  %v2600_v26 = vld [vmem:[%s6213_s16 + $0x8] sm:$0xff] }
0x1c2f   :  { %v4789_v32 = vpop.eup %4788  ;;  %v3046_v19 = vpack.c.bf16 %v2600_v26, %v2600_v26 }
0x1c30   :  { %v2720_v35 = vmul.f32 %v4789_v32, %v4785_v27  ;;  %v2721_v36 = vpack.c.bf16 %v2719_v31, %v2719_v31 }
0x1c31   :  { %v3051_v31 = vsel %vm881_vm4, %v3046_v19, 0 }
0x1c32   :  { %4497 = vmatmul.mubr.msk.bf16.vlgmr.msra.gmra.mrb[68].mxu1 %vm759_vm3, %v2721_v36  ;;  %v2722_v39 = vpack.c.bf16 %v2720_v35, %v2720_v35 }
0x1c33   :  { %4507 = vmatpush3.bf16.xpose.msra.mxu1 %v2829_v38  ;;  %4508 = vmatprep.mubr.msk.bf16.mxu1 %vm5156_vm1, %v5155_v33 }
0x1c34   :  { %4503 = vmatmul.mubr.msk.bf16.vlgmr.msra.gmra.mrb[72].mxu0 %vm759_vm3, %v2722_v39  ;;  %4518 = vmatprep.subr.bf16.mxu1 %v5155_v33 }
0x1c35   :  { %4513 = vmatpush3.bf16.xpose.msra.mxu0 %v2881_v40  ;;  %4514 = vmatprep.mubr.msk.bf16.mxu0 %vm5156_vm1, %v5155_v33 }
0x1c36   :  { %4524 = vmatprep.subr.bf16.mxu0 %v5155_v33 }
0x1c3a   :  { %4509 = vmatmul.mubr.msk.bf16.vlgmr.msra.gmra.mrb[72].mxu1 %vm759_vm3, %v2821_v41 }
0x1c3b   :  { %4520 = vmatprep.mubr.msk.bf16.mxu1 %vm5156_vm1, %v5155_v33 }
0x1c3c   :  { %4515 = vmatmul.mubr.msk.bf16.vlgmr.msra.gmra.mrb[76].mxu0 %vm759_vm3, %v2873_v10 }
0x1c3d   :  { %4526 = vmatprep.mubr.msk.bf16.mxu0 %vm5156_vm1, %v5155_v33 }
0x1d05   :  { %v5954_v20 = vpop.f32.mrb[68].mxu1 }
0x1d06   :  { %v4498_v43 = vpop.f32.mrb[69].mxu1 }
0x1d07   :  { %v2768_v44 = vpop.f32.mrb[70].mxu1  ;;  %v5956_v45 = vpop.f32.mrb[72].mxu0 }
0x1d08   :  { %v2817_v46 = vpack.c.bf16 %v5956_v45, %v5954_v20  ;;  %v4499_v47 = vpop.f32.mrb[71].mxu1  ;;  %v4504_v48 = vpop.f32.mrb[73].mxu0 }
0x1d09   :  { %v2814_v49 = vpop.f32.mrb[74].mxu0 }
0x1d0a   :  { %v4505_v25 = vpop.f32.mrb[75].mxu0 }
0x1d0d   :  { %v2865_v51 = vpop.f32.mrb[72].mxu1 }
0x1d0e   :  { %v4510_v1 = vpop.f32.mrb[73].mxu1  ;;  %v2923_v52 = vsel %vm759_vm3, %v2865_v51, -inf }
0x1d0f   :  { %v2917_v55 = vpop.f32.mrb[76].mxu0  ;;  %2924 = vmax.xlane.f32.xlu1 %v2923_v52  ;;  %v2868_v56 = vpop.f32.mrb[74].mxu1 }
0x1d10   :  { %v4511_v17 = vpop.f32.mrb[75].mxu1  ;;  %v4516_v57 = vpop.f32.mrb[77].mxu0  ;;  %v2926_v23 = vsel %vm759_vm3, %v2917_v55, -inf }
0x1d11   :  { %2927 = vmax.xlane.f32.xlu0 %v2926_v23  ;;  %v2920_v6 = vpop.f32.mrb[78].mxu0 }
0x1d12   :  { %v4517_v60 = vpop.f32.mrb[79].mxu0 }
0x1d9c   :  { %v2925_v61 = vpop.xlane.xlu1 %2924 }
0x1d9d   :  { %v2929_v62 = vsub.f32 %v2865_v51, %v2925_v61 }
0x1d9e   :  { %v2928_v2 = vpop.xlane.xlu0 %2927 }
0x1d9f   :  { %v2931_v3 = vmul.f32 1.442695, %v2929_v62  ;;  %v2930_v7 = vsub.f32 %v2917_v55, %v2928_v2 }
0x1da1   :  { %4790 = vpow2.f32 %v2931_v3  ;;  %v2933_v8 = vmul.f32 1.442695, %v2930_v7 }
0x1da3   :  { %4792 = vpow2.f32 %v2933_v8 }
0x1dab   :  { %v4791_v9 = vpop.eup %4790 }
0x1dac   :  { %v2935_v11 = vsel %vm759_vm3, %v4791_v9, 0.0 }
0x1dad   :  { %v4793_v12 = vpop.eup %4792  ;;  %2936 = vadd.xlane.f32.xlu0 %v2935_v11 }
0x1dae   :  { %v2938_v13 = vsel %vm759_vm3, %v4793_v12, 0.0 }
0x1daf   :  { %2939 = vadd.xlane.f32.xlu1 %v2938_v13 }
0x1dc0   :  { %2997 = vrot.lane.b32.xlu1 %v5908_v63, %s5157_s21 }
0x1dc3   :  { %2948 = vrot.lane.b32.xlu0 %v5903_v58, %s5157_s21 }
0x1dc4   :  { %3096 = vrot.lane.b32.xlu1 %v5893_v50, %s5154_s8 }
0x1dc7   :  { %3146 = vrot.lane.b32.xlu0 %v5896_v54, %s5154_s8 }
0x1dc8   :  { %3094 = vrot.lane.b32.xlu1 %v5906_v59, %s5154_s8 }
0x1dcb   :  { %3144 = vrot.lane.b32.xlu0 %v5910_v4, %s5154_s8 }
0x1e3a   :  { %v2937_v14 = vpop.xlane.xlu0 %2936 }
0x1e3b   :  { %4794 = vrcp.f32 %v2937_v14 }
0x1e3c   :  { %v2940_v15 = vpop.xlane.xlu1 %2939 }
0x1e3d   :  { %4796 = vrcp.f32 %v2940_v15 }
0x1e3e   :  { %v2949_v0 = vpop.permute.xlu0 %2948 }
0x1e3f   :  { %v2954_v22 = vsel %vm881_vm4, %v2949_v0, 0 }
0x1e40   :  { %4519 = vmatpush3.bf16.msra.mxu1 %v2954_v22  ;;  %v2998_v16 = vpop.permute.xlu1 %2997 }
0x1e41   :  { %v3003_v18 = vsel %vm881_vm4, %v2998_v16, 0  ;;  %4530 = vmatprep.subr.bf16.mxu1 %v5155_v33 }
0x1e42   :  { %4525 = vmatpush3.bf16.msra.mxu0 %v3003_v18  ;;  %v3147_v38 = vpop.permute.xlu0 %3146 }
0x1e43   :  { %4536 = vmatprep.subr.bf16.mxu0 %v5155_v33  ;;  %v3152_v48 = vsel %vm759_vm3, %v3147_v38, 0 }
0x1e44   :  { %v3097_v32 = vpop.permute.xlu1 %3096 }
0x1e45   :  { %v4795_v27 = vpop.eup %4794  ;;  %v3102_v35 = vsel %vm759_vm3, %v3097_v32, 0 }
0x1e46   :  { %v2943_v28 = vmul.f32 %v4795_v27, %v4791_v9  ;;  %v3145_v52 = vpop.permute.xlu0 %3144  ;;  %v2601_v27 = vld [vmem:[%s6213_s16 + $0x10] sm:$0xff] }
0x1e47   :  { %v4797_v21 = vpop.eup %4796 }
0x1e48   :  { %v2944_v29 = vmul.f32 %v4797_v21, %v4793_v12  ;;  %v2945_v30 = vpack.c.bf16 %v2943_v28, %v2943_v28  ;;  %v3095_v36 = vpop.permute.xlu1 %3094  ;;  %v3315_v28 = vpack.c.bf16 %v2601_v27, %v2601_v27 }
0x1e4a   :  { %4521 = vmatmul.mubr.msk.bf16.vlgmr.msra.gmra.mrb[76].mxu1 %vm759_vm3, %v2945_v30  ;;  %v2946_v34 = vpack.c.bf16 %v2944_v29, %v2944_v29  ;;  %v3320_v21 = vsel %vm881_vm4, %v3315_v28, 0  ;;  %v2602_v28 = vld [vmem:[%s6213_s16 + $0x18] sm:$0xff] }
0x1e4b   :  { %4531 = vmatpush3.bf16.msra.mxu1 %v3051_v31  ;;  %4532 = vmatprep.mubr.msk.bf16.mxu1 %vm5156_vm1, %v5155_v33 }
0x1e4c   :  { %4527 = vmatmul.mubr.msk.bf16.vlgmr.msra.gmra.mrb[80].mxu0 %vm759_vm3, %v2946_v34  ;;  %4542 = vmatprep.subr.bf16.mxu1 %v5155_v33 }
0x1e4d   :  { %4537 = vmatpush3.bf16.xpose.msra.mxu0 %v3102_v35  ;;  %4538 = vmatprep.mubr.msk.bf16.mxu0 %vm5156_vm1, %v5155_v33 }
0x1e4e   :  { %4548 = vmatprep.subr.bf16.mxu0 %v5155_v33 }
0x1e54   :  { %4539 = vmatmul.mubr.msk.bf16.vlgmr.msra.gmra.mrb[84].mxu0 %vm759_vm3, %v3095_v36 }
0x1e55   :  { %4550 = vmatprep.mubr.msk.bf16.mxu0 %vm5156_vm1, %v5155_v33 }
0x1f1d   :  { %v2990_v37 = vpop.f32.mrb[76].mxu1 }
0x1f1e   :  { %v4522_v39 = vpop.f32.mrb[77].mxu1 }
0x1f1f   :  { %v2993_v40 = vpop.f32.mrb[78].mxu1  ;;  %v3039_v41 = vpop.f32.mrb[80].mxu0 }
0x1f20   :  { %v3045_v10 = vpack.c.bf16 %v3039_v41, %v2990_v37  ;;  %v4523_v43 = vpop.f32.mrb[79].mxu1  ;;  %v4528_v44 = vpop.f32.mrb[81].mxu0 }
0x1f21   :  { %v3042_v47 = vpop.f32.mrb[82].mxu0 }
0x1f22   :  { %v4529_v49 = vpop.f32.mrb[83].mxu0  ;;  %4533 = vmatmul.mubr.msk.bf16.vlgmr.msra.gmra.mrb[80].mxu1 %vm759_vm3, %v3045_v10 }
0x1f23   :  { %4543 = vmatpush3.bf16.xpose.msra.mxu1 %v3152_v48  ;;  %4544 = vmatprep.mubr.msk.bf16.mxu1 %vm5156_vm1, %v5155_v33 }
0x1f24   :  { %4554 = vmatprep.subr.bf16.mxu1 %v5155_v33 }
0x1f27   :  { %v3138_v25 = vpop.f32.mrb[84].mxu0 }
0x1f28   :  { %v4540_v51 = vpop.f32.mrb[85].mxu0  ;;  %v3194_v1 = vsel %vm759_vm3, %v3138_v25, -inf }
0x1f29   :  { %3195 = vmax.xlane.f32.xlu1 %v3194_v1  ;;  %v3141_v55 = vpop.f32.mrb[86].mxu0 }
0x1f2a   :  { %v4541_v56 = vpop.f32.mrb[87].mxu0  ;;  %4545 = vmatmul.mubr.msk.bf16.vlgmr.msra.gmra.mrb[84].mxu1 %vm759_vm3, %v3145_v52 }
0x1f2b   :  { %4556 = vmatprep.mubr.msk.bf16.mxu1 %vm5156_vm1, %v5155_v33 }
0x1fb6   :  { %v3196_v17 = vpop.xlane.xlu1 %3195 }
0x1fb7   :  { %v3200_v57 = vsub.f32 %v3138_v25, %v3196_v17 }
0x1fb9   :  { %v3202_v23 = vmul.f32 1.442695, %v3200_v57 }
0x1fbb   :  { %4798 = vpow2.f32 %v3202_v23 }
0x1fc5   :  { %v4799_v8 = vpop.eup %4798 }
0x1fc6   :  { %v3206_v12 = vsel %vm759_vm3, %v4799_v8, 0.0 }
0x1ff5   :  { %v6003_v6 = vpop.f32.mrb[80].mxu1 }
0x1ff6   :  { %v4534_v60 = vpop.f32.mrb[81].mxu1 }
0x1ff7   :  { %v6005_v61 = vpop.f32.mrb[82].mxu1 }
0x1ff8   :  { %v4535_v62 = vpop.f32.mrb[83].mxu1 }
0x1ffd   :  { %v3188_v2 = vpop.f32.mrb[84].mxu1 }
0x1ffe   :  { %v4546_v3 = vpop.f32.mrb[85].mxu1  ;;  %v3197_v7 = vsel %vm759_vm3, %v3188_v2, -inf }
0x1fff   :  { %3198 = vmax.xlane.f32.xlu0 %v3197_v7  ;;  %v3191_v9 = vpop.f32.mrb[86].mxu1 }
0x2000   :  { %v4547_v11 = vpop.f32.mrb[87].mxu1 }
0x2003   :  { %3207 = vadd.xlane.f32.xlu0 %v3206_v12 }
0x2019   :  { %3218 = vrot.lane.b32.xlu0 %v5903_v58, %s5154_s8 }
0x201d   :  { %3415 = vrot.lane.b32.xlu0 %v5896_v54, %s5158_s0 }
0x2021   :  { %3413 = vrot.lane.b32.xlu0 %v5910_v4, %s5158_s0 }
0x208c   :  { %v3199_v13 = vpop.xlane.xlu0 %3198 }
0x208d   :  { %v3201_v14 = vsub.f32 %v3188_v2, %v3199_v13 }
0x208f   :  { %v3204_v15 = vmul.f32 1.442695, %v3201_v14 }
0x2090   :  { %v3208_v0 = vpop.xlane.xlu0 %3207 }
0x2091   :  { %4800 = vpow2.f32 %v3204_v15 }
0x2092   :  { %4802 = vrcp.f32 %v3208_v0 }
0x2094   :  { %v3219_v22 = vpop.permute.xlu0 %3218 }
0x2095   :  { %v3224_v16 = vsel %vm881_vm4, %v3219_v22, 0 }
0x2096   :  { %4549 = vmatpush3.bf16.msra.mxu0 %v3224_v16 }
0x2097   :  { %4560 = vmatprep.subr.bf16.mxu0 %v5155_v33 }
0x2098   :  { %v3416_v41 = vpop.permute.xlu0 %3415 }
0x2099   :  { %v3421_v48 = vsel %vm759_vm3, %v3416_v41, 0 }
0x209b   :  { %v4801_v18 = vpop.eup %4800 }
0x209c   :  { %v4803_v26 = vpop.eup %4802  ;;  %v3209_v54 = vsel %vm759_vm3, %v4801_v18, 0.0  ;;  %v3414_v52 = vpop.permute.xlu0 %3413 }
0x209d   :  { %v3214_v19 = vmul.f32 %v4803_v26, %v4799_v8  ;;  %3210 = vadd.xlane.f32.xlu1 %v3209_v54 }
0x209f   :  { %v3216_v4 = vpack.c.bf16 %v3214_v19, %v3214_v19 }
0x20a1   :  { %4551 = vmatmul.mubr.msk.bf16.vlgmr.msra.gmra.mrb[88].mxu0 %vm759_vm3, %v3216_v4 }
0x20a2   :  { %4562 = vmatprep.mubr.msk.bf16.mxu0 %vm5156_vm1, %v5155_v33  ;;  %4561 = vmatpush3.bf16.msra.mxu0 %v3320_v21  ;;  %v3584_v21 = vpack.c.bf16 %v2602_v28, %v2602_v28  ;;  %v3807_v28 = vld [vmem:[%s6216_s14 + $0x8] sm:$0xff] }
0x20a3   :  { %4572 = vmatprep.subr.bf16.mxu0 %v5155_v33 }
0x20ae   :  { %3266 = vrot.lane.b32.xlu1 %v5908_v63, %s5154_s8  ;;  %s6217_s8 = sld [smem:[#allocation45_spill]] }
0x20b2   :  { %3365 = vrot.lane.b32.xlu1 %v5893_v50, %s5158_s0 }
0x20b6   :  { %3363 = vrot.lane.b32.xlu1 %v5906_v59, %s5158_s0 }
0x212a   :  { %v3211_v29 = vpop.xlane.xlu1 %3210 }
0x212b   :  { %4804 = vrcp.f32 %v3211_v29  ;;  %v3589_v29 = vsel %vm881_vm4, %v3584_v21, 0  ;;  %v3808_v21 = vld [vmem:[%s6216_s14 + $0x10] sm:$0xff] }
0x212e   :  { %v3267_v30 = vpop.permute.xlu1 %3266 }
0x212f   :  { %v3272_v31 = vsel %vm881_vm4, %v3267_v30, 0 }
0x2130   :  { %4555 = vmatpush3.bf16.msra.mxu1 %v3272_v31 }
0x2131   :  { %4566 = vmatprep.subr.bf16.mxu1 %v5155_v33 }
0x2132   :  { %v3366_v34 = vpop.permute.xlu1 %3365 }
0x2133   :  { %v3371_v59 = vsel %vm759_vm3, %v3366_v34, 0 }
0x2135   :  { %v4805_v32 = vpop.eup %4804 }
0x2136   :  { %v3215_v50 = vmul.f32 %v4805_v32, %v4801_v18  ;;  %v3364_v36 = vpop.permute.xlu1 %3363 }
0x2138   :  { %v3217_v35 = vpack.c.bf16 %v3215_v50, %v3215_v50  ;;  %v2599_v50 = vld [vmem:[%s6213_s16] sm:$0xff] }
0x2139   :  { %v2818_v34 = vpack.c.bf16 %v2599_v50, %v2599_v50 }
0x213a   :  { %4557 = vmatmul.mubr.msk.bf16.vlgmr.msra.gmra.mrb[88].mxu1 %vm759_vm3, %v3217_v35 }
0x213b   :  { %4567 = vmatpush3.bf16.xpose.msra.mxu1 %v3371_v59  ;;  %4568 = vmatprep.mubr.msk.bf16.mxu1 %vm5156_vm1, %v5155_v33 }
0x213c   :  { %4578 = vmatprep.subr.bf16.mxu1 %v5155_v33 }
0x2142   :  { %4569 = vmatmul.mubr.msk.bf16.vlgmr.msra.gmra.mrb[92].mxu1 %vm759_vm3, %v3364_v36  ;;  %v3636_v36 = vsel %vm881_vm4, %v2818_v34, 0 }
0x2143   :  { %4580 = vmatprep.mubr.msk.bf16.mxu1 %vm5156_vm1, %v5155_v33 }
0x2174   :  { %v3260_v37 = vpop.f32.mrb[88].mxu0 }
0x2175   :  { %v4552_v38 = vpop.f32.mrb[89].mxu0 }
0x2176   :  { %v3263_v39 = vpop.f32.mrb[90].mxu0 }
0x2177   :  { %v4553_v40 = vpop.f32.mrb[91].mxu0 }
0x220d   :  { %v3308_v10 = vpop.f32.mrb[88].mxu1 }
0x220e   :  { %v3314_v43 = vpack.c.bf16 %v3308_v10, %v3260_v37  ;;  %v4558_v44 = vpop.f32.mrb[89].mxu1 }
0x220f   :  { %v3311_v47 = vpop.f32.mrb[90].mxu1 }
0x2210   :  { %v4559_v49 = vpop.f32.mrb[91].mxu1  ;;  %4563 = vmatmul.mubr.msk.bf16.vlgmr.msra.gmra.mrb[92].mxu0 %vm759_vm3, %v3314_v43 }
0x2211   :  { %4573 = vmatpush3.bf16.xpose.msra.mxu0 %v3421_v48  ;;  %4574 = vmatprep.mubr.msk.bf16.mxu0 %vm5156_vm1, %v5155_v33 }
0x2212   :  { %4584 = vmatprep.subr.bf16.mxu0 %v5155_v33 }
0x2215   :  { %v3407_v25 = vpop.f32.mrb[92].mxu1 }
0x2216   :  { %v4570_v51 = vpop.f32.mrb[93].mxu1  ;;  %v3463_v1 = vsel %vm759_vm3, %v3407_v25, -inf }
0x2217   :  { %3464 = vmax.xlane.f32.xlu1 %v3463_v1  ;;  %v3410_v55 = vpop.f32.mrb[94].mxu1 }
0x2218   :  { %v4571_v56 = vpop.f32.mrb[95].mxu1  ;;  %4575 = vmatmul.mubr.msk.bf16.vlgmr.msra.gmra.mrb[96].mxu0 %vm759_vm3, %v3414_v52  ;;  %v4092_v55 = vld [vmem:[%s6214_s18] ss:$0 sm:$0xff] }
0x2219   :  { %4586 = vmatprep.mubr.msk.bf16.mxu0 %vm5156_vm1, %v5155_v33 }
0x22a4   :  { %v3465_v17 = vpop.xlane.xlu1 %3464 }
0x22a5   :  { %v3469_v57 = vsub.f32 %v3407_v25, %v3465_v17 }
0x22a7   :  { %v3471_v23 = vmul.f32 1.442695, %v3469_v57 }
0x22a9   :  { %4806 = vpow2.f32 %v3471_v23 }
0x22b3   :  { %v4807_v11 = vpop.eup %4806 }
0x22b4   :  { %v3475_v14 = vsel %vm759_vm3, %v4807_v11, 0.0 }
0x22e3   :  { %v6049_v60 = vpop.f32.mrb[92].mxu0 }
0x22e4   :  { %v4564_v62 = vpop.f32.mrb[93].mxu0 }
0x22e5   :  { %v6051_v2 = vpop.f32.mrb[94].mxu0 }
0x22e6   :  { %v4565_v3 = vpop.f32.mrb[95].mxu0 }
0x22eb   :  { %v3457_v7 = vpop.f32.mrb[96].mxu0 }
0x22ec   :  { %v4576_v8 = vpop.f32.mrb[97].mxu0  ;;  %v3466_v9 = vsel %vm759_vm3, %v3457_v7, -inf }
0x22ed   :  { %3467 = vmax.xlane.f32.xlu0 %v3466_v9  ;;  %v3460_v12 = vpop.f32.mrb[98].mxu0 }
0x22ee   :  { %v4577_v13 = vpop.f32.mrb[99].mxu0 }
0x22f1   :  { %3476 = vadd.xlane.f32.xlu0 %v3475_v14 }
0x2307   :  { %3487 = vrot.lane.b32.xlu0 %v5903_v58, %s5158_s0 }
0x237a   :  { %v3468_v15 = vpop.xlane.xlu0 %3467 }
0x237b   :  { %v3470_v0 = vsub.f32 %v3457_v7, %v3468_v15 }
0x237d   :  { %v3473_v22 = vmul.f32 1.442695, %v3470_v0 }
0x237e   :  { %v3477_v16 = vpop.xlane.xlu0 %3476 }
0x237f   :  { %4808 = vpow2.f32 %v3473_v22  ;;  %v4060_v22 = vld [vmem:[#allocation18] ss:$0 sm:$0xff] }
0x2380   :  { %4810 = vrcp.f32 %v3477_v16  ;;  %v2322_v16 = vadd.f32 %v4060_v22, %v5856_v24  ;;  %v3806_v24 = vld [vmem:[%s6216_s14] sm:$0xff] }
0x2382   :  { %v3488_v18 = vpop.permute.xlu0 %3487 }
0x2383   :  { %v3493_v26 = vsel %vm881_vm4, %v3488_v18, 0  ;;  %v2319_v18 = vadd.f32 %v4060_v22, %v5854_v42  ;;  %v3809_v42 = vld [vmem:[%s6216_s14 + $0x18] sm:$0xff] }
0x2384   :  { %4579 = vmatpush3.bf16.msra.mxu1 %v3493_v26  ;;  %v3738_v26 = vld [vmem:[%s6215_s30] sm:$0xff] }
0x2385   :  { %4590 = vmatprep.subr.bf16.mxu1 %v5155_v33 }
0x2389   :  { %v4809_v54 = vpop.eup %4808 }
0x238a   :  { %v4811_v19 = vpop.eup %4810  ;;  %v3478_v4 = vsel %vm759_vm3, %v4809_v54, 0.0 }
0x238b   :  { %v3483_v27 = vmul.f32 %v4811_v19, %v4807_v11  ;;  %3479 = vadd.xlane.f32.xlu1 %v3478_v4  ;;  %v3740_v4 = vld [vmem:[%s6215_s30 + $0x10] sm:$0xff] }
0x238d   :  { %v3485_v58 = vpack.c.bf16 %v3483_v27, %v3483_v27  ;;  %v3741_v27 = vld [vmem:[%s6215_s30 + $0x18] sm:$0xff] }
0x238f   :  { %4581 = vmatmul.mubr.msk.bf16.vlgmr.msra.gmra.mrb[96].mxu1 %vm759_vm3, %v3485_v58  ;;  %v3744_v58 = vpack.c.bf16 %v3741_v27, %v3740_v4  ;;  %v3881_v27 = vld [vmem:[%s5368_s27] sm:$0xff] }
0x2390   :  { %4592 = vmatprep.mubr.msk.bf16.mxu1 %vm5156_vm1, %v5155_v33  ;;  %4591 = vmatpush3.bf16.msra.mxu1 %v3589_v29  ;;  %v3823_v29 = vpack.c.bf16 %v3807_v28, %v3806_v24  ;;  %v3883_v28 = vld [vmem:[%s5368_s27 + $0x10] sm:$0xff] }
0x2391   :  { %4602 = vmatprep.subr.bf16.mxu1 %v5155_v33 }
0x239c   :  { %3535 = vrot.lane.b32.xlu1 %v5908_v63, %s5158_s0 }
0x2418   :  { %v3480_v30 = vpop.xlane.xlu1 %3479 }
0x2419   :  { %4812 = vrcp.f32 %v3480_v30  ;;  %v3824_v30 = vpack.c.bf16 %v3809_v42, %v3808_v21  ;;  %v3884_v21 = vld [vmem:[%s5368_s27 + $0x18] sm:$0xff]  ;;  %v4097_v42 = vld [vmem:[%s6220_s13] ss:$0 sm:$0xff] }
0x241c   :  { %v3536_v31 = vpop.permute.xlu1 %3535 }
0x241d   :  { %v3541_v32 = vsel %vm881_vm4, %v3536_v31, 0 }
0x241e   :  { %4585 = vmatpush3.bf16.msra.mxu0 %v3541_v32 }
0x241f   :  { %4596 = vmatprep.subr.bf16.mxu0 %v5155_v33 }
0x2423   :  { %v4813_v35 = vpop.eup %4812 }
0x2424   :  { %v3484_v59 = vmul.f32 %v4813_v35, %v4809_v54  ;;  %v3739_v54 = vld [vmem:[%s6215_s30 + $0x8] sm:$0xff] }
0x2425   :  { %v3743_v19 = vpack.c.bf16 %v3739_v54, %v3738_v26 }
0x2426   :  { %v3486_v63 = vpack.c.bf16 %v3484_v59, %v3484_v59 }
0x2428   :  { %4587 = vmatmul.mubr.msk.bf16.vlgmr.msra.gmra.mrb[100].mxu0 %vm759_vm3, %v3486_v63 }
0x2429   :  { %4597 = vmatpush3.bf16.msra.mxu0 %v3636_v36  ;;  %4598 = vmatprep.mubr.msk.bf16.mxu0 %vm5156_vm1, %v5155_v33  ;;  %v4093_v36 = vld [vmem:[%s6217_s8] ss:$0 sm:$0xff] }
0x242a   :  { %4610 = vmatprep.subr.bf16.mxu0 %v5155_v33 }
0x2430   :  { %4599 = vmatmul.mubr.msk.bf16.vlgmr.msra.gmra.mrb[104].mxu0 %vm759_vm3, %v2817_v46 }
0x2431   :  { %4626 = vmatprep.mubr.msk.bf16.mxu0 %vm5156_vm1, %v5155_v33  ;;  %4611 = vmatpush3.bf16.msra.mxu0 %v3823_v29  ;;  %v3887_v29 = vpack.c.bf16 %v3884_v21, %v3883_v28 }
0x2432   :  { %4612 = vmatprep.subr.bf16.mxu0 %v5155_v33 }
0x2435   :  { %4613 = vmatpush3.bf16.msra.mxu0 %v3824_v30 }
0x2436   :  { %4614 = vmatprep.subr.bf16.mxu0 %v5155_v33 }
0x2462   :  { %v3529_v37 = vpop.f32.mrb[96].mxu1 }
0x2463   :  { %v4582_v38 = vpop.f32.mrb[97].mxu1 }
0x2464   :  { %v3532_v39 = vpop.f32.mrb[98].mxu1 }
0x2465   :  { %v4583_v40 = vpop.f32.mrb[99].mxu1 }
0x24fb   :  { %v3577_v41 = vpop.f32.mrb[100].mxu0 }
0x24fc   :  { %v3583_v10 = vpack.c.bf16 %v3577_v41, %v3529_v37  ;;  %v4588_v43 = vpop.f32.mrb[101].mxu0  ;;  %v4094_v41 = vld [vmem:[%s6218_s5] ss:$0 sm:$0xff] }
0x24fd   :  { %v3580_v44 = vpop.f32.mrb[102].mxu0 }
0x24fe   :  { %v4589_v47 = vpop.f32.mrb[103].mxu0  ;;  %4593 = vmatmul.mubr.msk.bf16.vlgmr.msra.gmra.mrb[100].mxu1 %vm759_vm3, %v3583_v10 }
0x24ff   :  { %4606 = vmatprep.mubr.msk.bf16.mxu1 %vm5156_vm1, %v5155_v33  ;;  %4603 = vmatpush3.bf16.msra.mxu1 %v3743_v19 }
0x2500   :  { %4604 = vmatprep.subr.bf16.mxu1 %v5155_v33 }
0x2503   :  { %v3672_v20 = vpop.f32.mrb[104].mxu0  ;;  %4605 = vmatpush3.bf16.msra.mxu1 %v3744_v58  ;;  %v3882_v58 = vld [vmem:[%s5368_s27 + $0x8] sm:$0xff] }
0x2504   :  { %v3673_v45 = vadd.f32 %v3672_v20, %v6003_v6  ;;  %v4600_v46 = vpop.f32.mrb[105].mxu0  ;;  %4630 = vmatprep.subr.bf16.mxu1 %v5155_v33  ;;  %v3810_v20 = vld [vmem:[%s6216_s14 + $0x20] sm:$0xff]  ;;  %v3886_v24 = vpack.c.bf16 %v3882_v58, %v3881_v27 }
0x2505   :  { %v3675_v48 = vpop.f32.mrb[106].mxu0 }
0x2506   :  { %v3676_v49 = vadd.f32 %v3675_v48, %v6005_v61  ;;  %v4601_v25 = vpop.f32.mrb[107].mxu0  ;;  %v3679_v51 = vadd.f32 %v3673_v45, %v6049_v60  ;;  %v3811_v45 = vld [vmem:[%s6216_s14 + $0x28] sm:$0xff]  ;;  %v3812_v48 = vld [vmem:[%s6216_s14 + $0x30] sm:$0xff] }
0x2507   :  { %v3825_v46 = vpack.c.bf16 %v3811_v45, %v3810_v20 }
0x2508   :  { %v3680_v1 = vadd.f32 %v3676_v49, %v6051_v2  ;;  %v3813_v49 = vld [vmem:[%s6216_s14 + $0x38] sm:$0xff] }
0x2509   :  { %4615 = vmatpush3.bf16.msra.mxu0 %v3825_v46  ;;  %v3826_v25 = vpack.c.bf16 %v3813_v49, %v3812_v48 }
0x250a   :  { %4616 = vmatprep.subr.bf16.mxu0 %v5155_v33 }
0x250d   :  { %4617 = vmatpush3.bf16.msra.mxu0 %v3826_v25 }
0x250e   :  { %4618 = vmatprep.subr.bf16.mxu0 %v5155_v33 }
0x25d1   :  { %v3625_v52 = vpop.f32.mrb[100].mxu1 }
0x25d2   :  { %v3681_v56 = vadd.f32 %v3679_v51, %v3625_v52  ;;  %v4594_v17 = vpop.f32.mrb[101].mxu1  ;;  %v3814_v51 = vld [vmem:[%s6216_s14 + $0x40] sm:$0xff] }
0x25d3   :  { %v3628_v57 = vpop.f32.mrb[102].mxu1 }
0x25d4   :  { %v3690_v23 = vadd.f32 %v4092_v55, %v3681_v56  ;;  %v3682_v62 = vadd.f32 %v3680_v1, %v3628_v57  ;;  %v4595_v3 = vpop.f32.mrb[103].mxu1  ;;  %v3815_v1 = vld [vmem:[%s6216_s14 + $0x48] sm:$0xff]  ;;  %v3817_v56 = vld [vmem:[%s6216_s14 + $0x58] sm:$0xff]  ;;  %v3818_v57 = vld [vmem:[%s6216_s14 + $0x60] sm:$0xff] }
0x25d5   :  { %v3827_v52 = vpack.c.bf16 %v3815_v1, %v3814_v51  ;;  %v3820_v3 = vld [vmem:[%s6216_s14 + $0x70] sm:$0xff] }
0x25d6   :  { %v6091_v7 = vadd.f32 %v3690_v23, %v5784_v5  ;;  %v3691_v6 = vadd.f32 %v4092_v55, %v3682_v62  ;;  %v3816_v55 = vld [vmem:[%s6216_s14 + $0x50] sm:$0xff]  ;;  %v3819_v23 = vld [vmem:[%s6216_s14 + $0x68] sm:$0xff] }
0x25d7   :  { %4619 = vmatpush3.bf16.msra.mxu0 %v3827_v52  ;;  %v3828_v17 = vpack.c.bf16 %v3817_v56, %v3816_v55  ;;  %v3829_v62 = vpack.c.bf16 %v3819_v23, %v3818_v57 }
0x25d8   :  { %v6094_v8 = vadd.f32 %v3691_v6, %v5789_v53  ;;  %v3696_v61 = vsel %vm428_vm10, %v6091_v7, 0.0  ;;  %4620 = vmatprep.subr.bf16.mxu0 %v5155_v33  ;;  %v3821_v6 = vld [vmem:[%s6216_s14 + $0x78] sm:$0xff] }
0x25d9   :  { %3697 = vadd.xlane.f32.xlu1 %v3696_v61  ;;  %v3830_v61 = vpack.c.bf16 %v3821_v6, %v3820_v3 }
0x25da   :  { %v3699_v60 = vsel %vm428_vm10, %v6094_v8, 0.0 }
0x25db   :  { %3700 = vadd.xlane.f32.xlu0 %v3699_v60  ;;  %4621 = vmatpush3.bf16.msra.mxu0 %v3828_v17  ;;  %v4095_v60 = vld [vmem:[%s6219_s9] ss:$0 sm:$0xff] }
0x25dc   :  { %4622 = vmatprep.subr.bf16.mxu0 %v5155_v33 }
0x25df   :  { %4623 = vmatpush3.bf16.msra.mxu0 %v3829_v62 }
0x25e0   :  { %4624 = vmatprep.subr.bf16.mxu0 %v5155_v33 }
0x25e3   :  { %4625 = vmatpush3.bf16.msra.mxu0 %v3830_v61 }
0x2666   :  { %v3698_v2 = vpop.xlane.xlu1 %3697 }
0x2667   :  { %v3702_v9 = vmul.f32 0.03125, %v3698_v2 }
0x2668   :  { %v3701_v11 = vpop.xlane.xlu0 %3700 }
0x2669   :  { %v3704_v12 = vsub.f32 %v6091_v7, %v3702_v9  ;;  %v3703_v5 = vmul.f32 0.03125, %v3701_v11 }
0x266b   :  { %v3705_v13 = vsub.f32 %v6094_v8, %v3703_v5  ;;  %v3706_v53 = vmul.f32 %v3704_v12, %v3704_v12 }
0x266d   :  { %v3708_v14 = vsel %vm428_vm10, %v3706_v53, 0.0  ;;  %v3707_v15 = vmul.f32 %v3705_v13, %v3705_v13 }
0x266e   :  { %3709 = vadd.xlane.f32.xlu0 %v3708_v14 }
0x266f   :  { %v3711_v0 = vsel %vm428_vm10, %v3707_v15, 0.0 }
0x2670   :  { %3712 = vadd.xlane.f32.xlu1 %v3711_v0 }
0x2681   :  { %3943 = vrot.lane.b32.xlu1 %v2322_v16, %s5159_s22 }
0x2684   :  { %3941 = vrot.lane.b32.xlu0 %v2319_v18, %s5159_s22 }
0x26fb   :  { %v3710_v31 = vpop.xlane.xlu0 %3709 }
0x26fc   :  { %v3714_v32 = vmul.f32 0.03125, %v3710_v31 }
0x26fd   :  { %v3713_v50 = vpop.xlane.xlu1 %3712 }
0x26fe   :  { %v3716_v34 = vadd.f32 1e-05, %v3714_v32  ;;  %v3715_v35 = vmul.f32 0.03125, %v3713_v50 }
0x2700   :  { %4814 = vrsqrt.f32 %v3716_v34  ;;  %v3717_v59 = vadd.f32 1e-05, %v3715_v35 }
0x2702   :  { %4816 = vrsqrt.f32 %v3717_v59 }
0x270a   :  { %v4815_v63 = vpop.eup %4814 }
0x270b   :  { %v3720_v37 = vmul.f32 %v4815_v63, %v3704_v12 }
0x270c   :  { %v4817_v38 = vpop.eup %4816 }
0x270d   :  { %v3728_v39 = vmul.f32 %v4093_v36, %v3720_v37  ;;  %v3721_v40 = vmul.f32 %v4817_v38, %v3705_v13 }
0x270f   :  { %v3729_v10 = vmul.f32 %v4093_v36, %v3721_v40  ;;  %v3736_v43 = vadd.f32 %v4094_v41, %v3728_v39  ;;  %v3942_v40 = vpop.permute.xlu0 %3941 }
0x2711   :  { %v3737_v44 = vadd.f32 %v4094_v41, %v3729_v10 }
0x2713   :  { %v3742_v47 = vpack.c.bf16 %v3737_v44, %v3736_v43 }
0x2715   :  { %4607 = vmatmul.mubr.msk.bf16.vlgmr.msra.gmra.mrb[104].mxu1 %vm428_vm10, %v3742_v47  ;;  %v3944_v47 = vpop.permute.xlu1 %3943 }
0x2716   :  { %4634 = vmatprep.mubr.msk.bf16.mxu1 %vm5156_vm1, %v5155_v33  ;;  %4631 = vmatpush3.bf16.msra.mxu1 %v3886_v24 }
0x2717   :  { %4632 = vmatprep.subr.bf16.mxu1 %v5155_v33  ;;  %v4098_v33 = vld [vmem:[#allocation19] ss:$0 sm:$0xff] }
0x271a   :  { %4633 = vmatpush3.bf16.msra.mxu1 %v3887_v29 }
0x27e8   :  { %v3789_v2 = vpop.f32.mrb[104].mxu1 }
0x27e9   :  { %v3790_v9 = vadd.f32 %v4095_v60, %v3789_v2  ;;  %v4608_v11 = vpop.f32.mrb[105].mxu1 }
0x27ea   :  { %v3792_v12 = vpop.f32.mrb[106].mxu1 }
0x27eb   :  { %v3798_v5 = vmul.f32 0.70710677, %v3790_v9  ;;  %v3793_v13 = vadd.f32 %v4095_v60, %v3792_v12  ;;  %v4609_v53 = vpop.f32.mrb[107].mxu1  ;;  %v3796_v16 = vmul.f32 0.5, %v3790_v9 }
0x27ed   :  { %4818 = verf.f32 %v3798_v5  ;;  %v3799_v14 = vmul.f32 0.70710677, %v3793_v13  ;;  %v3797_v18 = vmul.f32 0.5, %v3793_v13 }
0x27ef   :  { %4820 = verf.f32 %v3799_v14 }
0x27f7   :  { %v4819_v15 = vpop.eup %4818 }
0x27f8   :  { %v3802_v0 = vadd.f32 1.0, %v4819_v15 }
0x27f9   :  { %v4821_v22 = vpop.eup %4820 }
0x27fa   :  { %v3803_v26 = vadd.f32 1.0, %v4821_v22  ;;  %v3804_v54 = vmul.f32 %v3802_v0, %v3796_v16 }
0x27fc   :  { %v3805_v19 = vmul.f32 %v3803_v26, %v3797_v18 }
0x27fe   :  { %v3822_v4 = vpack.c.bf16 %v3805_v19, %v3804_v54 }
0x2800   :  { %4627 = vmatmul.mubr.bf16.vlgmr.msra.gmra.mrb[108].mxu0 %v3822_v4 }
0x28d3   :  { %v3872_v30 = vpop.f32.mrb[108].mxu0 }
0x28d4   :  { %v3873_v31 = vadd.f32 %v4097_v42, %v3872_v30  ;;  %v4628_v32 = vpop.f32.mrb[109].mxu0 }
0x28d5   :  { %v3875_v50 = vpop.f32.mrb[110].mxu0 }
0x28d6   :  { %v3876_v34 = vadd.f32 %v4097_v42, %v3875_v50  ;;  %v4629_v35 = vpop.f32.mrb[111].mxu0  ;;  %v3879_v59 = vadd.f32 %v3873_v31, %v6091_v7 }
0x28d8   :  { %v3880_v63 = vadd.f32 %v3876_v34, %v6094_v8 }
0x28da   :  { %v3885_v36 = vpack.c.bf16 %v3880_v63, %v3879_v59 }
0x28dc   :  { %4635 = vmatmul.mubr.msk.bf16.vlgmr.msra.gmra.mrb[108].mxu1 %vm428_vm10, %v3885_v36 }
0x29af   :  { %v3932_v37 = vpop.f32.mrb[108].mxu1 }
0x29b0   :  { %v3933_v38 = vadd.f32 %v4098_v33, %v3932_v37  ;;  %v4636_v39 = vpop.f32.mrb[109].mxu1 }
0x29b1   :  { %v3935_v41 = vpop.f32.mrb[110].mxu1 }
0x29b2   :  { %v3947_v10 = vsel %vm316_vm0, %v3933_v38, %v3942_v40  ;;  %v3936_v43 = vadd.f32 %v4098_v33, %v3935_v41  ;;  %v4637_v44 = vpop.f32.mrb[111].mxu1 }
0x29b3   :  { %v3949_v20 = vsel %vm428_vm10, %v3947_v10, 0.0 }
0x29b4   :  { %3951 = vst [vmem:[%s5378_s12] sm:$0xff] %v3949_v20  ;;  %v3948_v7 = vsel %vm316_vm0, %v3936_v43, %v3944_v47 }
0x29b5   :  { %v3950_v8 = vsel %vm428_vm10, %v3948_v7, 0.0 }
0x29b6   :  { %3952 = vst [vmem:[%s5378_s12 + $0x8] sm:$0xff] %v3950_v8 }
0x29b7   :  { %3957 = vsyncpa [#allocation3], 1 }
0x29b8   :  { %3958 = vsyncpa [#allocation5], 1 }
0x29b9   :  { %3959 = vsyncpa [#allocation8], 1 }
0x29ba   :  { %3960 = vsyncpa [#allocation11], 1 }
0x29bb   :  { %3961 = vsyncpa [#allocation14], 1 }
0x29bc   :  { %3962 = vsyncpa [#allocation17], 1 }
0x29bd   :  { %3963 = vsyncpa [#allocation20], 1 }

</bundles_post_ra>
